<compile_context>
chip_gen: v7x
topology: tpu7x:2x2x1
jax: 0.10.0
libtpu: 0.0.40
codegen_flags: <defaults>
</compile_context>

<pallas_src>
import functools
import numpy as np
import jax
import jax.numpy as jnp
from jax.experimental import pallas as pl
from jax.experimental.pallas import tpu as pltpu

# ----------------------------- config (matches the module, small shapes) -----------------------------
B           = 2
IN_CHANS    = 2          # input_fmap
INPUT_FDIM  = 16
INPUT_TDIM  = 16
FSHAPE = TSHAPE = 4      # patch size (= stride)
EMBED_DIM   = 32
DEPTH       = 2
NUM_HEADS   = 4
DIM_FF      = 64
HEAD_DIM    = EMBED_DIM // NUM_HEADS
NUM_PATCHES = (INPUT_FDIM // FSHAPE) * (INPUT_TDIM // TSHAPE)
SEQ         = NUM_PATCHES + 1          # +1 cls token
PATCH_DIM   = IN_CHANS * FSHAPE * TSHAPE
LN_EPS      = 1e-5
NEG_INF     = -1e30

# row indices inside the packed per-layer vector slab (DEPTH, 9, D)
_BQ, _BK, _BV, _BO, _G1, _BE1, _B2, _G2, _BE2 = range(9)
# row indices inside the packed head vector slab (3, D)
_NG, _NB, _PB1 = range(3)


# ----------------------------- in-kernel helpers -----------------------------
def _layer_norm(x, gamma, beta):
    mu = jnp.mean(x, axis=-1, keepdims=True)
    var = jnp.mean((x - mu) ** 2, axis=-1, keepdims=True)
    return (x - mu) * jax.lax.rsqrt(var + LN_EPS) * gamma + beta


# ----------------------------- the fused Pallas kernel -----------------------------
def fused_forward_kernel(px_ref, bias_ref, pw_ref, amask_ref, hmask_ref, avg_ref,
                         wq_ref, wk_ref, wv_ref, wo_ref, w1_ref, b1_ref, w2_ref,
                         lvec_ref, fvec_ref, pw1_ref, pw2_ref, pb2_ref, y_ref,
                         pred_ref, mse_ref, *, depth, num_heads, head_dim):
    f32 = jnp.float32
    scale = 1.0 / float(np.sqrt(head_dim))

    # Patch embedding + cls token + sinusoid pos-embed.
    # px: (B*SEQ, PATCH_DIM) with a zero row per batch at the cls slot;
    # bias: (B*SEQ, D) = per-row (cls_token + pos[0]) or (patch_b + pos[s]).
    h = jnp.dot(px_ref[...], pw_ref[...], preferred_element_type=f32) + bias_ref[...]

    amask = amask_ref[...]                                   # (BN, BN) block-diag additive mask
    hmasks = [hmask_ref[i] for i in range(num_heads)]        # each (1, D) 0/1 lane mask

    # Post-norm TransformerEncoderLayer, ReLU FFN, dropout = identity (eval mode).
    for l in range(depth):                                   # static unroll, DEPTH=2
        lv = lvec_ref[l]                                     # (9, D) packed per-layer vectors
        bq, bk, bv, bo = lv[_BQ:_BQ + 1], lv[_BK:_BK + 1], lv[_BV:_BV + 1], lv[_BO:_BO + 1]
        g1, be1 = lv[_G1:_G1 + 1], lv[_BE1:_BE1 + 1]
        b2, g2, be2 = lv[_B2:_B2 + 1], lv[_G2:_G2 + 1], lv[_BE2:_BE2 + 1]

        q = (jnp.dot(h, wq_ref[l], preferred_element_type=f32) + bq) * scale
        k = jnp.dot(h, wk_ref[l], preferred_element_type=f32) + bk
        v = jnp.dot(h, wv_ref[l], preferred_element_type=f32) + bv

        attn = jnp.zeros_like(h)
        for hh in range(num_heads):                          # static unroll, lane-mask head split
            m = hmasks[hh]
            # scores: contract last dims directly (no explicit transpose)
            s = jax.lax.dot_general(q * m, k, (((1,), (1,)), ((), ())),
                                    preferred_element_type=f32)          # (BN, BN)
            s = s + amask
            s = s - jnp.max(s, axis=-1, keepdims=True)
            p = jnp.exp(s)
            p = p * pl.reciprocal(jnp.sum(p, axis=-1, keepdims=True), approx=True)
            # AV on the full D, then lane-mask to this head's slots and accumulate
            attn = attn + jnp.dot(p, v, preferred_element_type=f32) * m
        attn = jnp.dot(attn, wo_ref[l], preferred_element_type=f32) + bo

        h = _layer_norm(h + attn, g1, be1)
        ff = jnp.maximum(jnp.dot(h, w1_ref[l], preferred_element_type=f32) + b1_ref[l], 0.0)
        ff = jnp.dot(ff, w2_ref[l], preferred_element_type=f32) + b2
        h = _layer_norm(h + ff, g2, be2)

    # Final LayerNorm + per-batch token mean (averaging matmul) + positioning MLP + MSE.
    fv = fvec_ref[...]                                       # (3, D) packed head vectors
    hn = _layer_norm(h, fv[_NG:_NG + 1], fv[_NB:_NB + 1])
    xm = jnp.dot(avg_ref[...], hn, preferred_element_type=f32)           # (B, D)
    z = jnp.maximum(jnp.dot(xm, pw1_ref[...], preferred_element_type=f32)
                    + fv[_PB1:_PB1 + 1], 0.0)
    pred = jnp.dot(z, pw2_ref[...], preferred_element_type=f32) + pb2_ref[...]
    pred_ref[...] = pred
    d = pred - y_ref[...]
    mse_ref[...] = jnp.mean(d * d) * jnp.ones((1, 1), f32)


# ----------------------------- pallas_call wrapper -----------------------------
def _full_spec(shape):
    return pl.BlockSpec(shape, lambda *_: (0,) * len(shape))


def pallas_fused_forward(px, bias2d, blockmask, hmask, avg, params, y):
    Bx = y.shape[0]
    kernel = functools.partial(fused_forward_kernel, depth=DEPTH,
                               num_heads=NUM_HEADS, head_dim=HEAD_DIM)
    inputs = (px, bias2d, params["patch_w"], blockmask, hmask, avg,
              params["wq"], params["wk"], params["wv"], params["wo"],
              params["w1"], params["b1"], params["w2"],
              params["lvec"], params["fvec"],
              params["pos_w1"], params["pos_w2"], params["pos_b2"],
              y)
    in_specs = [_full_spec(a.shape) for a in inputs]
    pred, mse = pl.pallas_call(
        kernel,
        out_shape=(jax.ShapeDtypeStruct((Bx, 2), jnp.float32),
                   jax.ShapeDtypeStruct((1, 1), jnp.float32)),
        grid=(1,),
        in_specs=in_specs,
        out_specs=(_full_spec((Bx, 2)), _full_spec((1, 1))),
        compiler_params=pltpu.CompilerParams(dimension_semantics=("arbitrary",)),
    )(*inputs)
    return pred, mse[0, 0]


# ----------------------------- host-side (jitted) prologue -----------------------------
def _build_patch_tokens(x):
    # x: (B, C, F, T). Module does x.transpose(2,3) then Conv2d(kernel=stride=patch).
    Bx = x.shape[0]
    xt = jnp.transpose(x, (0, 1, 3, 2))                               # (B, C, T, F)
    p = xt.reshape(Bx, IN_CHANS, INPUT_TDIM // FSHAPE, FSHAPE,
                   INPUT_FDIM // TSHAPE, TSHAPE)
    p = p.transpose(0, 2, 4, 1, 3, 5).reshape(Bx, NUM_PATCHES, PATCH_DIM)
    # prepend a zero "patch" per batch for the cls slot; the kernel's fused bias
    # row supplies cls_token + pos_embed[0] there.
    p = jnp.concatenate([jnp.zeros((Bx, 1, PATCH_DIM), jnp.float32), p], axis=1)
    return p.reshape(Bx * SEQ, PATCH_DIM)                             # (B*SEQ, PATCH_DIM)


def _build_token_bias(params, Bx):
    pos = params["pos_embed"][0]                                      # (SEQ, D)
    cls_row = params["cls_token"].reshape(1, EMBED_DIM) + pos[0:1]    # (1, D)
    patch_rows = params["patch_b"] + pos[1:]                          # (SEQ-1, D)
    bias = jnp.concatenate([cls_row, patch_rows], axis=0)             # (SEQ, D)
    return jnp.tile(bias, (Bx, 1))                                    # (B*SEQ, D)


def _const_masks(Bx):
    n = Bx * SEQ
    block = np.full((n, n), NEG_INF, np.float32)                      # block-diag additive mask
    for b in range(Bx):
        block[b * SEQ:(b + 1) * SEQ, b * SEQ:(b + 1) * SEQ] = 0.0
    hmask = np.zeros((NUM_HEADS, 1, EMBED_DIM), np.float32)           # per-head lane masks
    for h in range(NUM_HEADS):
        hmask[h, 0, h * HEAD_DIM:(h + 1) * HEAD_DIM] = 1.0
    avg = np.zeros((Bx, n), np.float32)                               # per-batch token-mean matrix
    for b in range(Bx):
        avg[b, b * SEQ:(b + 1) * SEQ] = 1.0 / SEQ
    return jnp.asarray(block), jnp.asarray(hmask), jnp.asarray(avg)


# ----------------------------- parameters -----------------------------
def get_sinusoid_encoding(n_position, d_hid):
    def angle_vec(position):
        return [position / np.power(10000, 2 * (j // 2) / d_hid) for j in range(d_hid)]
    table = np.array([angle_vec(p) for p in range(n_position)])
    table[:, 0::2] = np.sin(table[:, 0::2])
    table[:, 1::2] = np.cos(table[:, 1::2])
    return jnp.asarray(table, dtype=jnp.float32)[None]                # (1, n_position, d_hid)


def init_params(key):
    def nrm(k, shape, scale=0.02):
        return scale * jax.random.normal(k, shape, jnp.float32)

    ks = jax.random.split(key, 9)
    D, FF = EMBED_DIM, DIM_FF
    zeros = lambda *s: jnp.zeros(s, jnp.float32)
    ones = lambda *s: jnp.ones(s, jnp.float32)

    # packed per-layer vectors (rows: bq, bk, bv, bo, g1, be1, b2, g2, be2)
    lvec = jnp.concatenate(
        [zeros(DEPTH, 4, D),      # bq, bk, bv, bo
         ones(DEPTH, 1, D),       # g1 (LayerNorm1 gamma)
         zeros(DEPTH, 2, D),      # be1, b2
         ones(DEPTH, 1, D),       # g2 (LayerNorm2 gamma)
         zeros(DEPTH, 1, D)],     # be2
        axis=1)                                                       # (DEPTH, 9, D)
    # packed head vectors (rows: final-norm gamma, final-norm beta, pos MLP hidden bias)
    fvec = jnp.concatenate([ones(1, D), zeros(2, D)], axis=0)         # (3, D)

    return {
        "patch_w": nrm(ks[0], (PATCH_DIM, D)),
        "patch_b": zeros(1, D),
        "cls_token": zeros(1, 1, D),                                  # torch.zeros in module
        "pos_embed": get_sinusoid_encoding(SEQ, D),
        "pos_w1": nrm(ks[1], (D, D)),
        "pos_w2": nrm(ks[2], (D, 2)),
        "pos_b2": zeros(1, 2),
        # stacked per-layer weights, pre-transposed to (in, out)
        "wq": nrm(ks[3], (DEPTH, D, D)),
        "wk": nrm(ks[4], (DEPTH, D, D)),
        "wv": nrm(ks[5], (DEPTH, D, D)),
        "wo": nrm(ks[6], (DEPTH, D, D)),
        "w1": nrm(ks[7], (DEPTH, D, FF)), "b1": zeros(DEPTH, 1, FF),
        "w2": nrm(ks[8], (DEPTH, FF, D)),
        "lvec": lvec,
        "fvec": fvec,
    }


# ----------------------------- forward -----------------------------
def wireless_loc_fm_forward(x, y_position, params, task="woFT_SingleBSLoc"):
    if task not in ("woFT_SingleBSLoc", "FT_SingleBSLoc", "inference_SingleBSLoc"):
        # TODO(synk): pretrain_* tasks need host-RNG mask index generation + decoder; not implemented.
        raise NotImplementedError(f"task {task} not implemented in Pallas port")

    Bx = x.shape[0]
    px = _build_patch_tokens(x)                    # (B*SEQ, PATCH_DIM)  tiny XLA prologue
    bias2d = _build_token_bias(params, Bx)         # (B*SEQ, D)
    blockmask, hmask, avg = _const_masks(Bx)       # trace-time constants

    pred, mse = pallas_fused_forward(px, bias2d, blockmask, hmask, avg, params, y_position)
    if task == "inference_SingleBSLoc":
        return pred, mse
    return mse


# ----------------------------- main -----------------------------
if __name__ == "__main__":
    key = jax.random.PRNGKey(0)
    kx, ky, kp = jax.random.split(key, 3)
    x = jax.random.normal(kx, (B, IN_CHANS, INPUT_FDIM, INPUT_TDIM), jnp.float32)
    y_position = jax.random.normal(ky, (B, 2), jnp.float32)
    params = init_params(kp)

    fwd = jax.jit(functools.partial(wireless_loc_fm_forward, task="woFT_SingleBSLoc"))
    mse = fwd(x, y_position, params)
    jax.block_until_ready(mse)
    assert mse.shape == () and bool(jnp.isfinite(mse))
    print("KERNEL_OK")
</pallas_src>

<mosaic_0001>
module attributes {stable_mosaic.version = 11 : i64} {
  func.func @fused_forward_kernel(%arg0: i32, %arg1: memref<34x32xf32, #tpu.memory_space<vmem>>, %arg2: memref<34x32xf32, #tpu.memory_space<vmem>>, %arg3: memref<32x32xf32, #tpu.memory_space<vmem>>, %arg4: memref<34x34xf32, #tpu.memory_space<vmem>>, %arg5: memref<4x1x32xf32, #tpu.memory_space<vmem>>, %arg6: memref<2x34xf32, #tpu.memory_space<vmem>>, %arg7: memref<2x32x32xf32, #tpu.memory_space<vmem>>, %arg8: memref<2x32x32xf32, #tpu.memory_space<vmem>>, %arg9: memref<2x32x32xf32, #tpu.memory_space<vmem>>, %arg10: memref<2x32x32xf32, #tpu.memory_space<vmem>>, %arg11: memref<2x32x64xf32, #tpu.memory_space<vmem>>, %arg12: memref<2x1x64xf32, #tpu.memory_space<vmem>>, %arg13: memref<2x64x32xf32, #tpu.memory_space<vmem>>, %arg14: memref<2x9x32xf32, #tpu.memory_space<vmem>>, %arg15: memref<3x32xf32, #tpu.memory_space<vmem>>, %arg16: memref<32x32xf32, #tpu.memory_space<vmem>>, %arg17: memref<32x2xf32, #tpu.memory_space<vmem>>, %arg18: memref<1x2xf32, #tpu.memory_space<vmem>>, %arg19: memref<2x2xf32, #tpu.memory_space<vmem>>, %arg20: memref<2x2xf32, #tpu.memory_space<vmem>>, %arg21: memref<1x1xf32, #tpu.memory_space<vmem>>) attributes {dimension_semantics = [#tpu.dimension_semantics<arbitrary>], iteration_bounds = array<i64: 1>, scalar_prefetch = 0 : i64, scratch_operands = 0 : i64, tpu.core_type = #tpu.core_type<tc>, window_params = [{pipeline_mode = #tpu.pipeline_mode<synchronous>, transform_indices = @transform_0, window_bounds = array<i64: 34, 32>}, {pipeline_mode = #tpu.pipeline_mode<synchronous>, transform_indices = @transform_1, window_bounds = array<i64: 34, 32>}, {pipeline_mode = #tpu.pipeline_mode<synchronous>, transform_indices = @transform_2, window_bounds = array<i64: 32, 32>}, {pipeline_mode = #tpu.pipeline_mode<synchronous>, transform_indices = @transform_3, window_bounds = array<i64: 34, 34>}, {pipeline_mode = #tpu.pipeline_mode<synchronous>, transform_indices = @transform_4, window_bounds = array<i64: 4, 1, 32>}, {pipeline_mode = #tpu.pipeline_mode<synchronous>, transform_indices = @transform_5, window_bounds = array<i64: 2, 34>}, {pipeline_mode = #tpu.pipeline_mode<synchronous>, transform_indices = @transform_6, window_bounds = array<i64: 2, 32, 32>}, {pipeline_mode = #tpu.pipeline_mode<synchronous>, transform_indices = @transform_7, window_bounds = array<i64: 2, 32, 32>}, {pipeline_mode = #tpu.pipeline_mode<synchronous>, transform_indices = @transform_8, window_bounds = array<i64: 2, 32, 32>}, {pipeline_mode = #tpu.pipeline_mode<synchronous>, transform_indices = @transform_9, window_bounds = array<i64: 2, 32, 32>}, {pipeline_mode = #tpu.pipeline_mode<synchronous>, transform_indices = @transform_10, window_bounds = array<i64: 2, 32, 64>}, {pipeline_mode = #tpu.pipeline_mode<synchronous>, transform_indices = @transform_11, window_bounds = array<i64: 2, 1, 64>}, {pipeline_mode = #tpu.pipeline_mode<synchronous>, transform_indices = @transform_12, window_bounds = array<i64: 2, 64, 32>}, {pipeline_mode = #tpu.pipeline_mode<synchronous>, transform_indices = @transform_13, window_bounds = array<i64: 2, 9, 32>}, {pipeline_mode = #tpu.pipeline_mode<synchronous>, transform_indices = @transform_14, window_bounds = array<i64: 3, 32>}, {pipeline_mode = #tpu.pipeline_mode<synchronous>, transform_indices = @transform_15, window_bounds = array<i64: 32, 32>}, {pipeline_mode = #tpu.pipeline_mode<synchronous>, transform_indices = @transform_16, window_bounds = array<i64: 32, 2>}, {pipeline_mode = #tpu.pipeline_mode<synchronous>, transform_indices = @transform_17, window_bounds = array<i64: 1, 2>}, {pipeline_mode = #tpu.pipeline_mode<synchronous>, transform_indices = @transform_18, window_bounds = array<i64: 2, 2>}, {pipeline_mode = #tpu.pipeline_mode<synchronous>, transform_indices = @transform_19, window_bounds = array<i64: 2, 2>}, {pipeline_mode = #tpu.pipeline_mode<synchronous>, transform_indices = @transform_20, window_bounds = array<i64: 1, 1>}]} {
    %c0 = arith.constant 0 : index
    %c0_0 = arith.constant 0 : index
    %0 = vector.load %arg1[%c0, %c0_0] : memref<34x32xf32, #tpu.memory_space<vmem>>, vector<34x32xf32>
    %c0_1 = arith.constant 0 : index
    %c0_2 = arith.constant 0 : index
    %1 = vector.load %arg3[%c0_1, %c0_2] : memref<32x32xf32, #tpu.memory_space<vmem>>, vector<32x32xf32>
    %cst = arith.constant dense<0.000000e+00> : vector<34x32xf32>
    %2 = tpu.matmul %0, %1, %cst {dimension_numbers = #tpu.dot_dimension_numbers<[1], [0], [0], [1], [0, 0, 1, 1], [], []>} : vector<34x32xf32>, vector<32x32xf32>, vector<34x32xf32> -> vector<34x32xf32>
    %c0_3 = arith.constant 0 : index
    %c0_4 = arith.constant 0 : index
    %3 = vector.load %arg2[%c0_3, %c0_4] : memref<34x32xf32, #tpu.memory_space<vmem>>, vector<34x32xf32>
    %4 = arith.addf %2, %3 : vector<34x32xf32>
    %c0_5 = arith.constant 0 : index
    %c0_6 = arith.constant 0 : index
    %5 = vector.load %arg4[%c0_5, %c0_6] : memref<34x34xf32, #tpu.memory_space<vmem>>, vector<34x34xf32>
    %c0_7 = arith.constant 0 : index
    %c0_8 = arith.constant 0 : index
    %c0_9 = arith.constant 0 : index
    %6 = vector.load %arg5[%c0_7, %c0_8, %c0_9] : memref<4x1x32xf32, #tpu.memory_space<vmem>>, vector<1x1x32xf32>
    %7 = vector.shape_cast %6 : vector<1x1x32xf32> to vector<1x32xf32>
    %c1 = arith.constant 1 : index
    %c0_10 = arith.constant 0 : index
    %c0_11 = arith.constant 0 : index
    %8 = vector.load %arg5[%c1, %c0_10, %c0_11] : memref<4x1x32xf32, #tpu.memory_space<vmem>>, vector<1x1x32xf32>
    %9 = vector.shape_cast %8 : vector<1x1x32xf32> to vector<1x32xf32>
    %c2 = arith.constant 2 : index
    %c0_12 = arith.constant 0 : index
    %c0_13 = arith.constant 0 : index
    %10 = vector.load %arg5[%c2, %c0_12, %c0_13] : memref<4x1x32xf32, #tpu.memory_space<vmem>>, vector<1x1x32xf32>
    %11 = vector.shape_cast %10 : vector<1x1x32xf32> to vector<1x32xf32>
    %c3 = arith.constant 3 : index
    %c0_14 = arith.constant 0 : index
    %c0_15 = arith.constant 0 : index
    %12 = vector.load %arg5[%c3, %c0_14, %c0_15] : memref<4x1x32xf32, #tpu.memory_space<vmem>>, vector<1x1x32xf32>
    %13 = vector.shape_cast %12 : vector<1x1x32xf32> to vector<1x32xf32>
    %c0_16 = arith.constant 0 : index
    %c0_17 = arith.constant 0 : index
    %c0_18 = arith.constant 0 : index
    %14 = vector.load %arg14[%c0_16, %c0_17, %c0_18] : memref<2x9x32xf32, #tpu.memory_space<vmem>>, vector<1x9x32xf32>
    %15 = vector.shape_cast %14 : vector<1x9x32xf32> to vector<9x32xf32>
    %16 = vector.extract_strided_slice %15 {offsets = [0, 0], sizes = [1, 32], strides = [1, 1]} : vector<9x32xf32> to vector<1x32xf32>
    %17 = vector.extract_strided_slice %15 {offsets = [1, 0], sizes = [1, 32], strides = [1, 1]} : vector<9x32xf32> to vector<1x32xf32>
    %18 = vector.extract_strided_slice %15 {offsets = [2, 0], sizes = [1, 32], strides = [1, 1]} : vector<9x32xf32> to vector<1x32xf32>
    %19 = vector.extract_strided_slice %15 {offsets = [3, 0], sizes = [1, 32], strides = [1, 1]} : vector<9x32xf32> to vector<1x32xf32>
    %20 = vector.extract_strided_slice %15 {offsets = [4, 0], sizes = [1, 32], strides = [1, 1]} : vector<9x32xf32> to vector<1x32xf32>
    %21 = vector.extract_strided_slice %15 {offsets = [5, 0], sizes = [1, 32], strides = [1, 1]} : vector<9x32xf32> to vector<1x32xf32>
    %22 = vector.extract_strided_slice %15 {offsets = [6, 0], sizes = [1, 32], strides = [1, 1]} : vector<9x32xf32> to vector<1x32xf32>
    %23 = vector.extract_strided_slice %15 {offsets = [7, 0], sizes = [1, 32], strides = [1, 1]} : vector<9x32xf32> to vector<1x32xf32>
    %24 = vector.extract_strided_slice %15 {offsets = [8, 0], sizes = [1, 32], strides = [1, 1]} : vector<9x32xf32> to vector<1x32xf32>
    %c0_19 = arith.constant 0 : index
    %c0_20 = arith.constant 0 : index
    %c0_21 = arith.constant 0 : index
    %25 = vector.load %arg7[%c0_19, %c0_20, %c0_21] : memref<2x32x32xf32, #tpu.memory_space<vmem>>, vector<1x32x32xf32>
    %26 = vector.shape_cast %25 : vector<1x32x32xf32> to vector<32x32xf32>
    %cst_22 = arith.constant dense<0.000000e+00> : vector<34x32xf32>
    %27 = tpu.matmul %4, %26, %cst_22 {dimension_numbers = #tpu.dot_dimension_numbers<[1], [0], [0], [1], [0, 0, 1, 1], [], []>} : vector<34x32xf32>, vector<32x32xf32>, vector<34x32xf32> -> vector<34x32xf32>
    %28 = vector.broadcast %16 : vector<1x32xf32> to vector<34x32xf32>
    %29 = arith.addf %27, %28 : vector<34x32xf32>
    %cst_23 = arith.constant 0.353553385 : f32
    %30 = vector.broadcast %cst_23 : f32 to vector<34x32xf32>
    %31 = arith.mulf %29, %30 : vector<34x32xf32>
    %c0_24 = arith.constant 0 : index
    %c0_25 = arith.constant 0 : index
    %c0_26 = arith.constant 0 : index
    %32 = vector.load %arg8[%c0_24, %c0_25, %c0_26] : memref<2x32x32xf32, #tpu.memory_space<vmem>>, vector<1x32x32xf32>
    %33 = vector.shape_cast %32 : vector<1x32x32xf32> to vector<32x32xf32>
    %cst_27 = arith.constant dense<0.000000e+00> : vector<34x32xf32>
    %34 = tpu.matmul %4, %33, %cst_27 {dimension_numbers = #tpu.dot_dimension_numbers<[1], [0], [0], [1], [0, 0, 1, 1], [], []>} : vector<34x32xf32>, vector<32x32xf32>, vector<34x32xf32> -> vector<34x32xf32>
    %35 = vector.broadcast %17 : vector<1x32xf32> to vector<34x32xf32>
    %36 = arith.addf %34, %35 : vector<34x32xf32>
    %c0_28 = arith.constant 0 : index
    %c0_29 = arith.constant 0 : index
    %c0_30 = arith.constant 0 : index
    %37 = vector.load %arg9[%c0_28, %c0_29, %c0_30] : memref<2x32x32xf32, #tpu.memory_space<vmem>>, vector<1x32x32xf32>
    %38 = vector.shape_cast %37 : vector<1x32x32xf32> to vector<32x32xf32>
    %cst_31 = arith.constant dense<0.000000e+00> : vector<34x32xf32>
    %39 = tpu.matmul %4, %38, %cst_31 {dimension_numbers = #tpu.dot_dimension_numbers<[1], [0], [0], [1], [0, 0, 1, 1], [], []>} : vector<34x32xf32>, vector<32x32xf32>, vector<34x32xf32> -> vector<34x32xf32>
    %40 = vector.broadcast %18 : vector<1x32xf32> to vector<34x32xf32>
    %41 = arith.addf %39, %40 : vector<34x32xf32>
    %cst_32 = arith.constant 0.000000e+00 : f32
    %42 = vector.broadcast %cst_32 : f32 to vector<34x32xf32>
    %43 = vector.broadcast %7 : vector<1x32xf32> to vector<34x32xf32>
    %44 = arith.mulf %31, %43 : vector<34x32xf32>
    %cst_33 = arith.constant dense<0.000000e+00> : vector<34x34xf32>
    %45 = tpu.matmul %44, %36, %cst_33 {dimension_numbers = #tpu.dot_dimension_numbers<[1], [1], [0], [0], [0, 0, 1, 0], [], []>} : vector<34x32xf32>, vector<34x32xf32>, vector<34x34xf32> -> vector<34x34xf32>
    %46 = arith.addf %45, %5 : vector<34x34xf32>
    %cst_34 = arith.constant dense<0xFF800000> : vector<34xf32>
    %47 = vector.multi_reduction <maximumf>, %46, %cst_34 [1] : vector<34x34xf32> to vector<34xf32>
    %48 = vector.shape_cast %47 : vector<34xf32> to vector<34x1xf32>
    %49 = vector.broadcast %48 : vector<34x1xf32> to vector<34x34xf32>
    %50 = arith.subf %46, %49 : vector<34x34xf32>
    %51 = math.exp %50 : vector<34x34xf32>
    %cst_35 = arith.constant dense<0.000000e+00> : vector<34xf32>
    %52 = vector.multi_reduction <add>, %51, %cst_35 [1] : vector<34x34xf32> to vector<34xf32>
    %53 = vector.shape_cast %52 : vector<34xf32> to vector<34x1xf32>
    %54 = tpu.reciprocal %53 {approx = true} : vector<34x1xf32> -> vector<34x1xf32>
    %55 = vector.broadcast %54 : vector<34x1xf32> to vector<34x34xf32>
    %56 = arith.mulf %51, %55 : vector<34x34xf32>
    %cst_36 = arith.constant dense<0.000000e+00> : vector<34x32xf32>
    %57 = tpu.matmul %56, %41, %cst_36 {dimension_numbers = #tpu.dot_dimension_numbers<[1], [0], [0], [1], [0, 0, 1, 1], [], []>} : vector<34x34xf32>, vector<34x32xf32>, vector<34x32xf32> -> vector<34x32xf32>
    %58 = vector.broadcast %7 : vector<1x32xf32> to vector<34x32xf32>
    %59 = arith.mulf %57, %58 : vector<34x32xf32>
    %60 = arith.addf %42, %59 : vector<34x32xf32>
    %61 = vector.broadcast %9 : vector<1x32xf32> to vector<34x32xf32>
    %62 = arith.mulf %31, %61 : vector<34x32xf32>
    %cst_37 = arith.constant dense<0.000000e+00> : vector<34x34xf32>
    %63 = tpu.matmul %62, %36, %cst_37 {dimension_numbers = #tpu.dot_dimension_numbers<[1], [1], [0], [0], [0, 0, 1, 0], [], []>} : vector<34x32xf32>, vector<34x32xf32>, vector<34x34xf32> -> vector<34x34xf32>
    %64 = arith.addf %63, %5 : vector<34x34xf32>
    %cst_38 = arith.constant dense<0xFF800000> : vector<34xf32>
    %65 = vector.multi_reduction <maximumf>, %64, %cst_38 [1] : vector<34x34xf32> to vector<34xf32>
    %66 = vector.shape_cast %65 : vector<34xf32> to vector<34x1xf32>
    %67 = vector.broadcast %66 : vector<34x1xf32> to vector<34x34xf32>
    %68 = arith.subf %64, %67 : vector<34x34xf32>
    %69 = math.exp %68 : vector<34x34xf32>
    %cst_39 = arith.constant dense<0.000000e+00> : vector<34xf32>
    %70 = vector.multi_reduction <add>, %69, %cst_39 [1] : vector<34x34xf32> to vector<34xf32>
    %71 = vector.shape_cast %70 : vector<34xf32> to vector<34x1xf32>
    %72 = tpu.reciprocal %71 {approx = true} : vector<34x1xf32> -> vector<34x1xf32>
    %73 = vector.broadcast %72 : vector<34x1xf32> to vector<34x34xf32>
    %74 = arith.mulf %69, %73 : vector<34x34xf32>
    %cst_40 = arith.constant dense<0.000000e+00> : vector<34x32xf32>
    %75 = tpu.matmul %74, %41, %cst_40 {dimension_numbers = #tpu.dot_dimension_numbers<[1], [0], [0], [1], [0, 0, 1, 1], [], []>} : vector<34x34xf32>, vector<34x32xf32>, vector<34x32xf32> -> vector<34x32xf32>
    %76 = vector.broadcast %9 : vector<1x32xf32> to vector<34x32xf32>
    %77 = arith.mulf %75, %76 : vector<34x32xf32>
    %78 = arith.addf %60, %77 : vector<34x32xf32>
    %79 = vector.broadcast %11 : vector<1x32xf32> to vector<34x32xf32>
    %80 = arith.mulf %31, %79 : vector<34x32xf32>
    %cst_41 = arith.constant dense<0.000000e+00> : vector<34x34xf32>
    %81 = tpu.matmul %80, %36, %cst_41 {dimension_numbers = #tpu.dot_dimension_numbers<[1], [1], [0], [0], [0, 0, 1, 0], [], []>} : vector<34x32xf32>, vector<34x32xf32>, vector<34x34xf32> -> vector<34x34xf32>
    %82 = arith.addf %81, %5 : vector<34x34xf32>
    %cst_42 = arith.constant dense<0xFF800000> : vector<34xf32>
    %83 = vector.multi_reduction <maximumf>, %82, %cst_42 [1] : vector<34x34xf32> to vector<34xf32>
    %84 = vector.shape_cast %83 : vector<34xf32> to vector<34x1xf32>
    %85 = vector.broadcast %84 : vector<34x1xf32> to vector<34x34xf32>
    %86 = arith.subf %82, %85 : vector<34x34xf32>
    %87 = math.exp %86 : vector<34x34xf32>
    %cst_43 = arith.constant dense<0.000000e+00> : vector<34xf32>
    %88 = vector.multi_reduction <add>, %87, %cst_43 [1] : vector<34x34xf32> to vector<34xf32>
    %89 = vector.shape_cast %88 : vector<34xf32> to vector<34x1xf32>
    %90 = tpu.reciprocal %89 {approx = true} : vector<34x1xf32> -> vector<34x1xf32>
    %91 = vector.broadcast %90 : vector<34x1xf32> to vector<34x34xf32>
    %92 = arith.mulf %87, %91 : vector<34x34xf32>
    %cst_44 = arith.constant dense<0.000000e+00> : vector<34x32xf32>
    %93 = tpu.matmul %92, %41, %cst_44 {dimension_numbers = #tpu.dot_dimension_numbers<[1], [0], [0], [1], [0, 0, 1, 1], [], []>} : vector<34x34xf32>, vector<34x32xf32>, vector<34x32xf32> -> vector<34x32xf32>
    %94 = vector.broadcast %11 : vector<1x32xf32> to vector<34x32xf32>
    %95 = arith.mulf %93, %94 : vector<34x32xf32>
    %96 = arith.addf %78, %95 : vector<34x32xf32>
    %97 = vector.broadcast %13 : vector<1x32xf32> to vector<34x32xf32>
    %98 = arith.mulf %31, %97 : vector<34x32xf32>
    %cst_45 = arith.constant dense<0.000000e+00> : vector<34x34xf32>
    %99 = tpu.matmul %98, %36, %cst_45 {dimension_numbers = #tpu.dot_dimension_numbers<[1], [1], [0], [0], [0, 0, 1, 0], [], []>} : vector<34x32xf32>, vector<34x32xf32>, vector<34x34xf32> -> vector<34x34xf32>
    %100 = arith.addf %99, %5 : vector<34x34xf32>
    %cst_46 = arith.constant dense<0xFF800000> : vector<34xf32>
    %101 = vector.multi_reduction <maximumf>, %100, %cst_46 [1] : vector<34x34xf32> to vector<34xf32>
    %102 = vector.shape_cast %101 : vector<34xf32> to vector<34x1xf32>
    %103 = vector.broadcast %102 : vector<34x1xf32> to vector<34x34xf32>
    %104 = arith.subf %100, %103 : vector<34x34xf32>
    %105 = math.exp %104 : vector<34x34xf32>
    %cst_47 = arith.constant dense<0.000000e+00> : vector<34xf32>
    %106 = vector.multi_reduction <add>, %105, %cst_47 [1] : vector<34x34xf32> to vector<34xf32>
    %107 = vector.shape_cast %106 : vector<34xf32> to vector<34x1xf32>
    %108 = tpu.reciprocal %107 {approx = true} : vector<34x1xf32> -> vector<34x1xf32>
    %109 = vector.broadcast %108 : vector<34x1xf32> to vector<34x34xf32>
    %110 = arith.mulf %105, %109 : vector<34x34xf32>
    %cst_48 = arith.constant dense<0.000000e+00> : vector<34x32xf32>
    %111 = tpu.matmul %110, %41, %cst_48 {dimension_numbers = #tpu.dot_dimension_numbers<[1], [0], [0], [1], [0, 0, 1, 1], [], []>} : vector<34x34xf32>, vector<34x32xf32>, vector<34x32xf32> -> vector<34x32xf32>
    %112 = vector.broadcast %13 : vector<1x32xf32> to vector<34x32xf32>
    %113 = arith.mulf %111, %112 : vector<34x32xf32>
    %114 = arith.addf %96, %113 : vector<34x32xf32>
    %c0_49 = arith.constant 0 : index
    %c0_50 = arith.constant 0 : index
    %c0_51 = arith.constant 0 : index
    %115 = vector.load %arg10[%c0_49, %c0_50, %c0_51] : memref<2x32x32xf32, #tpu.memory_space<vmem>>, vector<1x32x32xf32>
    %116 = vector.shape_cast %115 : vector<1x32x32xf32> to vector<32x32xf32>
    %cst_52 = arith.constant dense<0.000000e+00> : vector<34x32xf32>
    %117 = tpu.matmul %114, %116, %cst_52 {dimension_numbers = #tpu.dot_dimension_numbers<[1], [0], [0], [1], [0, 0, 1, 1], [], []>} : vector<34x32xf32>, vector<32x32xf32>, vector<34x32xf32> -> vector<34x32xf32>
    %118 = vector.broadcast %19 : vector<1x32xf32> to vector<34x32xf32>
    %119 = arith.addf %117, %118 : vector<34x32xf32>
    %120 = arith.addf %4, %119 : vector<34x32xf32>
    %cst_53 = arith.constant dense<0.000000e+00> : vector<34xf32>
    %121 = vector.multi_reduction <add>, %120, %cst_53 [1] : vector<34x32xf32> to vector<34xf32>
    %122 = vector.shape_cast %121 : vector<34xf32> to vector<34x1xf32>
    %cst_54 = arith.constant 3.200000e+01 : f32
    %123 = vector.broadcast %cst_54 : f32 to vector<34x1xf32>
    %124 = arith.divf %122, %123 : vector<34x1xf32>
    %125 = vector.broadcast %124 : vector<34x1xf32> to vector<34x32xf32>
    %126 = arith.subf %120, %125 : vector<34x32xf32>
    %127 = arith.mulf %126, %126 : vector<34x32xf32>
    %cst_55 = arith.constant dense<0.000000e+00> : vector<34xf32>
    %128 = vector.multi_reduction <add>, %127, %cst_55 [1] : vector<34x32xf32> to vector<34xf32>
    %129 = vector.shape_cast %128 : vector<34xf32> to vector<34x1xf32>
    %cst_56 = arith.constant 3.200000e+01 : f32
    %130 = vector.broadcast %cst_56 : f32 to vector<34x1xf32>
    %131 = arith.divf %129, %130 : vector<34x1xf32>
    %132 = vector.broadcast %124 : vector<34x1xf32> to vector<34x32xf32>
    %133 = arith.subf %120, %132 : vector<34x32xf32>
    %cst_57 = arith.constant 9.99999974E-6 : f32
    %134 = vector.broadcast %cst_57 : f32 to vector<34x1xf32>
    %135 = arith.addf %131, %134 : vector<34x1xf32>
    %136 = math.rsqrt %135 : vector<34x1xf32>
    %137 = vector.broadcast %136 : vector<34x1xf32> to vector<34x32xf32>
    %138 = arith.mulf %133, %137 : vector<34x32xf32>
    %139 = vector.broadcast %20 : vector<1x32xf32> to vector<34x32xf32>
    %140 = arith.mulf %138, %139 : vector<34x32xf32>
    %141 = vector.broadcast %21 : vector<1x32xf32> to vector<34x32xf32>
    %142 = arith.addf %140, %141 : vector<34x32xf32>
    %c0_58 = arith.constant 0 : index
    %c0_59 = arith.constant 0 : index
    %c0_60 = arith.constant 0 : index
    %143 = vector.load %arg11[%c0_58, %c0_59, %c0_60] : memref<2x32x64xf32, #tpu.memory_space<vmem>>, vector<1x32x64xf32>
    %144 = vector.shape_cast %143 : vector<1x32x64xf32> to vector<32x64xf32>
    %cst_61 = arith.constant dense<0.000000e+00> : vector<34x64xf32>
    %145 = tpu.matmul %142, %144, %cst_61 {dimension_numbers = #tpu.dot_dimension_numbers<[1], [0], [0], [1], [0, 0, 1, 1], [], []>} : vector<34x32xf32>, vector<32x64xf32>, vector<34x64xf32> -> vector<34x64xf32>
    %c0_62 = arith.constant 0 : index
    %c0_63 = arith.constant 0 : index
    %c0_64 = arith.constant 0 : index
    %146 = vector.load %arg12[%c0_62, %c0_63, %c0_64] : memref<2x1x64xf32, #tpu.memory_space<vmem>>, vector<1x1x64xf32>
    %147 = vector.shape_cast %146 : vector<1x1x64xf32> to vector<1x64xf32>
    %148 = vector.broadcast %147 : vector<1x64xf32> to vector<34x64xf32>
    %149 = arith.addf %145, %148 : vector<34x64xf32>
    %cst_65 = arith.constant 0.000000e+00 : f32
    %150 = vector.broadcast %cst_65 : f32 to vector<34x64xf32>
    %151 = arith.maximumf %149, %150 : vector<34x64xf32>
    %c0_66 = arith.constant 0 : index
    %c0_67 = arith.constant 0 : index
    %c0_68 = arith.constant 0 : index
    %152 = vector.load %arg13[%c0_66, %c0_67, %c0_68] : memref<2x64x32xf32, #tpu.memory_space<vmem>>, vector<1x64x32xf32>
    %153 = vector.shape_cast %152 : vector<1x64x32xf32> to vector<64x32xf32>
    %cst_69 = arith.constant dense<0.000000e+00> : vector<34x32xf32>
    %154 = tpu.matmul %151, %153, %cst_69 {dimension_numbers = #tpu.dot_dimension_numbers<[1], [0], [0], [1], [0, 0, 1, 1], [], []>} : vector<34x64xf32>, vector<64x32xf32>, vector<34x32xf32> -> vector<34x32xf32>
    %155 = vector.broadcast %22 : vector<1x32xf32> to vector<34x32xf32>
    %156 = arith.addf %154, %155 : vector<34x32xf32>
    %157 = arith.addf %142, %156 : vector<34x32xf32>
    %cst_70 = arith.constant dense<0.000000e+00> : vector<34xf32>
    %158 = vector.multi_reduction <add>, %157, %cst_70 [1] : vector<34x32xf32> to vector<34xf32>
    %159 = vector.shape_cast %158 : vector<34xf32> to vector<34x1xf32>
    %cst_71 = arith.constant 3.200000e+01 : f32
    %160 = vector.broadcast %cst_71 : f32 to vector<34x1xf32>
    %161 = arith.divf %159, %160 : vector<34x1xf32>
    %162 = vector.broadcast %161 : vector<34x1xf32> to vector<34x32xf32>
    %163 = arith.subf %157, %162 : vector<34x32xf32>
    %164 = arith.mulf %163, %163 : vector<34x32xf32>
    %cst_72 = arith.constant dense<0.000000e+00> : vector<34xf32>
    %165 = vector.multi_reduction <add>, %164, %cst_72 [1] : vector<34x32xf32> to vector<34xf32>
    %166 = vector.shape_cast %165 : vector<34xf32> to vector<34x1xf32>
    %cst_73 = arith.constant 3.200000e+01 : f32
    %167 = vector.broadcast %cst_73 : f32 to vector<34x1xf32>
    %168 = arith.divf %166, %167 : vector<34x1xf32>
    %169 = vector.broadcast %161 : vector<34x1xf32> to vector<34x32xf32>
    %170 = arith.subf %157, %169 : vector<34x32xf32>
    %cst_74 = arith.constant 9.99999974E-6 : f32
    %171 = vector.broadcast %cst_74 : f32 to vector<34x1xf32>
    %172 = arith.addf %168, %171 : vector<34x1xf32>
    %173 = math.rsqrt %172 : vector<34x1xf32>
    %174 = vector.broadcast %173 : vector<34x1xf32> to vector<34x32xf32>
    %175 = arith.mulf %170, %174 : vector<34x32xf32>
    %176 = vector.broadcast %23 : vector<1x32xf32> to vector<34x32xf32>
    %177 = arith.mulf %175, %176 : vector<34x32xf32>
    %178 = vector.broadcast %24 : vector<1x32xf32> to vector<34x32xf32>
    %179 = arith.addf %177, %178 : vector<34x32xf32>
    %c1_75 = arith.constant 1 : index
    %c0_76 = arith.constant 0 : index
    %c0_77 = arith.constant 0 : index
    %180 = vector.load %arg14[%c1_75, %c0_76, %c0_77] : memref<2x9x32xf32, #tpu.memory_space<vmem>>, vector<1x9x32xf32>
    %181 = vector.shape_cast %180 : vector<1x9x32xf32> to vector<9x32xf32>
    %182 = vector.extract_strided_slice %181 {offsets = [0, 0], sizes = [1, 32], strides = [1, 1]} : vector<9x32xf32> to vector<1x32xf32>
    %183 = vector.extract_strided_slice %181 {offsets = [1, 0], sizes = [1, 32], strides = [1, 1]} : vector<9x32xf32> to vector<1x32xf32>
    %184 = vector.extract_strided_slice %181 {offsets = [2, 0], sizes = [1, 32], strides = [1, 1]} : vector<9x32xf32> to vector<1x32xf32>
    %185 = vector.extract_strided_slice %181 {offsets = [3, 0], sizes = [1, 32], strides = [1, 1]} : vector<9x32xf32> to vector<1x32xf32>
    %186 = vector.extract_strided_slice %181 {offsets = [4, 0], sizes = [1, 32], strides = [1, 1]} : vector<9x32xf32> to vector<1x32xf32>
    %187 = vector.extract_strided_slice %181 {offsets = [5, 0], sizes = [1, 32], strides = [1, 1]} : vector<9x32xf32> to vector<1x32xf32>
    %188 = vector.extract_strided_slice %181 {offsets = [6, 0], sizes = [1, 32], strides = [1, 1]} : vector<9x32xf32> to vector<1x32xf32>
    %189 = vector.extract_strided_slice %181 {offsets = [7, 0], sizes = [1, 32], strides = [1, 1]} : vector<9x32xf32> to vector<1x32xf32>
    %190 = vector.extract_strided_slice %181 {offsets = [8, 0], sizes = [1, 32], strides = [1, 1]} : vector<9x32xf32> to vector<1x32xf32>
    %c1_78 = arith.constant 1 : index
    %c0_79 = arith.constant 0 : index
    %c0_80 = arith.constant 0 : index
    %191 = vector.load %arg7[%c1_78, %c0_79, %c0_80] : memref<2x32x32xf32, #tpu.memory_space<vmem>>, vector<1x32x32xf32>
    %192 = vector.shape_cast %191 : vector<1x32x32xf32> to vector<32x32xf32>
    %cst_81 = arith.constant dense<0.000000e+00> : vector<34x32xf32>
    %193 = tpu.matmul %179, %192, %cst_81 {dimension_numbers = #tpu.dot_dimension_numbers<[1], [0], [0], [1], [0, 0, 1, 1], [], []>} : vector<34x32xf32>, vector<32x32xf32>, vector<34x32xf32> -> vector<34x32xf32>
    %194 = vector.broadcast %182 : vector<1x32xf32> to vector<34x32xf32>
    %195 = arith.addf %193, %194 : vector<34x32xf32>
    %cst_82 = arith.constant 0.353553385 : f32
    %196 = vector.broadcast %cst_82 : f32 to vector<34x32xf32>
    %197 = arith.mulf %195, %196 : vector<34x32xf32>
    %c1_83 = arith.constant 1 : index
    %c0_84 = arith.constant 0 : index
    %c0_85 = arith.constant 0 : index
    %198 = vector.load %arg8[%c1_83, %c0_84, %c0_85] : memref<2x32x32xf32, #tpu.memory_space<vmem>>, vector<1x32x32xf32>
    %199 = vector.shape_cast %198 : vector<1x32x32xf32> to vector<32x32xf32>
    %cst_86 = arith.constant dense<0.000000e+00> : vector<34x32xf32>
    %200 = tpu.matmul %179, %199, %cst_86 {dimension_numbers = #tpu.dot_dimension_numbers<[1], [0], [0], [1], [0, 0, 1, 1], [], []>} : vector<34x32xf32>, vector<32x32xf32>, vector<34x32xf32> -> vector<34x32xf32>
    %201 = vector.broadcast %183 : vector<1x32xf32> to vector<34x32xf32>
    %202 = arith.addf %200, %201 : vector<34x32xf32>
    %c1_87 = arith.constant 1 : index
    %c0_88 = arith.constant 0 : index
    %c0_89 = arith.constant 0 : index
    %203 = vector.load %arg9[%c1_87, %c0_88, %c0_89] : memref<2x32x32xf32, #tpu.memory_space<vmem>>, vector<1x32x32xf32>
    %204 = vector.shape_cast %203 : vector<1x32x32xf32> to vector<32x32xf32>
    %cst_90 = arith.constant dense<0.000000e+00> : vector<34x32xf32>
    %205 = tpu.matmul %179, %204, %cst_90 {dimension_numbers = #tpu.dot_dimension_numbers<[1], [0], [0], [1], [0, 0, 1, 1], [], []>} : vector<34x32xf32>, vector<32x32xf32>, vector<34x32xf32> -> vector<34x32xf32>
    %206 = vector.broadcast %184 : vector<1x32xf32> to vector<34x32xf32>
    %207 = arith.addf %205, %206 : vector<34x32xf32>
    %cst_91 = arith.constant 0.000000e+00 : f32
    %208 = vector.broadcast %cst_91 : f32 to vector<34x32xf32>
    %209 = vector.broadcast %7 : vector<1x32xf32> to vector<34x32xf32>
    %210 = arith.mulf %197, %209 : vector<34x32xf32>
    %cst_92 = arith.constant dense<0.000000e+00> : vector<34x34xf32>
    %211 = tpu.matmul %210, %202, %cst_92 {dimension_numbers = #tpu.dot_dimension_numbers<[1], [1], [0], [0], [0, 0, 1, 0], [], []>} : vector<34x32xf32>, vector<34x32xf32>, vector<34x34xf32> -> vector<34x34xf32>
    %212 = arith.addf %211, %5 : vector<34x34xf32>
    %cst_93 = arith.constant dense<0xFF800000> : vector<34xf32>
    %213 = vector.multi_reduction <maximumf>, %212, %cst_93 [1] : vector<34x34xf32> to vector<34xf32>
    %214 = vector.shape_cast %213 : vector<34xf32> to vector<34x1xf32>
    %215 = vector.broadcast %214 : vector<34x1xf32> to vector<34x34xf32>
    %216 = arith.subf %212, %215 : vector<34x34xf32>
    %217 = math.exp %216 : vector<34x34xf32>
    %cst_94 = arith.constant dense<0.000000e+00> : vector<34xf32>
    %218 = vector.multi_reduction <add>, %217, %cst_94 [1] : vector<34x34xf32> to vector<34xf32>
    %219 = vector.shape_cast %218 : vector<34xf32> to vector<34x1xf32>
    %220 = tpu.reciprocal %219 {approx = true} : vector<34x1xf32> -> vector<34x1xf32>
    %221 = vector.broadcast %220 : vector<34x1xf32> to vector<34x34xf32>
    %222 = arith.mulf %217, %221 : vector<34x34xf32>
    %cst_95 = arith.constant dense<0.000000e+00> : vector<34x32xf32>
    %223 = tpu.matmul %222, %207, %cst_95 {dimension_numbers = #tpu.dot_dimension_numbers<[1], [0], [0], [1], [0, 0, 1, 1], [], []>} : vector<34x34xf32>, vector<34x32xf32>, vector<34x32xf32> -> vector<34x32xf32>
    %224 = vector.broadcast %7 : vector<1x32xf32> to vector<34x32xf32>
    %225 = arith.mulf %223, %224 : vector<34x32xf32>
    %226 = arith.addf %208, %225 : vector<34x32xf32>
    %227 = vector.broadcast %9 : vector<1x32xf32> to vector<34x32xf32>
    %228 = arith.mulf %197, %227 : vector<34x32xf32>
    %cst_96 = arith.constant dense<0.000000e+00> : vector<34x34xf32>
    %229 = tpu.matmul %228, %202, %cst_96 {dimension_numbers = #tpu.dot_dimension_numbers<[1], [1], [0], [0], [0, 0, 1, 0], [], []>} : vector<34x32xf32>, vector<34x32xf32>, vector<34x34xf32> -> vector<34x34xf32>
    %230 = arith.addf %229, %5 : vector<34x34xf32>
    %cst_97 = arith.constant dense<0xFF800000> : vector<34xf32>
    %231 = vector.multi_reduction <maximumf>, %230, %cst_97 [1] : vector<34x34xf32> to vector<34xf32>
    %232 = vector.shape_cast %231 : vector<34xf32> to vector<34x1xf32>
    %233 = vector.broadcast %232 : vector<34x1xf32> to vector<34x34xf32>
    %234 = arith.subf %230, %233 : vector<34x34xf32>
    %235 = math.exp %234 : vector<34x34xf32>
    %cst_98 = arith.constant dense<0.000000e+00> : vector<34xf32>
    %236 = vector.multi_reduction <add>, %235, %cst_98 [1] : vector<34x34xf32> to vector<34xf32>
    %237 = vector.shape_cast %236 : vector<34xf32> to vector<34x1xf32>
    %238 = tpu.reciprocal %237 {approx = true} : vector<34x1xf32> -> vector<34x1xf32>
    %239 = vector.broadcast %238 : vector<34x1xf32> to vector<34x34xf32>
    %240 = arith.mulf %235, %239 : vector<34x34xf32>
    %cst_99 = arith.constant dense<0.000000e+00> : vector<34x32xf32>
    %241 = tpu.matmul %240, %207, %cst_99 {dimension_numbers = #tpu.dot_dimension_numbers<[1], [0], [0], [1], [0, 0, 1, 1], [], []>} : vector<34x34xf32>, vector<34x32xf32>, vector<34x32xf32> -> vector<34x32xf32>
    %242 = vector.broadcast %9 : vector<1x32xf32> to vector<34x32xf32>
    %243 = arith.mulf %241, %242 : vector<34x32xf32>
    %244 = arith.addf %226, %243 : vector<34x32xf32>
    %245 = vector.broadcast %11 : vector<1x32xf32> to vector<34x32xf32>
    %246 = arith.mulf %197, %245 : vector<34x32xf32>
    %cst_100 = arith.constant dense<0.000000e+00> : vector<34x34xf32>
    %247 = tpu.matmul %246, %202, %cst_100 {dimension_numbers = #tpu.dot_dimension_numbers<[1], [1], [0], [0], [0, 0, 1, 0], [], []>} : vector<34x32xf32>, vector<34x32xf32>, vector<34x34xf32> -> vector<34x34xf32>
    %248 = arith.addf %247, %5 : vector<34x34xf32>
    %cst_101 = arith.constant dense<0xFF800000> : vector<34xf32>
    %249 = vector.multi_reduction <maximumf>, %248, %cst_101 [1] : vector<34x34xf32> to vector<34xf32>
    %250 = vector.shape_cast %249 : vector<34xf32> to vector<34x1xf32>
    %251 = vector.broadcast %250 : vector<34x1xf32> to vector<34x34xf32>
    %252 = arith.subf %248, %251 : vector<34x34xf32>
    %253 = math.exp %252 : vector<34x34xf32>
    %cst_102 = arith.constant dense<0.000000e+00> : vector<34xf32>
    %254 = vector.multi_reduction <add>, %253, %cst_102 [1] : vector<34x34xf32> to vector<34xf32>
    %255 = vector.shape_cast %254 : vector<34xf32> to vector<34x1xf32>
    %256 = tpu.reciprocal %255 {approx = true} : vector<34x1xf32> -> vector<34x1xf32>
    %257 = vector.broadcast %256 : vector<34x1xf32> to vector<34x34xf32>
    %258 = arith.mulf %253, %257 : vector<34x34xf32>
    %cst_103 = arith.constant dense<0.000000e+00> : vector<34x32xf32>
    %259 = tpu.matmul %258, %207, %cst_103 {dimension_numbers = #tpu.dot_dimension_numbers<[1], [0], [0], [1], [0, 0, 1, 1], [], []>} : vector<34x34xf32>, vector<34x32xf32>, vector<34x32xf32> -> vector<34x32xf32>
    %260 = vector.broadcast %11 : vector<1x32xf32> to vector<34x32xf32>
    %261 = arith.mulf %259, %260 : vector<34x32xf32>
    %262 = arith.addf %244, %261 : vector<34x32xf32>
    %263 = vector.broadcast %13 : vector<1x32xf32> to vector<34x32xf32>
    %264 = arith.mulf %197, %263 : vector<34x32xf32>
    %cst_104 = arith.constant dense<0.000000e+00> : vector<34x34xf32>
    %265 = tpu.matmul %264, %202, %cst_104 {dimension_numbers = #tpu.dot_dimension_numbers<[1], [1], [0], [0], [0, 0, 1, 0], [], []>} : vector<34x32xf32>, vector<34x32xf32>, vector<34x34xf32> -> vector<34x34xf32>
    %266 = arith.addf %265, %5 : vector<34x34xf32>
    %cst_105 = arith.constant dense<0xFF800000> : vector<34xf32>
    %267 = vector.multi_reduction <maximumf>, %266, %cst_105 [1] : vector<34x34xf32> to vector<34xf32>
    %268 = vector.shape_cast %267 : vector<34xf32> to vector<34x1xf32>
    %269 = vector.broadcast %268 : vector<34x1xf32> to vector<34x34xf32>
    %270 = arith.subf %266, %269 : vector<34x34xf32>
    %271 = math.exp %270 : vector<34x34xf32>
    %cst_106 = arith.constant dense<0.000000e+00> : vector<34xf32>
    %272 = vector.multi_reduction <add>, %271, %cst_106 [1] : vector<34x34xf32> to vector<34xf32>
    %273 = vector.shape_cast %272 : vector<34xf32> to vector<34x1xf32>
    %274 = tpu.reciprocal %273 {approx = true} : vector<34x1xf32> -> vector<34x1xf32>
    %275 = vector.broadcast %274 : vector<34x1xf32> to vector<34x34xf32>
    %276 = arith.mulf %271, %275 : vector<34x34xf32>
    %cst_107 = arith.constant dense<0.000000e+00> : vector<34x32xf32>
    %277 = tpu.matmul %276, %207, %cst_107 {dimension_numbers = #tpu.dot_dimension_numbers<[1], [0], [0], [1], [0, 0, 1, 1], [], []>} : vector<34x34xf32>, vector<34x32xf32>, vector<34x32xf32> -> vector<34x32xf32>
    %278 = vector.broadcast %13 : vector<1x32xf32> to vector<34x32xf32>
    %279 = arith.mulf %277, %278 : vector<34x32xf32>
    %280 = arith.addf %262, %279 : vector<34x32xf32>
    %c1_108 = arith.constant 1 : index
    %c0_109 = arith.constant 0 : index
    %c0_110 = arith.constant 0 : index
    %281 = vector.load %arg10[%c1_108, %c0_109, %c0_110] : memref<2x32x32xf32, #tpu.memory_space<vmem>>, vector<1x32x32xf32>
    %282 = vector.shape_cast %281 : vector<1x32x32xf32> to vector<32x32xf32>
    %cst_111 = arith.constant dense<0.000000e+00> : vector<34x32xf32>
    %283 = tpu.matmul %280, %282, %cst_111 {dimension_numbers = #tpu.dot_dimension_numbers<[1], [0], [0], [1], [0, 0, 1, 1], [], []>} : vector<34x32xf32>, vector<32x32xf32>, vector<34x32xf32> -> vector<34x32xf32>
    %284 = vector.broadcast %185 : vector<1x32xf32> to vector<34x32xf32>
    %285 = arith.addf %283, %284 : vector<34x32xf32>
    %286 = arith.addf %179, %285 : vector<34x32xf32>
    %cst_112 = arith.constant dense<0.000000e+00> : vector<34xf32>
    %287 = vector.multi_reduction <add>, %286, %cst_112 [1] : vector<34x32xf32> to vector<34xf32>
    %288 = vector.shape_cast %287 : vector<34xf32> to vector<34x1xf32>
    %cst_113 = arith.constant 3.200000e+01 : f32
    %289 = vector.broadcast %cst_113 : f32 to vector<34x1xf32>
    %290 = arith.divf %288, %289 : vector<34x1xf32>
    %291 = vector.broadcast %290 : vector<34x1xf32> to vector<34x32xf32>
    %292 = arith.subf %286, %291 : vector<34x32xf32>
    %293 = arith.mulf %292, %292 : vector<34x32xf32>
    %cst_114 = arith.constant dense<0.000000e+00> : vector<34xf32>
    %294 = vector.multi_reduction <add>, %293, %cst_114 [1] : vector<34x32xf32> to vector<34xf32>
    %295 = vector.shape_cast %294 : vector<34xf32> to vector<34x1xf32>
    %cst_115 = arith.constant 3.200000e+01 : f32
    %296 = vector.broadcast %cst_115 : f32 to vector<34x1xf32>
    %297 = arith.divf %295, %296 : vector<34x1xf32>
    %298 = vector.broadcast %290 : vector<34x1xf32> to vector<34x32xf32>
    %299 = arith.subf %286, %298 : vector<34x32xf32>
    %cst_116 = arith.constant 9.99999974E-6 : f32
    %300 = vector.broadcast %cst_116 : f32 to vector<34x1xf32>
    %301 = arith.addf %297, %300 : vector<34x1xf32>
    %302 = math.rsqrt %301 : vector<34x1xf32>
    %303 = vector.broadcast %302 : vector<34x1xf32> to vector<34x32xf32>
    %304 = arith.mulf %299, %303 : vector<34x32xf32>
    %305 = vector.broadcast %186 : vector<1x32xf32> to vector<34x32xf32>
    %306 = arith.mulf %304, %305 : vector<34x32xf32>
    %307 = vector.broadcast %187 : vector<1x32xf32> to vector<34x32xf32>
    %308 = arith.addf %306, %307 : vector<34x32xf32>
    %c1_117 = arith.constant 1 : index
    %c0_118 = arith.constant 0 : index
    %c0_119 = arith.constant 0 : index
    %309 = vector.load %arg11[%c1_117, %c0_118, %c0_119] : memref<2x32x64xf32, #tpu.memory_space<vmem>>, vector<1x32x64xf32>
    %310 = vector.shape_cast %309 : vector<1x32x64xf32> to vector<32x64xf32>
    %cst_120 = arith.constant dense<0.000000e+00> : vector<34x64xf32>
    %311 = tpu.matmul %308, %310, %cst_120 {dimension_numbers = #tpu.dot_dimension_numbers<[1], [0], [0], [1], [0, 0, 1, 1], [], []>} : vector<34x32xf32>, vector<32x64xf32>, vector<34x64xf32> -> vector<34x64xf32>
    %c1_121 = arith.constant 1 : index
    %c0_122 = arith.constant 0 : index
    %c0_123 = arith.constant 0 : index
    %312 = vector.load %arg12[%c1_121, %c0_122, %c0_123] : memref<2x1x64xf32, #tpu.memory_space<vmem>>, vector<1x1x64xf32>
    %313 = vector.shape_cast %312 : vector<1x1x64xf32> to vector<1x64xf32>
    %314 = vector.broadcast %313 : vector<1x64xf32> to vector<34x64xf32>
    %315 = arith.addf %311, %314 : vector<34x64xf32>
    %cst_124 = arith.constant 0.000000e+00 : f32
    %316 = vector.broadcast %cst_124 : f32 to vector<34x64xf32>
    %317 = arith.maximumf %315, %316 : vector<34x64xf32>
    %c1_125 = arith.constant 1 : index
    %c0_126 = arith.constant 0 : index
    %c0_127 = arith.constant 0 : index
    %318 = vector.load %arg13[%c1_125, %c0_126, %c0_127] : memref<2x64x32xf32, #tpu.memory_space<vmem>>, vector<1x64x32xf32>
    %319 = vector.shape_cast %318 : vector<1x64x32xf32> to vector<64x32xf32>
    %cst_128 = arith.constant dense<0.000000e+00> : vector<34x32xf32>
    %320 = tpu.matmul %317, %319, %cst_128 {dimension_numbers = #tpu.dot_dimension_numbers<[1], [0], [0], [1], [0, 0, 1, 1], [], []>} : vector<34x64xf32>, vector<64x32xf32>, vector<34x32xf32> -> vector<34x32xf32>
    %321 = vector.broadcast %188 : vector<1x32xf32> to vector<34x32xf32>
    %322 = arith.addf %320, %321 : vector<34x32xf32>
    %323 = arith.addf %308, %322 : vector<34x32xf32>
    %cst_129 = arith.constant dense<0.000000e+00> : vector<34xf32>
    %324 = vector.multi_reduction <add>, %323, %cst_129 [1] : vector<34x32xf32> to vector<34xf32>
    %325 = vector.shape_cast %324 : vector<34xf32> to vector<34x1xf32>
    %cst_130 = arith.constant 3.200000e+01 : f32
    %326 = vector.broadcast %cst_130 : f32 to vector<34x1xf32>
    %327 = arith.divf %325, %326 : vector<34x1xf32>
    %328 = vector.broadcast %327 : vector<34x1xf32> to vector<34x32xf32>
    %329 = arith.subf %323, %328 : vector<34x32xf32>
    %330 = arith.mulf %329, %329 : vector<34x32xf32>
    %cst_131 = arith.constant dense<0.000000e+00> : vector<34xf32>
    %331 = vector.multi_reduction <add>, %330, %cst_131 [1] : vector<34x32xf32> to vector<34xf32>
    %332 = vector.shape_cast %331 : vector<34xf32> to vector<34x1xf32>
    %cst_132 = arith.constant 3.200000e+01 : f32
    %333 = vector.broadcast %cst_132 : f32 to vector<34x1xf32>
    %334 = arith.divf %332, %333 : vector<34x1xf32>
    %335 = vector.broadcast %327 : vector<34x1xf32> to vector<34x32xf32>
    %336 = arith.subf %323, %335 : vector<34x32xf32>
    %cst_133 = arith.constant 9.99999974E-6 : f32
    %337 = vector.broadcast %cst_133 : f32 to vector<34x1xf32>
    %338 = arith.addf %334, %337 : vector<34x1xf32>
    %339 = math.rsqrt %338 : vector<34x1xf32>
    %340 = vector.broadcast %339 : vector<34x1xf32> to vector<34x32xf32>
    %341 = arith.mulf %336, %340 : vector<34x32xf32>
    %342 = vector.broadcast %189 : vector<1x32xf32> to vector<34x32xf32>
    %343 = arith.mulf %341, %342 : vector<34x32xf32>
    %344 = vector.broadcast %190 : vector<1x32xf32> to vector<34x32xf32>
    %345 = arith.addf %343, %344 : vector<34x32xf32>
    %c0_134 = arith.constant 0 : index
    %c0_135 = arith.constant 0 : index
    %346 = vector.load %arg15[%c0_134, %c0_135] : memref<3x32xf32, #tpu.memory_space<vmem>>, vector<3x32xf32>
    %347 = vector.extract_strided_slice %346 {offsets = [0, 0], sizes = [1, 32], strides = [1, 1]} : vector<3x32xf32> to vector<1x32xf32>
    %348 = vector.extract_strided_slice %346 {offsets = [1, 0], sizes = [1, 32], strides = [1, 1]} : vector<3x32xf32> to vector<1x32xf32>
    %cst_136 = arith.constant dense<0.000000e+00> : vector<34xf32>
    %349 = vector.multi_reduction <add>, %345, %cst_136 [1] : vector<34x32xf32> to vector<34xf32>
    %350 = vector.shape_cast %349 : vector<34xf32> to vector<34x1xf32>
    %cst_137 = arith.constant 3.200000e+01 : f32
    %351 = vector.broadcast %cst_137 : f32 to vector<34x1xf32>
    %352 = arith.divf %350, %351 : vector<34x1xf32>
    %353 = vector.broadcast %352 : vector<34x1xf32> to vector<34x32xf32>
    %354 = arith.subf %345, %353 : vector<34x32xf32>
    %355 = arith.mulf %354, %354 : vector<34x32xf32>
    %cst_138 = arith.constant dense<0.000000e+00> : vector<34xf32>
    %356 = vector.multi_reduction <add>, %355, %cst_138 [1] : vector<34x32xf32> to vector<34xf32>
    %357 = vector.shape_cast %356 : vector<34xf32> to vector<34x1xf32>
    %cst_139 = arith.constant 3.200000e+01 : f32
    %358 = vector.broadcast %cst_139 : f32 to vector<34x1xf32>
    %359 = arith.divf %357, %358 : vector<34x1xf32>
    %360 = vector.broadcast %352 : vector<34x1xf32> to vector<34x32xf32>
    %361 = arith.subf %345, %360 : vector<34x32xf32>
    %cst_140 = arith.constant 9.99999974E-6 : f32
    %362 = vector.broadcast %cst_140 : f32 to vector<34x1xf32>
    %363 = arith.addf %359, %362 : vector<34x1xf32>
    %364 = math.rsqrt %363 : vector<34x1xf32>
    %365 = vector.broadcast %364 : vector<34x1xf32> to vector<34x32xf32>
    %366 = arith.mulf %361, %365 : vector<34x32xf32>
    %367 = vector.broadcast %347 : vector<1x32xf32> to vector<34x32xf32>
    %368 = arith.mulf %366, %367 : vector<34x32xf32>
    %369 = vector.broadcast %348 : vector<1x32xf32> to vector<34x32xf32>
    %370 = arith.addf %368, %369 : vector<34x32xf32>
    %c0_141 = arith.constant 0 : index
    %c0_142 = arith.constant 0 : index
    %371 = vector.load %arg6[%c0_141, %c0_142] : memref<2x34xf32, #tpu.memory_space<vmem>>, vector<2x34xf32>
    %cst_143 = arith.constant dense<0.000000e+00> : vector<2x32xf32>
    %372 = tpu.matmul %371, %370, %cst_143 {dimension_numbers = #tpu.dot_dimension_numbers<[1], [0], [0], [1], [0, 0, 1, 1], [], []>} : vector<2x34xf32>, vector<34x32xf32>, vector<2x32xf32> -> vector<2x32xf32>
    %c0_144 = arith.constant 0 : index
    %c0_145 = arith.constant 0 : index
    %373 = vector.load %arg16[%c0_144, %c0_145] : memref<32x32xf32, #tpu.memory_space<vmem>>, vector<32x32xf32>
    %cst_146 = arith.constant dense<0.000000e+00> : vector<2x32xf32>
    %374 = tpu.matmul %372, %373, %cst_146 {dimension_numbers = #tpu.dot_dimension_numbers<[1], [0], [0], [1], [0, 0, 1, 1], [], []>} : vector<2x32xf32>, vector<32x32xf32>, vector<2x32xf32> -> vector<2x32xf32>
    %375 = vector.extract_strided_slice %346 {offsets = [2, 0], sizes = [1, 32], strides = [1, 1]} : vector<3x32xf32> to vector<1x32xf32>
    %376 = vector.broadcast %375 : vector<1x32xf32> to vector<2x32xf32>
    %377 = arith.addf %374, %376 : vector<2x32xf32>
    %cst_147 = arith.constant 0.000000e+00 : f32
    %378 = vector.broadcast %cst_147 : f32 to vector<2x32xf32>
    %379 = arith.maximumf %377, %378 : vector<2x32xf32>
    %c0_148 = arith.constant 0 : index
    %c0_149 = arith.constant 0 : index
    %380 = vector.load %arg17[%c0_148, %c0_149] : memref<32x2xf32, #tpu.memory_space<vmem>>, vector<32x2xf32>
    %cst_150 = arith.constant dense<0.000000e+00> : vector<2x2xf32>
    %381 = tpu.matmul %379, %380, %cst_150 {dimension_numbers = #tpu.dot_dimension_numbers<[1], [0], [0], [1], [0, 0, 1, 1], [], []>} : vector<2x32xf32>, vector<32x2xf32>, vector<2x2xf32> -> vector<2x2xf32>
    %c0_151 = arith.constant 0 : index
    %c0_152 = arith.constant 0 : index
    %382 = vector.load %arg18[%c0_151, %c0_152] : memref<1x2xf32, #tpu.memory_space<vmem>>, vector<1x2xf32>
    %383 = vector.broadcast %382 : vector<1x2xf32> to vector<2x2xf32>
    %384 = arith.addf %381, %383 : vector<2x2xf32>
    %c0_153 = arith.constant 0 : index
    %c0_154 = arith.constant 0 : index
    %385 = vector.load %arg20[%c0_153, %c0_154] : memref<2x2xf32, #tpu.memory_space<vmem>>, vector<2x2xf32>
    tpu.vector_store %arg20[%c0_153, %c0_154], %384 {strides = array<i32>} : memref<2x2xf32, #tpu.memory_space<vmem>>, vector<2x2xf32>,
    %c0_155 = arith.constant 0 : index
    %c0_156 = arith.constant 0 : index
    %386 = vector.load %arg19[%c0_155, %c0_156] : memref<2x2xf32, #tpu.memory_space<vmem>>, vector<2x2xf32>
    %387 = arith.subf %384, %386 : vector<2x2xf32>
    %388 = arith.mulf %387, %387 : vector<2x2xf32>
    %389 = vector.shape_cast %388 : vector<2x2xf32> to vector<1x2x2xf32>
    %cst_157 = arith.constant dense<0.000000e+00> : vector<1xf32>
    %390 = vector.multi_reduction <add>, %389, %cst_157 [1, 2] : vector<1x2x2xf32> to vector<1xf32>
    %391 = vector.shape_cast %390 : vector<1xf32> to vector<1x1x1xf32>
    %392 = vector.extract %391[0, 0, 0] : f32 from vector<1x1x1xf32>
    %cst_158 = arith.constant 4.000000e+00 : f32
    %393 = arith.divf %392, %cst_158 : f32
    %cst_159 = arith.constant 1.000000e+00 : f32
    %394 = vector.broadcast %cst_159 : f32 to vector<1x1xf32>
    %395 = vector.broadcast %393 : f32 to vector<1x1xf32>
    %396 = arith.mulf %395, %394 : vector<1x1xf32>
    %c0_160 = arith.constant 0 : index
    %c0_161 = arith.constant 0 : index
    %397 = vector.load %arg21[%c0_160, %c0_161] : memref<1x1xf32, #tpu.memory_space<vmem>>, vector<1x1xf32>
    tpu.vector_store %arg21[%c0_160, %c0_161], %396 {strides = array<i32>} : memref<1x1xf32, #tpu.memory_space<vmem>>, vector<1x1xf32>,
    return
  }
  func.func @transform_0(%arg0: i32) -> (i32, i32) {
    %c0_i32 = arith.constant 0 : i32
    %c0_i32_0 = arith.constant 0 : i32
    %c0_i32_1 = arith.constant 0 : i32
    return %c0_i32, %c0_i32_0 : i32, i32
  }
  func.func @transform_1(%arg0: i32) -> (i32, i32) {
    %c0_i32 = arith.constant 0 : i32
    %c0_i32_0 = arith.constant 0 : i32
    %c0_i32_1 = arith.constant 0 : i32
    return %c0_i32, %c0_i32_0 : i32, i32
  }
  func.func @transform_2(%arg0: i32) -> (i32, i32) {
    %c0_i32 = arith.constant 0 : i32
    %c0_i32_0 = arith.constant 0 : i32
    %c0_i32_1 = arith.constant 0 : i32
    return %c0_i32, %c0_i32_0 : i32, i32
  }
  func.func @transform_3(%arg0: i32) -> (i32, i32) {
    %c0_i32 = arith.constant 0 : i32
    %c0_i32_0 = arith.constant 0 : i32
    %c0_i32_1 = arith.constant 0 : i32
    return %c0_i32, %c0_i32_0 : i32, i32
  }
  func.func @transform_4(%arg0: i32) -> (i32, i32, i32) {
    %c0_i32 = arith.constant 0 : i32
    %c0_i32_0 = arith.constant 0 : i32
    %c0_i32_1 = arith.constant 0 : i32
    %c0_i32_2 = arith.constant 0 : i32
    return %c0_i32, %c0_i32_0, %c0_i32_1 : i32, i32, i32
  }
  func.func @transform_5(%arg0: i32) -> (i32, i32) {
    %c0_i32 = arith.constant 0 : i32
    %c0_i32_0 = arith.constant 0 : i32
    %c0_i32_1 = arith.constant 0 : i32
    return %c0_i32, %c0_i32_0 : i32, i32
  }
  func.func @transform_6(%arg0: i32) -> (i32, i32, i32) {
    %c0_i32 = arith.constant 0 : i32
    %c0_i32_0 = arith.constant 0 : i32
    %c0_i32_1 = arith.constant 0 : i32
    %c0_i32_2 = arith.constant 0 : i32
    return %c0_i32, %c0_i32_0, %c0_i32_1 : i32, i32, i32
  }
  func.func @transform_7(%arg0: i32) -> (i32, i32, i32) {
    %c0_i32 = arith.constant 0 : i32
    %c0_i32_0 = arith.constant 0 : i32
    %c0_i32_1 = arith.constant 0 : i32
    %c0_i32_2 = arith.constant 0 : i32
    return %c0_i32, %c0_i32_0, %c0_i32_1 : i32, i32, i32
  }
  func.func @transform_8(%arg0: i32) -> (i32, i32, i32) {
    %c0_i32 = arith.constant 0 : i32
    %c0_i32_0 = arith.constant 0 : i32
    %c0_i32_1 = arith.constant 0 : i32
    %c0_i32_2 = arith.constant 0 : i32
    return %c0_i32, %c0_i32_0, %c0_i32_1 : i32, i32, i32
  }
  func.func @transform_9(%arg0: i32) -> (i32, i32, i32) {
    %c0_i32 = arith.constant 0 : i32
    %c0_i32_0 = arith.constant 0 : i32
    %c0_i32_1 = arith.constant 0 : i32
    %c0_i32_2 = arith.constant 0 : i32
    return %c0_i32, %c0_i32_0, %c0_i32_1 : i32, i32, i32
  }
  func.func @transform_10(%arg0: i32) -> (i32, i32, i32) {
    %c0_i32 = arith.constant 0 : i32
    %c0_i32_0 = arith.constant 0 : i32
    %c0_i32_1 = arith.constant 0 : i32
    %c0_i32_2 = arith.constant 0 : i32
    return %c0_i32, %c0_i32_0, %c0_i32_1 : i32, i32, i32
  }
  func.func @transform_11(%arg0: i32) -> (i32, i32, i32) {
    %c0_i32 = arith.constant 0 : i32
    %c0_i32_0 = arith.constant 0 : i32
    %c0_i32_1 = arith.constant 0 : i32
    %c0_i32_2 = arith.constant 0 : i32
    return %c0_i32, %c0_i32_0, %c0_i32_1 : i32, i32, i32
  }
  func.func @transform_12(%arg0: i32) -> (i32, i32, i32) {
    %c0_i32 = arith.constant 0 : i32
    %c0_i32_0 = arith.constant 0 : i32
    %c0_i32_1 = arith.constant 0 : i32
    %c0_i32_2 = arith.constant 0 : i32
    return %c0_i32, %c0_i32_0, %c0_i32_1 : i32, i32, i32
  }
  func.func @transform_13(%arg0: i32) -> (i32, i32, i32) {
    %c0_i32 = arith.constant 0 : i32
    %c0_i32_0 = arith.constant 0 : i32
    %c0_i32_1 = arith.constant 0 : i32
    %c0_i32_2 = arith.constant 0 : i32
    return %c0_i32, %c0_i32_0, %c0_i32_1 : i32, i32, i32
  }
  func.func @transform_14(%arg0: i32) -> (i32, i32) {
    %c0_i32 = arith.constant 0 : i32
    %c0_i32_0 = arith.constant 0 : i32
    %c0_i32_1 = arith.constant 0 : i32
    return %c0_i32, %c0_i32_0 : i32, i32
  }
  func.func @transform_15(%arg0: i32) -> (i32, i32) {
    %c0_i32 = arith.constant 0 : i32
    %c0_i32_0 = arith.constant 0 : i32
    %c0_i32_1 = arith.constant 0 : i32
    return %c0_i32, %c0_i32_0 : i32, i32
  }
  func.func @transform_16(%arg0: i32) -> (i32, i32) {
    %c0_i32 = arith.constant 0 : i32
    %c0_i32_0 = arith.constant 0 : i32
    %c0_i32_1 = arith.constant 0 : i32
    return %c0_i32, %c0_i32_0 : i32, i32
  }
  func.func @transform_17(%arg0: i32) -> (i32, i32) {
    %c0_i32 = arith.constant 0 : i32
    %c0_i32_0 = arith.constant 0 : i32
    %c0_i32_1 = arith.constant 0 : i32
    return %c0_i32, %c0_i32_0 : i32, i32
  }
  func.func @transform_18(%arg0: i32) -> (i32, i32) {
    %c0_i32 = arith.constant 0 : i32
    %c0_i32_0 = arith.constant 0 : i32
    %c0_i32_1 = arith.constant 0 : i32
    return %c0_i32, %c0_i32_0 : i32, i32
  }
  func.func @transform_19(%arg0: i32) -> (i32, i32) {
    %c0_i32 = arith.constant 0 : i32
    %c0_i32_0 = arith.constant 0 : i32
    %c0_i32_1 = arith.constant 0 : i32
    return %c0_i32, %c0_i32_0 : i32, i32
  }
  func.func @transform_20(%arg0: i32) -> (i32, i32) {
    %c0_i32 = arith.constant 0 : i32
    %c0_i32_0 = arith.constant 0 : i32
    %c0_i32_1 = arith.constant 0 : i32
    return %c0_i32, %c0_i32_0 : i32, i32
  }
}

</mosaic_0001>

<bundles_post_ra>
// kernel: wireless_loc_fm_forward.1
= control target key start
LH: loop header
LB: loop body
LE: loop exit
PB: predicated region body
PF: predicated region fallthrough
CT: control target
= control target key end

     0   :  { %s8372_s0 = inlined_call_operand.vmem [shape: f32[34,32], index: 0, kind: input, shape index: {}]   ;;  %s8373_s1 = inlined_call_operand.vmem [shape: f32[34,32], index: 1, kind: input, shape index: {}]   ;;  %s8374_s2 = inlined_call_operand.vmem [shape: f32[32,32], index: 2, kind: input, shape index: {}]   ;;  %s8375_s3 = inlined_call_operand.vmem [shape: f32[34,34], index: 3, kind: input, shape index: {}]   ;;  %s8376_s4 = inlined_call_operand.vmem [shape: f32[4,1,32], index: 4, kind: input, shape index: {}]   ;;  %s8377_s5 = inlined_call_operand.vmem [shape: f32[2,34], index: 5, kind: input, shape index: {}]   ;;  %s8378_s6 = inlined_call_operand.vmem [shape: f32[2,32,32], index: 6, kind: input, shape index: {}]   ;;  %s8379_s7 = inlined_call_operand.vmem [shape: f32[2,32,32], index: 7, kind: input, shape index: {}]   ;;  %s8380_s8 = inlined_call_operand.vmem [shape: f32[2,32,32], index: 8, kind: input, shape index: {}]   ;;  %s8381_s9 = inlined_call_operand.vmem [shape: f32[2,32,32], index: 9, kind: input, shape index: {}]   ;;  %s8382_s10 = inlined_call_operand.vmem [shape: f32[2,32,64], index: 10, kind: input, shape index: {}]   ;;  %s8383_s11 = inlined_call_operand.vmem [shape: f32[2,1,64], index: 11, kind: input, shape index: {}]   ;;  %s8384_s12 = inlined_call_operand.vmem [shape: f32[2,64,32], index: 12, kind: input, shape index: {}]   ;;  %s8385_s13 = inlined_call_operand.vmem [shape: f32[2,9,32], index: 13, kind: input, shape index: {}]   ;;  %s8386_s14 = inlined_call_operand.vmem [shape: f32[3,32], index: 14, kind: input, shape index: {}]   ;;  %s8387_s15 = inlined_call_operand.vmem [shape: f32[32,32], index: 15, kind: input, shape index: {}]   ;;  %s8388_s16 = inlined_call_operand.vmem [shape: f32[32,2], index: 16, kind: input, shape index: {}]   ;;  %s8389_s17 = inlined_call_operand.vmem [shape: f32[1,2], index: 17, kind: input, shape index: {}]   ;;  %s8390_s18 = inlined_call_operand.vmem [shape: f32[2,2], index: 18, kind: input, shape index: {}]   ;;  %s8391_s19 = inlined_call_operand.hbm [shape: f32[2,2], index: 19, kind: output, shape index: {0}]   ;;  %s8392_s20 = inlined_call_operand.hbm [shape: f32[1,1], index: 20, kind: output, shape index: {1}]  }
   0x1   :  { %8398 = sst [smem:[#allocation8_spill]] %s8372_s0 }
   0x2   :  { %8399 = sst [smem:[#allocation9_spill]] %s8373_s1 }
   0x3   :  { %8400 = sst [smem:[#allocation10_spill]] %s8374_s2 }
   0x4   :  { %8401 = sst [smem:[#allocation11_spill]] %s8375_s3 }
   0x5   :  { %8402 = sst [smem:[#allocation12_spill]] %s8376_s4 }
   0x6   :  { %26 = vsyncpa [#allocation3], 0  ;;  %s8403_s23 = sld [smem:[#allocation10_spill]]  ;;  %v6362_v3 = vmov 0.0|0.0   ;;  %vm6363_vm0 = vmmov 0   ;;  %v6364_v6 = vmov 0.0  }
   0x7   :  { %5865 = vmatprep.subr.bf16.mxu0 %v6362_v3  ;;  %5123 = vmatprep.mubr.msk.f32.mxu0 %vm6363_vm0, %v6364_v6  ;;  %v318_v8 = vld [vmem:[%s8379_s7] sm:$0xff]  ;;  %v319_v10 = vld [vmem:[%s8379_s7 + $0x8] sm:$0xff] }
   0x8   :  { %5871 = vmatprep.subr.bf16.mxu1 %v6362_v3  ;;  %5146 = vmatprep.mubr.msk.f32.mxu1 %vm6363_vm0, %v6364_v6  ;;  %v200_v9 = vld [vmem:[%s8378_s6] sm:$0xff]  ;;  %v201_v11 = vld [vmem:[%s8378_s6 + $0x8] sm:$0xff] }
   0xc   :  { %v71_v0 = vld [vmem:[%s8403_s23] sm:$0xff]  ;;  %v72_v1 = vld [vmem:[%s8403_s23 + $0x8] sm:$0xff]  ;;  %v73_v2 = vld [vmem:[%s8403_s23 + $0x10] sm:$0xff] }
   0xd   :  { %v5866_v4 = vpack.c.bf16 %v72_v1, %v71_v0  ;;  %v74_v5 = vld [vmem:[%s8403_s23 + $0x18] sm:$0xff] }
   0xe   :  { %v5869_v7 = vpack.c.bf16 %v74_v5, %v73_v2 }
   0xf   :  { %5867 = vmatpush3.bf16.msra.mxu0 %v5866_v4 }
  0x10   :  { %5868 = vmatprep.subr.bf16.mxu0 %v6362_v3 }
  0x11   :  { %27 = vsyncpa [#allocation5], 0  ;;  %v5872_v12 = vpack.c.bf16 %v201_v11, %v200_v9  ;;  %s8404_s2 = sld [smem:[#allocation8_spill]]  ;;  %vm80_vm1 = vcmask 261120   ;;  %v5878_v14 = vpack.c.bf16 %v319_v10, %v318_v8  ;;  %v202_v19 = vld [vmem:[%s8378_s6 + $0x10] sm:$0xff]  ;;  %v203_v20 = vld [vmem:[%s8378_s6 + $0x18] sm:$0xff]  ;;  %v204_v51 = vlaneseq }
  0x12   :  { %v320_v21 = vld [vmem:[%s8379_s7 + $0x10] sm:$0xff]  ;;  %v5875_v22 = vpack.c.bf16 %v203_v20, %v202_v19  ;;  %v321_v23 = vld [vmem:[%s8379_s7 + $0x18] sm:$0xff]  ;;  %s8405_s27 = sld [smem:[#allocation9_spill]]  ;;  %v416_v26 = vld [vmem:[%s8380_s8] sm:$0xff]  ;;  %s8408_s21 = sld [smem:[#allocation12_spill]]  ;;  %vm717_vm3 = vcmask 1041408  }
  0x13   :  { %5870 = vmatpush3.bf16.msra.mxu0 %v5869_v7  ;;  %5873 = vmatpush3.bf16.msra.mxu1 %v5872_v12  ;;  %v5881_v24 = vpack.c.bf16 %v321_v23, %v320_v21  ;;  %v417_v27 = vld [vmem:[%s8380_s8 + $0x8] sm:$0xff]  ;;  %v418_v33 = vld [vmem:[%s8380_s8 + $0x10] sm:$0xff]  ;;  %v419_v34 = vld [vmem:[%s8380_s8 + $0x18] sm:$0xff]  ;;  %v6649_v52 = vshrl.u32 %v204_v51, 7  ;;  %s8409_s28 = sld [smem:[#allocation11_spill]]  ;;  %vm645_vm4 = vcmask 277504  }
  0x14   :  { %5877 = vmatprep.subr.bf16.mxu0 %v6362_v3  ;;  %5874 = vmatprep.subr.bf16.mxu1 %v6362_v3  ;;  %v5884_v31 = vpack.c.bf16 %v417_v27, %v416_v26  ;;  %v5887_v38 = vpack.c.bf16 %v419_v34, %v418_v33  ;;  %v198_v54 = vld [vmem:[%s8385_s13] sm:$0xff]  ;;  %vm6660_vm2 = vmpackc.low %vm80_vm1, %vm80_vm1  ;;  %vm658_vm5 = vcmask 271360   ;;  %vm1809_vm6 = vcmask 254976  }
  0x15   :  { %v6652_v53 = vsub.s32 1, %v6649_v52  ;;  %v6670_v10 = vsub.s32 0, %v6649_v52  ;;  %vm2015_vm7 = vcmask 523264   ;;  %vm4525_vm8 = vcmask 9216  }
  0x17   :  { %v66_v13 = vld [vmem:[%s8404_s2] sm:$0xff]  ;;  %v67_v15 = vld [vmem:[%s8404_s2 + $0x8] sm:$0xff]  ;;  %v68_v16 = vld [vmem:[%s8404_s2 + $0x10] sm:$0xff]  ;;  %5876 = vmatpush3.bf16.msra.mxu1 %v5875_v22  ;;  %v325_v59 = vrot.slane %v198_v54, %v6652_v53  ;;  %v6677_v22 = vsub.s32 2, %v6649_v52 }
  0x18   :  { %5124 = vmatmul.mubr.msk.f32.vlgmr.msra.gmra.mrb[0].mxu0 %vm80_vm1, %v66_v13  ;;  %v69_v17 = vld [vmem:[%s8404_s2 + $0x18] sm:$0xff]  ;;  %v70_v18 = vld [vmem:[%s8404_s2 + $0x20] sm:$0x3]  ;;  %5883 = vmatprep.subr.bf16.mxu1 %v6362_v3  ;;  %v76_v32 = vld [vmem:[%s8405_s27 + $0x8] sm:$0xff] }
  0x19   :  { %5126 = vmatprep.mubr.msk.f32.mxu0 %vm6363_vm0, %v6364_v6  ;;  %5879 = vmatpush3.bf16.msra.mxu0 %v5878_v14  ;;  %v75_v25 = vld [vmem:[%s8405_s27] sm:$0xff]  ;;  %v77_v39 = vld [vmem:[%s8405_s27 + $0x10] sm:$0xff]  ;;  %v78_v43 = vld [vmem:[%s8405_s27 + $0x18] sm:$0xff]  ;;  %v423_v26 = vrot.slane %v198_v54, %v6677_v22 }
  0x1a   :  { %5880 = vmatprep.subr.bf16.mxu0 %v6362_v3  ;;  %v79_v47 = vld [vmem:[%s8405_s27 + $0x20] sm:$0x3]  ;;  %v7714_v2 = vld [vmem:[%s8408_s21 + $0x3] ss:$0 sm:$0xff] }
  0x1c   :  { %5127 = vmatmul.mubr.msk.f32.gmra.mrb[2].mxu0 %vm80_vm1, %v67_v15 }
  0x1d   :  { %5129 = vmatprep.mubr.msk.f32.mxu0 %vm6363_vm0, %v6364_v6  ;;  %5882 = vmatpush3.bf16.msra.mxu0 %v5881_v24 }
  0x1e   :  { %5889 = vmatprep.subr.bf16.mxu0 %v6362_v3 }
  0x20   :  { %5130 = vmatmul.mubr.msk.f32.gmra.mrb[4].mxu0 %vm80_vm1, %v68_v16 }
  0x21   :  { %5132 = vmatprep.mubr.msk.f32.mxu0 %vm6363_vm0, %v6364_v6 }
  0x24   :  { %5133 = vmatmul.mubr.msk.f32.gmra.mrb[6].mxu0 %vm80_vm1, %v69_v17  ;;  %v207_v17 = vrot.slane %v198_v54, %v6670_v10 }
  0x25   :  { %5135 = vmatprep.mubr.msk.f32.mxu0 %vm6363_vm0, %v6364_v6 }
  0x28   :  { %5136 = vmatmul.mubr.msk.f32.gmra.mrb[8].mxu0 %vm80_vm1, %v70_v18 }
  0x29   :  { %5169 = vmatprep.mubr.msk.f32.mxu0 %vm6363_vm0, %v6364_v6 }
  0xeb   :  { %v162_v28 = vpop.f32.mrb[0].mxu0 }
  0xec   :  { %v6559_v29 = vadd.f32 %v162_v28, %v75_v25  ;;  %v5125_v30 = vpop.f32.mrb[1].mxu0 }
  0xee   :  { %5147 = vmatmul.mubr.msk.f32.vlgmr.msra.gmra.mrb[0].mxu1 %vm80_vm1, %v6559_v29  ;;  %5170 = vmatmul.mubr.msk.f32.vlgmr.msra.gmra.mrb[10].mxu0 %vm80_vm1, %v6559_v29 }
  0xef   :  { %v167_v35 = vpop.f32.mrb[2].mxu0  ;;  %5149 = vmatprep.mubr.msk.f32.mxu1 %vm6363_vm0, %v6364_v6  ;;  %5172 = vmatprep.mubr.msk.f32.mxu0 %vm6363_vm0, %v6364_v6 }
  0xf0   :  { %v6578_v36 = vadd.f32 %v167_v35, %v76_v32  ;;  %v5128_v37 = vpop.f32.mrb[3].mxu0  ;;  %5885 = vmatpush3.bf16.msra.mxu1 %v5884_v31  ;;  %v4597_v32 = vld [vmem:[%s8408_s21] ss:$0 sm:$0xff] }
  0xf1   :  { %5886 = vmatprep.subr.bf16.mxu1 %v6362_v3 }
  0xf2   :  { %5150 = vmatmul.mubr.msk.f32.gmra.mrb[2].mxu1 %vm80_vm1, %v6578_v36  ;;  %5173 = vmatmul.mubr.msk.f32.gmra.mrb[12].mxu0 %vm80_vm1, %v6578_v36 }
  0xf3   :  { %v172_v40 = vpop.f32.mrb[4].mxu0  ;;  %5152 = vmatprep.mubr.msk.f32.mxu1 %vm6363_vm0, %v6364_v6  ;;  %5175 = vmatprep.mubr.msk.f32.mxu0 %vm6363_vm0, %v6364_v6 }
  0xf4   :  { %v6592_v41 = vadd.f32 %v172_v40, %v77_v39  ;;  %v5131_v42 = vpop.f32.mrb[5].mxu0  ;;  %5888 = vmatpush3.bf16.msra.mxu1 %v5887_v38 }
  0xf5   :  { %5897 = vmatprep.subr.bf16.mxu1 %v6362_v3 }
  0xf6   :  { %5153 = vmatmul.mubr.msk.f32.gmra.mrb[4].mxu1 %vm80_vm1, %v6592_v41  ;;  %5176 = vmatmul.mubr.msk.f32.gmra.mrb[14].mxu0 %vm80_vm1, %v6592_v41 }
  0xf7   :  { %v177_v44 = vpop.f32.mrb[6].mxu0  ;;  %5155 = vmatprep.mubr.msk.f32.mxu1 %vm6363_vm0, %v6364_v6  ;;  %5178 = vmatprep.mubr.msk.f32.mxu0 %vm6363_vm0, %v6364_v6 }
  0xf8   :  { %v6606_v45 = vadd.f32 %v177_v44, %v78_v43  ;;  %v5134_v46 = vpop.f32.mrb[7].mxu0 }
  0xfa   :  { %5156 = vmatmul.mubr.msk.f32.gmra.mrb[6].mxu1 %vm80_vm1, %v6606_v45  ;;  %5179 = vmatmul.mubr.msk.f32.gmra.mrb[16].mxu0 %vm80_vm1, %v6606_v45 }
  0xfb   :  { %v182_v48 = vpop.f32.mrb[8].mxu0  ;;  %5158 = vmatprep.mubr.msk.f32.mxu1 %vm6363_vm0, %v6364_v6  ;;  %5181 = vmatprep.mubr.msk.f32.mxu0 %vm6363_vm0, %v6364_v6 }
  0xfc   :  { %v6619_v49 = vadd.f32 %v182_v48, %v79_v47  ;;  %v5137_v50 = vpop.f32.mrb[9].mxu0 }
  0xfe   :  { %5159 = vmatmul.mubr.msk.f32.gmra.mrb[8].mxu1 %vm80_vm1, %v6619_v49  ;;  %5182 = vmatmul.mubr.msk.f32.gmra.mrb[18].mxu0 %vm80_vm1, %v6619_v49 }
  0xff   :  { %5192 = vmatprep.mubr.msk.f32.mxu1 %vm6363_vm0, %v6364_v6  ;;  %5217 = vmatprep.mubr.msk.f32.mxu0 %vm6363_vm0, %v6364_v6 }
 0x102   :  { %5193 = vmatmul.mubr.msk.f32.vlgmr.msra.gmra.mrb[10].mxu1 %vm80_vm1, %v6559_v29 }
 0x103   :  { %5195 = vmatprep.mubr.msk.f32.mxu1 %vm6363_vm0, %v6364_v6 }
 0x106   :  { %5196 = vmatmul.mubr.msk.f32.gmra.mrb[12].mxu1 %vm80_vm1, %v6578_v36 }
 0x107   :  { %5198 = vmatprep.mubr.msk.f32.mxu1 %vm6363_vm0, %v6364_v6 }
 0x10a   :  { %5199 = vmatmul.mubr.msk.f32.gmra.mrb[14].mxu1 %vm80_vm1, %v6592_v41 }
 0x10b   :  { %5201 = vmatprep.mubr.msk.f32.mxu1 %vm6363_vm0, %v6364_v6 }
 0x10e   :  { %5202 = vmatmul.mubr.msk.f32.gmra.mrb[16].mxu1 %vm80_vm1, %v6606_v45 }
 0x10f   :  { %5204 = vmatprep.mubr.msk.f32.mxu1 %vm6363_vm0, %v6364_v6 }
 0x112   :  { %5205 = vmatmul.mubr.msk.f32.gmra.mrb[18].mxu1 %vm80_vm1, %v6619_v49 }
 0x113   :  { %5242 = vmatprep.mubr.msk.f32.mxu1 %vm6363_vm0, %v6364_v6 }
 0x1c1   :  { %v289_v55 = vpop.f32.mrb[0].mxu1  ;;  %v392_v56 = vpop.f32.mrb[10].mxu0 }
 0x1c2   :  { %v5148_v57 = vpop.f32.mrb[1].mxu1  ;;  %v5171_v58 = vpop.f32.mrb[11].mxu0  ;;  %v393_v0 = vadd.f32 %v392_v56, %v325_v59  ;;  %v290_v24 = vadd.f32 %v289_v55, %v207_v17 }
 0x1c4   :  { %v6686_v30 = vmul.f32 0.35355338, %v290_v24 }
 0x1c5   :  { %v294_v60 = vpop.f32.mrb[2].mxu1  ;;  %v397_v61 = vpop.f32.mrb[12].mxu0 }
 0x1c6   :  { %v5151_v62 = vpop.f32.mrb[3].mxu1  ;;  %v5174_v63 = vpop.f32.mrb[13].mxu0  ;;  %v398_v1 = vadd.f32 %v397_v61, %v325_v59  ;;  %v295_v31 = vadd.f32 %v294_v60, %v207_v17  ;;  %v520_v38 = vmul.f32 %v4597_v32, %v6686_v30 }
 0x1c8   :  { %v6664_v4 = vpack.c.bf16 %v398_v1, %v393_v0  ;;  %v6694_v39 = vmul.f32 0.35355338, %v295_v31 }
 0x1c9   :  { %v299_v5 = vpop.f32.mrb[4].mxu1  ;;  %v402_v7 = vpop.f32.mrb[14].mxu0 }
 0x1ca   :  { %v5154_v8 = vpop.f32.mrb[5].mxu1  ;;  %v5177_v9 = vpop.f32.mrb[15].mxu0  ;;  %5892 = vmatpush3.bf16.xpose.msk.msra.mxu0 %vm6660_vm2, %v6664_v4  ;;  %v403_v13 = vadd.f32 %v402_v7, %v325_v59  ;;  %v300_v40 = vadd.f32 %v299_v5, %v207_v17  ;;  %v521_v48 = vmul.f32 %v4597_v32, %v6694_v39  ;;  %v6743_v5 = vld [vmem:[%s8408_s21 + $0x1] ss:$0 sm:$0xff] }
 0x1cb   :  { %5893 = vmatprep.subr.bf16.mxu0 %v6362_v3  ;;  %v827_v7 = vmul.f32 %v6743_v5, %v6686_v30  ;;  %v828_v8 = vmul.f32 %v6743_v5, %v6694_v39 }
 0x1cc   :  { %v6706_v46 = vmul.f32 0.35355338, %v300_v40 }
 0x1cd   :  { %v304_v11 = vpop.f32.mrb[6].mxu1  ;;  %v407_v12 = vpop.f32.mrb[16].mxu0 }
 0x1ce   :  { %v408_v14 = vadd.f32 %v407_v12, %v325_v59  ;;  %v5157_v15 = vpop.f32.mrb[7].mxu1  ;;  %v5180_v16 = vpop.f32.mrb[17].mxu0  ;;  %v305_v47 = vadd.f32 %v304_v11, %v207_v17  ;;  %v829_v9 = vmul.f32 %v6743_v5, %v6706_v46 }
 0x1d0   :  { %v6674_v18 = vpack.c.bf16 %v408_v14, %v403_v13  ;;  %v6714_v56 = vmul.f32 0.35355338, %v305_v47  ;;  %v6784_v13 = vld [vmem:[%s8408_s21 + $0x2] ss:$0 sm:$0xff] }
 0x1d1   :  { %v309_v19 = vpop.f32.mrb[8].mxu1  ;;  %v412_v20 = vpop.f32.mrb[18].mxu0  ;;  %v1113_v14 = vmul.f32 %v6784_v13, %v6686_v30  ;;  %v1114_v15 = vmul.f32 %v6784_v13, %v6694_v39  ;;  %v1115_v16 = vmul.f32 %v6784_v13, %v6706_v46 }
 0x1d2   :  { %v5160_v21 = vpop.f32.mrb[9].mxu1  ;;  %v5183_v23 = vpop.f32.mrb[19].mxu0  ;;  %5896 = vmatpush3.bf16.xpose.msk.msra.mxu0 %vm6660_vm2, %v6674_v18  ;;  %v6684_v28 = vadd.f32 %v412_v20, %v325_v59  ;;  %v310_v57 = vadd.f32 %v309_v19, %v207_v17  ;;  %v522_v59 = vmul.f32 %v4597_v32, %v6706_v46  ;;  %v523_v0 = vmul.f32 %v4597_v32, %v6714_v56 }
 0x1d3   :  { %5215 = vmatprep.subr.mxu0 %v6364_v6  ;;  %v830_v11 = vmul.f32 %v6743_v5, %v6714_v56 }
 0x1d4   :  { %v6726_v62 = vmul.f32 0.35355338, %v310_v57 }
 0x1d5   :  { %v490_v25 = vpop.f32.mrb[10].mxu1 }
 0x1d6   :  { %v5194_v27 = vpop.f32.mrb[11].mxu1  ;;  %v491_v34 = vadd.f32 %v490_v25, %v423_v26  ;;  %v524_v1 = vmul.f32 %v4597_v32, %v6726_v62  ;;  %v831_v12 = vmul.f32 %v6743_v5, %v6726_v62  ;;  %v1117_v17 = vmul.f32 %v6784_v13, %v6726_v62  ;;  %v6861_v25 = vld [vmem:[%s8409_s28] sm:$0xff] }
 0x1d9   :  { %v495_v33 = vpop.f32.mrb[12].mxu1 }
 0x1da   :  { %v496_v35 = vadd.f32 %v495_v33, %v423_v26  ;;  %v5197_v37 = vpop.f32.mrb[13].mxu1  ;;  %5216 = vmatpush3.xpose.msk.msra.mxu0 %vm80_vm1, %v6684_v28 }
 0x1db   :  { %5903 = vmatprep.subr.bf16.mxu0 %v6362_v3 }
 0x1dc   :  { %v6696_v42 = vpack.c.bf16 %v496_v35, %v491_v34  ;;  %v6879_v35 = vld [vmem:[%s8409_s28 + $0x10] sm:$0xff] }
 0x1dd   :  { %v500_v43 = vpop.f32.mrb[14].mxu1  ;;  %5218 = vmatmul.mubr.msk.f32.vlgmr.msra.gmra.mrb[20].mxu0 %vm80_vm1, %v520_v38 }
 0x1de   :  { %v5200_v44 = vpop.f32.mrb[15].mxu1  ;;  %5899 = vmatpush3.bf16.msra.mxu1 %v6696_v42  ;;  %5906 = vmatpush3.bf16.xpose.msk.msra.mxu0 %vm6660_vm2, %v6664_v4  ;;  %v501_v51 = vadd.f32 %v500_v43, %v423_v26  ;;  %v6889_v43 = vld [vmem:[%s8409_s28 + $0x18] sm:$0xff] }
 0x1df   :  { %5220 = vmatprep.mubr.msk.f32.mxu0 %vm6363_vm0, %v6364_v6  ;;  %5900 = vmatprep.subr.bf16.mxu1 %v6362_v3 }
 0x1e0   :  { %5907 = vmatprep.subr.bf16.mxu0 %v6362_v3 }
 0x1e1   :  { %v505_v50 = vpop.f32.mrb[16].mxu1  ;;  %5221 = vmatmul.mubr.msk.f32.gmra.mrb[22].mxu0 %vm80_vm1, %v521_v48 }
 0x1e2   :  { %v506_v54 = vadd.f32 %v505_v50, %v423_v26  ;;  %v5203_v55 = vpop.f32.mrb[17].mxu1  ;;  %5223 = vmatprep.mubr.msk.f32.mxu0 %vm6363_vm0, %v6364_v6  ;;  %v6899_v50 = vld [vmem:[%s8409_s28 + $0x20] sm:$0x3] }
 0x1e4   :  { %v6716_v58 = vpack.c.bf16 %v506_v54, %v501_v51 }
 0x1e5   :  { %v510_v60 = vpop.f32.mrb[18].mxu1  ;;  %5224 = vmatmul.mubr.msk.f32.gmra.mrb[24].mxu0 %vm80_vm1, %v522_v59 }
 0x1e6   :  { %v5206_v61 = vpop.f32.mrb[19].mxu1  ;;  %5902 = vmatpush3.bf16.msra.mxu1 %v6716_v58  ;;  %5910 = vmatpush3.bf16.xpose.msk.msra.mxu0 %vm6660_vm2, %v6674_v18  ;;  %v6728_v63 = vadd.f32 %v510_v60, %v423_v26 }
 0x1e7   :  { %5226 = vmatprep.mubr.msk.f32.mxu0 %vm6363_vm0, %v6364_v6  ;;  %5240 = vmatprep.subr.mxu1 %v6364_v6 }
 0x1e8   :  { %5265 = vmatprep.subr.mxu0 %v6364_v6 }
 0x1e9   :  { %5227 = vmatmul.mubr.msk.f32.gmra.mrb[26].mxu0 %vm80_vm1, %v523_v0 }
 0x1ea   :  { %5241 = vmatpush3.msk.msra.mxu1 %vm717_vm3, %v6728_v63  ;;  %5229 = vmatprep.mubr.msk.f32.mxu0 %vm6363_vm0, %v6364_v6 }
 0x1eb   :  { %5911 = vmatprep.subr.bf16.mxu1 %v6362_v3 }
 0x1ed   :  { %5230 = vmatmul.mubr.msk.f32.gmra.mrb[28].mxu0 %vm80_vm1, %v524_v1 }
 0x1ee   :  { %5266 = vmatpush3.xpose.msk.msra.mxu0 %vm80_vm1, %v6684_v28  ;;  %5267 = vmatprep.mubr.msk.f32.mxu0 %vm6363_vm0, %v6364_v6 }
 0x1ef   :  { %5917 = vmatprep.subr.bf16.mxu0 %v6362_v3 }
 0x1f1   :  { %5268 = vmatmul.mubr.msk.f32.vlgmr.msra.gmra.mrb[30].mxu0 %vm80_vm1, %v827_v7 }
 0x1f2   :  { %5920 = vmatpush3.bf16.xpose.msk.msra.mxu0 %vm6660_vm2, %v6664_v4  ;;  %5270 = vmatprep.mubr.msk.f32.mxu0 %vm6363_vm0, %v6364_v6 }
 0x1f3   :  { %5921 = vmatprep.subr.bf16.mxu0 %v6362_v3 }
 0x1f5   :  { %5271 = vmatmul.mubr.msk.f32.gmra.mrb[32].mxu0 %vm80_vm1, %v828_v8 }
 0x1f6   :  { %5273 = vmatprep.mubr.msk.f32.mxu0 %vm6363_vm0, %v6364_v6 }
 0x1f9   :  { %5274 = vmatmul.mubr.msk.f32.gmra.mrb[34].mxu0 %vm80_vm1, %v829_v9 }
 0x1fa   :  { %5924 = vmatpush3.bf16.xpose.msk.msra.mxu0 %vm6660_vm2, %v6674_v18  ;;  %5276 = vmatprep.mubr.msk.f32.mxu0 %vm6363_vm0, %v6364_v6 }
 0x1fb   :  { %5315 = vmatprep.subr.mxu0 %v6364_v6 }
 0x1fd   :  { %5277 = vmatmul.mubr.msk.f32.gmra.mrb[36].mxu0 %vm80_vm1, %v830_v11 }
 0x1fe   :  { %5279 = vmatprep.mubr.msk.f32.mxu0 %vm6363_vm0, %v6364_v6 }
 0x201   :  { %5280 = vmatmul.mubr.msk.f32.gmra.mrb[38].mxu0 %vm80_vm1, %v831_v12 }
 0x202   :  { %5316 = vmatpush3.xpose.msk.msra.mxu0 %vm80_vm1, %v6684_v28  ;;  %5317 = vmatprep.mubr.msk.f32.mxu0 %vm6363_vm0, %v6364_v6 }
 0x203   :  { %5931 = vmatprep.subr.bf16.mxu0 %v6362_v3 }
 0x205   :  { %5318 = vmatmul.mubr.msk.f32.vlgmr.msra.gmra.mrb[40].mxu0 %vm80_vm1, %v1113_v14 }
 0x206   :  { %5934 = vmatpush3.bf16.xpose.msk.msra.mxu0 %vm6660_vm2, %v6664_v4  ;;  %5320 = vmatprep.mubr.msk.f32.mxu0 %vm6363_vm0, %v6364_v6  ;;  %v1116_v4 = vmul.f32 %v6784_v13, %v6714_v56 }
 0x207   :  { %5935 = vmatprep.subr.bf16.mxu0 %v6362_v3 }
 0x209   :  { %5321 = vmatmul.mubr.msk.f32.gmra.mrb[42].mxu0 %vm80_vm1, %v1114_v15 }
 0x20a   :  { %5323 = vmatprep.mubr.msk.f32.mxu0 %vm6363_vm0, %v6364_v6 }
 0x20d   :  { %5324 = vmatmul.mubr.msk.f32.gmra.mrb[44].mxu0 %vm80_vm1, %v1115_v16 }
 0x20e   :  { %5938 = vmatpush3.bf16.xpose.msk.msra.mxu0 %vm6660_vm2, %v6674_v18  ;;  %5326 = vmatprep.mubr.msk.f32.mxu0 %vm6363_vm0, %v6364_v6  ;;  %v6825_v18 = vld [vmem:[%s8408_s21 + $0x3] ss:$0 sm:$0xff] }
 0x20f   :  { %5365 = vmatprep.subr.mxu0 %v6364_v6  ;;  %v1399_v19 = vmul.f32 %v6825_v18, %v6686_v30  ;;  %v1400_v20 = vmul.f32 %v6825_v18, %v6694_v39  ;;  %v1401_v21 = vmul.f32 %v6825_v18, %v6706_v46  ;;  %v1402_v23 = vmul.f32 %v6825_v18, %v6714_v56  ;;  %v6869_v30 = vld [vmem:[%s8409_s28 + $0x8] sm:$0xff] }
 0x210   :  { %v1403_v24 = vmul.f32 %v6825_v18, %v6726_v62 }
 0x211   :  { %5327 = vmatmul.mubr.msk.f32.gmra.mrb[46].mxu0 %vm80_vm1, %v1116_v4 }
 0x212   :  { %5329 = vmatprep.mubr.msk.f32.mxu0 %vm6363_vm0, %v6364_v6 }
 0x215   :  { %5330 = vmatmul.mubr.msk.f32.gmra.mrb[48].mxu0 %vm80_vm1, %v1117_v17 }
 0x216   :  { %5366 = vmatpush3.xpose.msk.msra.mxu0 %vm80_vm1, %v6684_v28  ;;  %5367 = vmatprep.mubr.msk.f32.mxu0 %vm6363_vm0, %v6364_v6 }
 0x217   :  { %5945 = vmatprep.subr.bf16.mxu0 %v6362_v3 }
 0x219   :  { %5368 = vmatmul.mubr.msk.f32.vlgmr.msra.gmra.mrb[50].mxu0 %vm80_vm1, %v1399_v19 }
 0x21a   :  { %5370 = vmatprep.mubr.msk.f32.mxu0 %vm6363_vm0, %v6364_v6 }
 0x21d   :  { %5371 = vmatmul.mubr.msk.f32.gmra.mrb[52].mxu0 %vm80_vm1, %v1400_v20 }
 0x21e   :  { %5373 = vmatprep.mubr.msk.f32.mxu0 %vm6363_vm0, %v6364_v6 }
 0x221   :  { %5374 = vmatmul.mubr.msk.f32.gmra.mrb[54].mxu0 %vm80_vm1, %v1401_v21 }
 0x222   :  { %5376 = vmatprep.mubr.msk.f32.mxu0 %vm6363_vm0, %v6364_v6 }
 0x225   :  { %5377 = vmatmul.mubr.msk.f32.gmra.mrb[56].mxu0 %vm80_vm1, %v1402_v23 }
 0x226   :  { %5379 = vmatprep.mubr.msk.f32.mxu0 %vm6363_vm0, %v6364_v6 }
 0x229   :  { %5380 = vmatmul.mubr.msk.f32.gmra.mrb[58].mxu0 %vm80_vm1, %v1403_v24 }
 0x22a   :  { %5415 = vmatprep.mubr.msk.f32.mxu0 %vm6363_vm0, %v6364_v6 }
 0x2b0   :  { %v621_v26 = vpop.f32.mrb[20].mxu0 }
 0x2b1   :  { %v6864_v27 = vadd.f32 %v621_v26, %v6861_v25  ;;  %v5219_v28 = vpop.f32.mrb[21].mxu0 }
 0x2b3   :  { %v646_v31 = vsel %vm645_vm4, %v6864_v27, -inf }
 0x2b4   :  { %647 = vmax.xlane.f32.xlu0 %v646_v31  ;;  %v626_v32 = vpop.f32.mrb[22].mxu0 }
 0x2b5   :  { %v6874_v33 = vadd.f32 %v626_v32, %v6869_v30  ;;  %v5222_v34 = vpop.f32.mrb[23].mxu0 }
 0x2b7   :  { %v649_v37 = vsel %vm645_vm4, %v6874_v33, -inf }
 0x2b8   :  { %650 = vmax.xlane.f32.xlu0 %v649_v37  ;;  %v631_v38 = vpop.f32.mrb[24].mxu0 }
 0x2b9   :  { %v6884_v39 = vadd.f32 %v631_v38, %v6879_v35  ;;  %v5225_v40 = vpop.f32.mrb[25].mxu0 }
 0x2bb   :  { %v652_v44 = vsel %vm645_vm4, %v6884_v39, -inf }
 0x2bc   :  { %653 = vmax.xlane.f32.xlu1 %v652_v44  ;;  %v636_v46 = vpop.f32.mrb[26].mxu0 }
 0x2bd   :  { %v6894_v47 = vadd.f32 %v636_v46, %v6889_v43  ;;  %v5228_v48 = vpop.f32.mrb[27].mxu0 }
 0x2bf   :  { %v655_v51 = vsel %vm645_vm4, %v6894_v47, -inf }
 0x2c0   :  { %656 = vmax.xlane.f32.xlu1 %v655_v51  ;;  %v641_v54 = vpop.f32.mrb[28].mxu0 }
 0x2c1   :  { %v6904_v55 = vadd.f32 %v641_v54, %v6899_v50  ;;  %v5231_v56 = vpop.f32.mrb[29].mxu0 }
 0x2c3   :  { %v659_v57 = vsel %vm658_vm5, %v6904_v55, -inf }
 0x2c4   :  { %660 = vmax.xlane.f32.xlu0 %v659_v57  ;;  %v913_v59 = vpop.f32.mrb[30].mxu0 }
 0x2c5   :  { %v6909_v60 = vadd.f32 %v913_v59, %v6861_v25  ;;  %v5269_v61 = vpop.f32.mrb[31].mxu0 }
 0x2c7   :  { %v937_v62 = vsel %vm645_vm4, %v6909_v60, -inf }
 0x2c8   :  { %938 = vmax.xlane.f32.xlu1 %v937_v62  ;;  %v918_v0 = vpop.f32.mrb[32].mxu0 }
 0x2c9   :  { %v6914_v1 = vadd.f32 %v918_v0, %v6869_v30  ;;  %v5272_v7 = vpop.f32.mrb[33].mxu0 }
 0x2cb   :  { %v940_v8 = vsel %vm645_vm4, %v6914_v1, -inf }
 0x2cc   :  { %941 = vmax.xlane.f32.xlu0 %v940_v8  ;;  %v923_v9 = vpop.f32.mrb[34].mxu0 }
 0x2cd   :  { %v6919_v11 = vadd.f32 %v923_v9, %v6879_v35  ;;  %v5275_v12 = vpop.f32.mrb[35].mxu0 }
 0x2cf   :  { %v943_v14 = vsel %vm645_vm4, %v6919_v11, -inf }
 0x2d0   :  { %944 = vmax.xlane.f32.xlu1 %v943_v14  ;;  %v928_v15 = vpop.f32.mrb[36].mxu0 }
 0x2d1   :  { %v6924_v16 = vadd.f32 %v928_v15, %v6889_v43  ;;  %v5278_v4 = vpop.f32.mrb[37].mxu0 }
 0x2d3   :  { %v946_v17 = vsel %vm645_vm4, %v6924_v16, -inf }
 0x2d4   :  { %947 = vmax.xlane.f32.xlu0 %v946_v17  ;;  %v933_v19 = vpop.f32.mrb[38].mxu0 }
 0x2d5   :  { %v6929_v20 = vadd.f32 %v933_v19, %v6899_v50  ;;  %v5281_v21 = vpop.f32.mrb[39].mxu0 }
 0x2d7   :  { %v949_v23 = vsel %vm658_vm5, %v6929_v20, -inf }
 0x2d8   :  { %950 = vmax.xlane.f32.xlu1 %v949_v23  ;;  %v1199_v24 = vpop.f32.mrb[40].mxu0 }
 0x2d9   :  { %v6934_v26 = vadd.f32 %v1199_v24, %v6861_v25  ;;  %v5319_v28 = vpop.f32.mrb[41].mxu0 }
 0x2db   :  { %v1223_v31 = vsel %vm645_vm4, %v6934_v26, -inf }
 0x2dc   :  { %1224 = vmax.xlane.f32.xlu0 %v1223_v31  ;;  %v1204_v32 = vpop.f32.mrb[42].mxu0 }
 0x2dd   :  { %v6939_v34 = vadd.f32 %v1204_v32, %v6869_v30  ;;  %v5322_v37 = vpop.f32.mrb[43].mxu0 }
 0x2df   :  { %v1226_v38 = vsel %vm645_vm4, %v6939_v34, -inf }
 0x2e0   :  { %1227 = vmax.xlane.f32.xlu1 %v1226_v38  ;;  %v1209_v40 = vpop.f32.mrb[44].mxu0 }
 0x2e1   :  { %v6944_v44 = vadd.f32 %v1209_v40, %v6879_v35  ;;  %v5325_v46 = vpop.f32.mrb[45].mxu0 }
 0x2e3   :  { %v1229_v48 = vsel %vm645_vm4, %v6944_v44, -inf }
 0x2e4   :  { %1230 = vmax.xlane.f32.xlu0 %v1229_v48  ;;  %v1214_v51 = vpop.f32.mrb[46].mxu0 }
 0x2e5   :  { %v6949_v54 = vadd.f32 %v1214_v51, %v6889_v43  ;;  %v5328_v56 = vpop.f32.mrb[47].mxu0 }
 0x2e7   :  { %v1232_v57 = vsel %vm645_vm4, %v6949_v54, -inf }
 0x2e8   :  { %1233 = vmax.xlane.f32.xlu1 %v1232_v57  ;;  %v1219_v59 = vpop.f32.mrb[48].mxu0 }
 0x2e9   :  { %v6954_v61 = vadd.f32 %v1219_v59, %v6899_v50  ;;  %v5331_v62 = vpop.f32.mrb[49].mxu0 }
 0x2eb   :  { %v1235_v0 = vsel %vm658_vm5, %v6954_v61, -inf }
 0x2ec   :  { %1236 = vmax.xlane.f32.xlu0 %v1235_v0  ;;  %v1485_v7 = vpop.f32.mrb[50].mxu0 }
 0x2ed   :  { %v6959_v8 = vadd.f32 %v1485_v7, %v6861_v25  ;;  %v5369_v9 = vpop.f32.mrb[51].mxu0 }
 0x2ef   :  { %v1509_v12 = vsel %vm645_vm4, %v6959_v8, -inf }
 0x2f0   :  { %1510 = vmax.xlane.f32.xlu1 %v1509_v12  ;;  %v1490_v14 = vpop.f32.mrb[52].mxu0 }
 0x2f1   :  { %v6964_v15 = vadd.f32 %v1490_v14, %v6869_v30  ;;  %v5372_v4 = vpop.f32.mrb[53].mxu0 }
 0x2f3   :  { %v1512_v17 = vsel %vm645_vm4, %v6964_v15, -inf }
 0x2f4   :  { %1513 = vmax.xlane.f32.xlu0 %v1512_v17  ;;  %v1495_v19 = vpop.f32.mrb[54].mxu0 }
 0x2f5   :  { %v6969_v21 = vadd.f32 %v1495_v19, %v6879_v35  ;;  %v5375_v25 = vpop.f32.mrb[55].mxu0 }
 0x2f7   :  { %v1515_v23 = vsel %vm645_vm4, %v6969_v21, -inf }
 0x2f8   :  { %1516 = vmax.xlane.f32.xlu1 %v1515_v23  ;;  %v1500_v24 = vpop.f32.mrb[56].mxu0 }
 0x2f9   :  { %v6974_v28 = vadd.f32 %v1500_v24, %v6889_v43  ;;  %v5378_v30 = vpop.f32.mrb[57].mxu0 }
 0x2fb   :  { %v1518_v31 = vsel %vm645_vm4, %v6974_v28, -inf }
 0x2fc   :  { %1519 = vmax.xlane.f32.xlu0 %v1518_v31  ;;  %v1505_v32 = vpop.f32.mrb[58].mxu0 }
 0x2fd   :  { %v6979_v37 = vadd.f32 %v1505_v32, %v6899_v50  ;;  %v5381_v35 = vpop.f32.mrb[59].mxu0 }
 0x2ff   :  { %v1521_v38 = vsel %vm658_vm5, %v6979_v37, -inf }
 0x300   :  { %1522 = vmax.xlane.f32.xlu1 %v1521_v38 }
 0x341   :  { %v648_v40 = vpop.xlane.xlu0 %647 }
 0x342   :  { %v662_v46 = vsub.f32 %v6864_v27, %v648_v40 }
 0x344   :  { %v667_v48 = vmul.f32 1.442695, %v662_v46 }
 0x345   :  { %v651_v43 = vpop.xlane.xlu0 %650 }
 0x346   :  { %6092 = vpow2.f32 %v667_v48  ;;  %v663_v51 = vsub.f32 %v6874_v33, %v651_v43 }
 0x348   :  { %v669_v56 = vmul.f32 1.442695, %v663_v51 }
 0x349   :  { %v654_v57 = vpop.xlane.xlu1 %653 }
 0x34a   :  { %6094 = vpow2.f32 %v669_v56  ;;  %v664_v59 = vsub.f32 %v6884_v39, %v654_v57 }
 0x34c   :  { %v671_v50 = vmul.f32 1.442695, %v664_v59 }
 0x34d   :  { %v657_v62 = vpop.xlane.xlu1 %656 }
 0x34e   :  { %6096 = vpow2.f32 %v671_v50  ;;  %v665_v0 = vsub.f32 %v6894_v47, %v657_v62 }
 0x350   :  { %v6987_v7 = vpop.eup %6092  ;;  %v673_v9 = vmul.f32 1.442695, %v665_v0 }
 0x351   :  { %v661_v12 = vpop.xlane.xlu0 %660  ;;  %v677_v27 = vsel %vm645_vm4, %v6987_v7, 0.0 }
 0x352   :  { %6098 = vpow2.f32 %v673_v9  ;;  %v666_v33 = vsub.f32 %v6904_v55, %v661_v12  ;;  %678 = vadd.xlane.f32.xlu0 %v677_v27 }
 0x354   :  { %v6992_v14 = vpop.eup %6094  ;;  %v675_v4 = vmul.f32 1.442695, %v666_v33 }
 0x355   :  { %v939_v39 = vpop.xlane.xlu1 %938  ;;  %v680_v17 = vsel %vm645_vm4, %v6992_v14, 0.0 }
 0x356   :  { %6100 = vpow2.f32 %v675_v4  ;;  %v952_v47 = vsub.f32 %v6909_v60, %v939_v39  ;;  %681 = vadd.xlane.f32.xlu1 %v680_v17 }
 0x358   :  { %v6997_v19 = vpop.eup %6096  ;;  %v957_v25 = vmul.f32 1.442695, %v952_v47 }
 0x359   :  { %v942_v23 = vpop.xlane.xlu0 %941  ;;  %v683_v24 = vsel %vm645_vm4, %v6997_v19, 0.0 }
 0x35a   :  { %6102 = vpow2.f32 %v957_v25  ;;  %v953_v55 = vsub.f32 %v6914_v1, %v942_v23  ;;  %684 = vadd.xlane.f32.xlu0 %v683_v24 }
 0x35c   :  { %v7002_v30 = vpop.eup %6098  ;;  %v959_v31 = vmul.f32 1.442695, %v953_v55 }
 0x35d   :  { %v945_v32 = vpop.xlane.xlu1 %944  ;;  %v686_v35 = vsel %vm645_vm4, %v7002_v30, 0.0 }
 0x35e   :  { %6104 = vpow2.f32 %v959_v31  ;;  %v954_v60 = vsub.f32 %v6919_v11, %v945_v32  ;;  %687 = vadd.xlane.f32.xlu1 %v686_v35 }
 0x360   :  { %v7007_v38 = vpop.eup %6100  ;;  %v961_v40 = vmul.f32 1.442695, %v954_v60 }
 0x361   :  { %v948_v46 = vpop.xlane.xlu0 %947  ;;  %v689_v48 = vsel %vm658_vm5, %v7007_v38, 0.0 }
 0x362   :  { %6106 = vpow2.f32 %v961_v40  ;;  %v955_v1 = vsub.f32 %v6924_v16, %v948_v46  ;;  %690 = vadd.xlane.f32.xlu0 %v689_v48 }
 0x364   :  { %v7012_v43 = vpop.eup %6102  ;;  %v963_v51 = vmul.f32 1.442695, %v955_v1 }
 0x365   :  { %v951_v56 = vpop.xlane.xlu1 %950  ;;  %v967_v57 = vsel %vm645_vm4, %v7012_v43, 0.0 }
 0x366   :  { %6108 = vpow2.f32 %v963_v51  ;;  %v956_v11 = vsub.f32 %v6929_v20, %v951_v56  ;;  %968 = vadd.xlane.f32.xlu1 %v967_v57 }
 0x368   :  { %v7017_v59 = vpop.eup %6104  ;;  %v965_v50 = vmul.f32 1.442695, %v956_v11 }
 0x369   :  { %v1225_v62 = vpop.xlane.xlu0 %1224  ;;  %v970_v0 = vsel %vm645_vm4, %v7017_v59, 0.0 }
 0x36a   :  { %6110 = vpow2.f32 %v965_v50  ;;  %v1238_v16 = vsub.f32 %v6934_v26, %v1225_v62  ;;  %971 = vadd.xlane.f32.xlu0 %v970_v0 }
 0x36c   :  { %v7022_v9 = vpop.eup %6106  ;;  %v1243_v12 = vmul.f32 1.442695, %v1238_v16 }
 0x36d   :  { %v1228_v27 = vpop.xlane.xlu1 %1227  ;;  %v973_v33 = vsel %vm645_vm4, %v7022_v9, 0.0 }
 0x36e   :  { %6112 = vpow2.f32 %v1243_v12  ;;  %v1239_v20 = vsub.f32 %v6939_v34, %v1228_v27  ;;  %974 = vadd.xlane.f32.xlu1 %v973_v33 }
 0x370   :  { %v7027_v4 = vpop.eup %6108  ;;  %v1245_v39 = vmul.f32 1.442695, %v1239_v20 }
 0x371   :  { %v1231_v17 = vpop.xlane.xlu0 %1230  ;;  %v976_v47 = vsel %vm645_vm4, %v7027_v4, 0.0 }
 0x372   :  { %6114 = vpow2.f32 %v1245_v39  ;;  %v1240_v26 = vsub.f32 %v6944_v44, %v1231_v17  ;;  %977 = vadd.xlane.f32.xlu0 %v976_v47 }
 0x374   :  { %v7032_v25 = vpop.eup %6110  ;;  %v1247_v23 = vmul.f32 1.442695, %v1240_v26 }
 0x375   :  { %v1234_v24 = vpop.xlane.xlu1 %1233  ;;  %v979_v55 = vsel %vm658_vm5, %v7032_v25, 0.0 }
 0x376   :  { %6116 = vpow2.f32 %v1247_v23  ;;  %v1241_v34 = vsub.f32 %v6949_v54, %v1234_v24  ;;  %980 = vadd.xlane.f32.xlu1 %v979_v55 }
 0x378   :  { %v7037_v31 = vpop.eup %6112  ;;  %v1249_v32 = vmul.f32 1.442695, %v1241_v34 }
 0x379   :  { %v1237_v35 = vpop.xlane.xlu0 %1236  ;;  %v1253_v60 = vsel %vm645_vm4, %v7037_v31, 0.0 }
 0x37a   :  { %6118 = vpow2.f32 %v1249_v32  ;;  %v1242_v44 = vsub.f32 %v6954_v61, %v1237_v35  ;;  %1254 = vadd.xlane.f32.xlu0 %v1253_v60 }
 0x37c   :  { %v7042_v40 = vpop.eup %6114  ;;  %v1251_v46 = vmul.f32 1.442695, %v1242_v44 }
 0x37d   :  { %v1511_v48 = vpop.xlane.xlu1 %1510  ;;  %v1256_v1 = vsel %vm645_vm4, %v7042_v40, 0.0 }
 0x37e   :  { %6120 = vpow2.f32 %v1251_v46  ;;  %v1524_v54 = vsub.f32 %v6959_v8, %v1511_v48  ;;  %1257 = vadd.xlane.f32.xlu1 %v1256_v1 }
 0x380   :  { %v7047_v51 = vpop.eup %6116  ;;  %v1529_v56 = vmul.f32 1.442695, %v1524_v54 }
 0x381   :  { %v1514_v57 = vpop.xlane.xlu0 %1513  ;;  %v1259_v11 = vsel %vm645_vm4, %v7047_v51, 0.0 }
 0x382   :  { %6122 = vpow2.f32 %v1529_v56  ;;  %v1525_v61 = vsub.f32 %v6964_v15, %v1514_v57  ;;  %1260 = vadd.xlane.f32.xlu0 %v1259_v11 }
 0x384   :  { %v7052_v50 = vpop.eup %6118  ;;  %v1531_v62 = vmul.f32 1.442695, %v1525_v61 }
 0x385   :  { %v1517_v0 = vpop.xlane.xlu1 %1516  ;;  %v1262_v16 = vsel %vm645_vm4, %v7052_v50, 0.0 }
 0x386   :  { %6124 = vpow2.f32 %v1531_v62  ;;  %v1526_v8 = vsub.f32 %v6969_v21, %v1517_v0  ;;  %1263 = vadd.xlane.f32.xlu1 %v1262_v16 }
 0x388   :  { %v7057_v12 = vpop.eup %6120  ;;  %v1533_v27 = vmul.f32 1.442695, %v1526_v8 }
 0x389   :  { %v1520_v33 = vpop.xlane.xlu0 %1519  ;;  %v1265_v20 = vsel %vm658_vm5, %v7057_v12, 0.0 }
 0x38a   :  { %6126 = vpow2.f32 %v1533_v27  ;;  %v1527_v15 = vsub.f32 %v6974_v28, %v1520_v33  ;;  %1266 = vadd.xlane.f32.xlu0 %v1265_v20 }
 0x38c   :  { %v7062_v39 = vpop.eup %6122  ;;  %v1535_v17 = vmul.f32 1.442695, %v1527_v15 }
 0x38d   :  { %v1523_v47 = vpop.xlane.xlu1 %1522  ;;  %v1539_v26 = vsel %vm645_vm4, %v7062_v39, 0.0 }
 0x38e   :  { %6128 = vpow2.f32 %v1535_v17  ;;  %v1528_v21 = vsub.f32 %v6979_v37, %v1523_v47  ;;  %1540 = vadd.xlane.f32.xlu1 %v1539_v26 }
 0x390   :  { %v7067_v23 = vpop.eup %6124  ;;  %v1537_v24 = vmul.f32 1.442695, %v1528_v21 }
 0x391   :  { %v1542_v55 = vsel %vm645_vm4, %v7067_v23, 0.0 }
 0x392   :  { %6130 = vpow2.f32 %v1537_v24  ;;  %1543 = vadd.xlane.f32.xlu0 %v1542_v55 }
 0x394   :  { %v7071_v28 = vpop.eup %6126 }
 0x395   :  { %v1545_v34 = vsel %vm645_vm4, %v7071_v28, 0.0 }
 0x396   :  { %1546 = vadd.xlane.f32.xlu1 %v1545_v34 }
 0x398   :  { %v7075_v32 = vpop.eup %6128 }
 0x399   :  { %v1548_v37 = vsel %vm645_vm4, %v7075_v32, 0.0 }
 0x39a   :  { %1549 = vadd.xlane.f32.xlu0 %v1548_v37 }
 0x39c   :  { %v7079_v35 = vpop.eup %6130 }
 0x39d   :  { %v1551_v60 = vsel %vm658_vm5, %v7079_v35, 0.0 }
 0x39e   :  { %1552 = vadd.xlane.f32.xlu1 %v1551_v60 }
 0x3df   :  { %v679_v44 = vpop.xlane.xlu0 %678 }
 0x3e0   :  { %6132 = vrcp.f32 %v679_v44 }
 0x3e3   :  { %v682_v46 = vpop.xlane.xlu1 %681 }
 0x3e4   :  { %6134 = vrcp.f32 %v682_v46 }
 0x3e7   :  { %v685_v48 = vpop.xlane.xlu0 %684 }
 0x3e8   :  { %6136 = vrcp.f32 %v685_v48 }
 0x3ea   :  { %v6133_v1 = vpop.eup %6132 }
 0x3eb   :  { %v697_v54 = vmul.f32 %v6133_v1, %v6987_v7  ;;  %v688_v56 = vpop.xlane.xlu1 %687 }
 0x3ec   :  { %6138 = vrcp.f32 %v688_v56 }
 0x3ed   :  { %5243 = vmatmul.mubr.msk.f32.vlgmr.msra.gmra.mrb[20].mxu1 %vm645_vm4, %v697_v54 }
 0x3ee   :  { %v6135_v57 = vpop.eup %6134  ;;  %5913 = vmatpush3.bf16.msra.mxu1 %v6696_v42  ;;  %5245 = vmatprep.mubr.msk.f32.mxu1 %vm6363_vm0, %v6364_v6 }
 0x3ef   :  { %v691_v11 = vpop.xlane.xlu0 %690  ;;  %5914 = vmatprep.subr.bf16.mxu1 %v6362_v3  ;;  %v698_v61 = vmul.f32 %v6135_v57, %v6992_v14 }
 0x3f0   :  { %6140 = vrcp.f32 %v691_v11 }
 0x3f1   :  { %5246 = vmatmul.mubr.msk.f32.gmra.mrb[22].mxu1 %vm645_vm4, %v698_v61 }
 0x3f2   :  { %v6137_v62 = vpop.eup %6136  ;;  %5916 = vmatpush3.bf16.msra.mxu1 %v6716_v58  ;;  %5248 = vmatprep.mubr.msk.f32.mxu1 %vm6363_vm0, %v6364_v6 }
 0x3f3   :  { %v969_v7 = vpop.xlane.xlu1 %968  ;;  %5290 = vmatprep.subr.mxu1 %v6364_v6  ;;  %v699_v0 = vmul.f32 %v6137_v62, %v6997_v19 }
 0x3f4   :  { %6142 = vrcp.f32 %v969_v7 }
 0x3f5   :  { %5249 = vmatmul.mubr.msk.f32.gmra.mrb[24].mxu1 %vm645_vm4, %v699_v0 }
 0x3f6   :  { %v6139_v16 = vpop.eup %6138  ;;  %5291 = vmatpush3.msk.msra.mxu1 %vm717_vm3, %v6728_v63  ;;  %5251 = vmatprep.mubr.msk.f32.mxu1 %vm6363_vm0, %v6364_v6 }
 0x3f7   :  { %v972_v14 = vpop.xlane.xlu0 %971  ;;  %v700_v8 = vmul.f32 %v6139_v16, %v7002_v30  ;;  %5925 = vmatprep.subr.bf16.mxu1 %v6362_v3 }
 0x3f8   :  { %6144 = vrcp.f32 %v972_v14 }
 0x3f9   :  { %5252 = vmatmul.mubr.msk.f32.gmra.mrb[26].mxu1 %vm645_vm4, %v700_v8 }
 0x3fa   :  { %v6141_v27 = vpop.eup %6140  ;;  %5254 = vmatprep.mubr.msk.f32.mxu1 %vm6363_vm0, %v6364_v6 }
 0x3fb   :  { %v975_v19 = vpop.xlane.xlu1 %974  ;;  %v701_v33 = vmul.f32 %v6141_v27, %v7007_v38  ;;  %v1682_v27 = vld [vmem:[%s8381_s9 + $0x18] sm:$0xff] }
 0x3fc   :  { %6146 = vrcp.f32 %v975_v19 }
 0x3fd   :  { %5255 = vmatmul.mubr.msk.f32.gmra.mrb[28].mxu1 %vm645_vm4, %v701_v33 }
 0x3fe   :  { %v6143_v20 = vpop.eup %6142  ;;  %5292 = vmatprep.mubr.msk.f32.mxu1 %vm6363_vm0, %v6364_v6 }
 0x3ff   :  { %v987_v30 = vmul.f32 %v6143_v20, %v7012_v43  ;;  %v978_v15 = vpop.xlane.xlu0 %977 }
 0x400   :  { %6148 = vrcp.f32 %v978_v15 }
 0x401   :  { %5293 = vmatmul.mubr.msk.f32.vlgmr.msra.gmra.mrb[30].mxu1 %vm645_vm4, %v987_v30 }
 0x402   :  { %v6145_v17 = vpop.eup %6144  ;;  %5927 = vmatpush3.bf16.msra.mxu1 %v6696_v42  ;;  %5295 = vmatprep.mubr.msk.f32.mxu1 %vm6363_vm0, %v6364_v6 }
 0x403   :  { %v981_v38 = vpop.xlane.xlu1 %980  ;;  %5928 = vmatprep.subr.bf16.mxu1 %v6362_v3  ;;  %v988_v47 = vmul.f32 %v6145_v17, %v7017_v59 }
 0x404   :  { %6150 = vrcp.f32 %v981_v38 }
 0x405   :  { %5296 = vmatmul.mubr.msk.f32.gmra.mrb[32].mxu1 %vm645_vm4, %v988_v47 }
 0x406   :  { %v6147_v26 = vpop.eup %6146  ;;  %5930 = vmatpush3.bf16.msra.mxu1 %v6716_v58  ;;  %5298 = vmatprep.mubr.msk.f32.mxu1 %vm6363_vm0, %v6364_v6 }
 0x407   :  { %v1255_v43 = vpop.xlane.xlu0 %1254  ;;  %5340 = vmatprep.subr.mxu1 %v6364_v6  ;;  %v989_v21 = vmul.f32 %v6147_v26, %v7022_v9 }
 0x408   :  { %6152 = vrcp.f32 %v1255_v43 }
 0x409   :  { %5299 = vmatmul.mubr.msk.f32.gmra.mrb[34].mxu1 %vm645_vm4, %v989_v21 }
 0x40a   :  { %v6149_v24 = vpop.eup %6148  ;;  %5341 = vmatpush3.msk.msra.mxu1 %vm717_vm3, %v6728_v63  ;;  %5301 = vmatprep.mubr.msk.f32.mxu1 %vm6363_vm0, %v6364_v6 }
 0x40b   :  { %v1258_v59 = vpop.xlane.xlu1 %1257  ;;  %v990_v55 = vmul.f32 %v6149_v24, %v7027_v4  ;;  %5939 = vmatprep.subr.bf16.mxu1 %v6362_v3 }
 0x40c   :  { %6154 = vrcp.f32 %v1258_v59  ;;  %v7201_v59 = vld [vmem:[%s8408_s21] ss:$0 sm:$0xff] }
 0x40d   :  { %5302 = vmatmul.mubr.msk.f32.gmra.mrb[36].mxu1 %vm645_vm4, %v990_v55 }
 0x40e   :  { %v6151_v34 = vpop.eup %6150  ;;  %5304 = vmatprep.mubr.msk.f32.mxu1 %vm6363_vm0, %v6364_v6 }
 0x40f   :  { %v1261_v9 = vpop.xlane.xlu0 %1260  ;;  %v991_v37 = vmul.f32 %v6151_v34, %v7032_v25 }
 0x410   :  { %6156 = vrcp.f32 %v1261_v9 }
 0x411   :  { %5305 = vmatmul.mubr.msk.f32.gmra.mrb[38].mxu1 %vm645_vm4, %v991_v37 }
 0x412   :  { %v6153_v60 = vpop.eup %6152  ;;  %5342 = vmatprep.mubr.msk.f32.mxu1 %vm6363_vm0, %v6364_v6 }
 0x413   :  { %v1273_v4 = vmul.f32 %v6153_v60, %v7037_v31  ;;  %v1264_v44 = vpop.xlane.xlu1 %1263 }
 0x414   :  { %6158 = vrcp.f32 %v1264_v44 }
 0x415   :  { %5343 = vmatmul.mubr.msk.f32.vlgmr.msra.gmra.mrb[40].mxu1 %vm645_vm4, %v1273_v4 }
 0x416   :  { %v6155_v46 = vpop.eup %6154  ;;  %5941 = vmatpush3.bf16.msra.mxu1 %v6696_v42  ;;  %5345 = vmatprep.mubr.msk.f32.mxu1 %vm6363_vm0, %v6364_v6 }
 0x417   :  { %v1267_v25 = vpop.xlane.xlu0 %1266  ;;  %5942 = vmatprep.subr.bf16.mxu1 %v6362_v3  ;;  %v1274_v48 = vmul.f32 %v6155_v46, %v7042_v40 }
 0x418   :  { %6160 = vrcp.f32 %v1267_v25 }
 0x419   :  { %5346 = vmatmul.mubr.msk.f32.gmra.mrb[42].mxu1 %vm645_vm4, %v1274_v48 }
 0x41a   :  { %v6157_v1 = vpop.eup %6156  ;;  %5944 = vmatpush3.bf16.msra.mxu1 %v6716_v58  ;;  %5348 = vmatprep.mubr.msk.f32.mxu1 %vm6363_vm0, %v6364_v6 }
 0x41b   :  { %v1541_v31 = vpop.xlane.xlu1 %1540  ;;  %5390 = vmatprep.subr.mxu1 %v6364_v6  ;;  %v1275_v42 = vmul.f32 %v6157_v1, %v7047_v51 }
 0x41c   :  { %6162 = vrcp.f32 %v1541_v31 }
 0x41d   :  { %5349 = vmatmul.mubr.msk.f32.gmra.mrb[44].mxu1 %vm645_vm4, %v1275_v42 }
 0x41e   :  { %v6159_v54 = vpop.eup %6158  ;;  %5391 = vmatpush3.msk.msra.mxu1 %vm717_vm3, %v6728_v63  ;;  %5351 = vmatprep.mubr.msk.f32.mxu1 %vm6363_vm0, %v6364_v6 }
 0x41f   :  { %v1544_v40 = vpop.xlane.xlu0 %1543  ;;  %v1276_v58 = vmul.f32 %v6159_v54, %v7052_v50  ;;  %5951 = vmatprep.subr.bf16.mxu1 %v6362_v3 }
 0x420   :  { %6164 = vrcp.f32 %v1544_v40 }
 0x421   :  { %5352 = vmatmul.mubr.msk.f32.gmra.mrb[46].mxu1 %vm645_vm4, %v1276_v58 }
 0x422   :  { %v6161_v56 = vpop.eup %6160  ;;  %5354 = vmatprep.mubr.msk.f32.mxu1 %vm6363_vm0, %v6364_v6 }
 0x423   :  { %v1547_v51 = vpop.xlane.xlu1 %1546  ;;  %v1277_v57 = vmul.f32 %v6161_v56, %v7057_v12 }
 0x424   :  { %6166 = vrcp.f32 %v1547_v51 }
 0x425   :  { %5355 = vmatmul.mubr.msk.f32.gmra.mrb[48].mxu1 %vm645_vm4, %v1277_v57 }
 0x426   :  { %v6163_v63 = vpop.eup %6162  ;;  %5392 = vmatprep.mubr.msk.f32.mxu1 %vm6363_vm0, %v6364_v6 }
 0x427   :  { %v1559_v50 = vmul.f32 %v6163_v63, %v7062_v39  ;;  %v1550_v11 = vpop.xlane.xlu0 %1549 }
 0x428   :  { %6168 = vrcp.f32 %v1550_v11 }
 0x429   :  { %5393 = vmatmul.mubr.msk.f32.vlgmr.msra.gmra.mrb[50].mxu1 %vm645_vm4, %v1559_v50 }
 0x42a   :  { %v6165_v61 = vpop.eup %6164  ;;  %5395 = vmatprep.mubr.msk.f32.mxu1 %vm6363_vm0, %v6364_v6 }
 0x42b   :  { %v1553_v62 = vpop.xlane.xlu1 %1552  ;;  %v1560_v12 = vmul.f32 %v6165_v61, %v7067_v23 }
 0x42c   :  { %6170 = vrcp.f32 %v1553_v62 }
 0x42d   :  { %5396 = vmatmul.mubr.msk.f32.gmra.mrb[52].mxu1 %vm645_vm4, %v1560_v12 }
 0x42e   :  { %v6167_v7 = vpop.eup %6166  ;;  %5398 = vmatprep.mubr.msk.f32.mxu1 %vm6363_vm0, %v6364_v6 }
 0x42f   :  { %v1561_v39 = vmul.f32 %v6167_v7, %v7071_v28  ;;  %v1679_v28 = vld [vmem:[%s8381_s9] sm:$0xff] }
 0x431   :  { %5399 = vmatmul.mubr.msk.f32.gmra.mrb[54].mxu1 %vm645_vm4, %v1561_v39 }
 0x432   :  { %v6169_v0 = vpop.eup %6168  ;;  %5401 = vmatprep.mubr.msk.f32.mxu1 %vm6363_vm0, %v6364_v6 }
 0x433   :  { %v1562_v16 = vmul.f32 %v6169_v0, %v7075_v32  ;;  %v1680_v32 = vld [vmem:[%s8381_s9 + $0x8] sm:$0xff] }
 0x434   :  { %v5946_v8 = vpack.c.bf16 %v1680_v32, %v1679_v28 }
 0x435   :  { %5402 = vmatmul.mubr.msk.f32.gmra.mrb[56].mxu1 %vm645_vm4, %v1562_v16 }
 0x436   :  { %v6171_v23 = vpop.eup %6170  ;;  %5404 = vmatprep.mubr.msk.f32.mxu1 %vm6363_vm0, %v6364_v6  ;;  %5947 = vmatpush3.bf16.msra.mxu0 %v5946_v8 }
 0x437   :  { %v1563_v14 = vmul.f32 %v6171_v23, %v7079_v35  ;;  %5948 = vmatprep.subr.bf16.mxu0 %v6362_v3  ;;  %v1681_v35 = vld [vmem:[%s8381_s9 + $0x10] sm:$0xff] }
 0x438   :  { %v5949_v19 = vpack.c.bf16 %v1682_v27, %v1681_v35 }
 0x439   :  { %5405 = vmatmul.mubr.msk.f32.gmra.mrb[58].mxu1 %vm645_vm4, %v1563_v14 }
 0x43a   :  { %5438 = vmatprep.mubr.msk.f32.mxu1 %vm6363_vm0, %v6364_v6  ;;  %5950 = vmatpush3.bf16.msra.mxu0 %v5949_v19 }
 0x43b   :  { %5957 = vmatprep.subr.bf16.mxu0 %v6362_v3 }
 0x4c0   :  { %v787_v33 = vpop.f32.mrb[20].mxu1 }
 0x4c1   :  { %v5244_v20 = vpop.f32.mrb[21].mxu1  ;;  %v811_v55 = vmul.f32 %v7201_v59, %v787_v33 }
 0x4c4   :  { %v792_v30 = vpop.f32.mrb[22].mxu1 }
 0x4c5   :  { %v5247_v15 = vpop.f32.mrb[23].mxu1  ;;  %v812_v4 = vmul.f32 %v7201_v59, %v792_v30 }
 0x4c8   :  { %v797_v17 = vpop.f32.mrb[24].mxu1 }
 0x4c9   :  { %v5250_v38 = vpop.f32.mrb[25].mxu1  ;;  %v813_v1 = vmul.f32 %v7201_v59, %v797_v17 }
 0x4cc   :  { %v802_v47 = vpop.f32.mrb[26].mxu1 }
 0x4cd   :  { %v5253_v26 = vpop.f32.mrb[27].mxu1  ;;  %v814_v58 = vmul.f32 %v7201_v59, %v802_v47 }
 0x4d0   :  { %v807_v43 = vpop.f32.mrb[28].mxu1 }
 0x4d1   :  { %v5256_v21 = vpop.f32.mrb[29].mxu1  ;;  %v815_v50 = vmul.f32 %v7201_v59, %v807_v43 }
 0x4d4   :  { %v1073_v24 = vpop.f32.mrb[30].mxu1 }
 0x4d5   :  { %v1097_v34 = vmul.f32 %v6743_v5, %v1073_v24  ;;  %v5294_v9 = vpop.f32.mrb[31].mxu1 }
 0x4d7   :  { %v1102_v37 = vadd.f32 %v1097_v34, %v811_v55 }
 0x4d8   :  { %v1078_v60 = vpop.f32.mrb[32].mxu1 }
 0x4d9   :  { %v1098_v44 = vmul.f32 %v6743_v5, %v1078_v60  ;;  %v5297_v46 = vpop.f32.mrb[33].mxu1 }
 0x4db   :  { %v1103_v25 = vadd.f32 %v1098_v44, %v812_v4 }
 0x4dc   :  { %v1083_v48 = vpop.f32.mrb[34].mxu1 }
 0x4dd   :  { %v1099_v31 = vmul.f32 %v6743_v5, %v1083_v48  ;;  %v5300_v42 = vpop.f32.mrb[35].mxu1 }
 0x4df   :  { %v1104_v54 = vadd.f32 %v1099_v31, %v813_v1 }
 0x4e0   :  { %v1088_v40 = vpop.f32.mrb[36].mxu1 }
 0x4e1   :  { %v1100_v56 = vmul.f32 %v6743_v5, %v1088_v40  ;;  %v5303_v51 = vpop.f32.mrb[37].mxu1  ;;  %v1685_v40 = vsub.s32 3, %v6649_v52 }
 0x4e3   :  { %v1105_v57 = vadd.f32 %v1100_v56, %v814_v58  ;;  %v7242_v58 = vld [vmem:[%s8385_s13] sm:$0xff] }
 0x4e4   :  { %v1093_v63 = vpop.f32.mrb[38].mxu1 }
 0x4e5   :  { %v1101_v11 = vmul.f32 %v6743_v5, %v1093_v63  ;;  %v5306_v61 = vpop.f32.mrb[39].mxu1 }
 0x4e7   :  { %v1106_v62 = vadd.f32 %v1101_v11, %v815_v50 }
 0x4e8   :  { %v1359_v12 = vpop.f32.mrb[40].mxu1 }
 0x4e9   :  { %v1383_v7 = vmul.f32 %v6784_v13, %v1359_v12  ;;  %v5344_v39 = vpop.f32.mrb[41].mxu1 }
 0x4eb   :  { %v1388_v0 = vadd.f32 %v1383_v7, %v1102_v37 }
 0x4ec   :  { %v1364_v16 = vpop.f32.mrb[42].mxu1 }
 0x4ed   :  { %v1384_v23 = vmul.f32 %v6784_v13, %v1364_v16  ;;  %v5347_v14 = vpop.f32.mrb[43].mxu1 }
 0x4ef   :  { %v1389_v28 = vadd.f32 %v1384_v23, %v1103_v25 }
 0x4f0   :  { %v1369_v32 = vpop.f32.mrb[44].mxu1 }
 0x4f1   :  { %v1385_v8 = vmul.f32 %v6784_v13, %v1369_v32  ;;  %v5350_v35 = vpop.f32.mrb[45].mxu1 }
 0x4f3   :  { %v1390_v27 = vadd.f32 %v1385_v8, %v1104_v54 }
 0x4f4   :  { %v1374_v19 = vpop.f32.mrb[46].mxu1 }
 0x4f5   :  { %v1386_v5 = vmul.f32 %v6784_v13, %v1374_v19  ;;  %v5353_v33 = vpop.f32.mrb[47].mxu1 }
 0x4f7   :  { %v1391_v20 = vadd.f32 %v1386_v5, %v1105_v57 }
 0x4f8   :  { %v1379_v30 = vpop.f32.mrb[48].mxu1 }
 0x4f9   :  { %v1387_v15 = vmul.f32 %v6784_v13, %v1379_v30  ;;  %v5356_v17 = vpop.f32.mrb[49].mxu1 }
 0x4fb   :  { %v1392_v38 = vadd.f32 %v1387_v15, %v1106_v62 }
 0x4fc   :  { %v1645_v47 = vpop.f32.mrb[50].mxu1 }
 0x4fd   :  { %v1669_v26 = vmul.f32 %v6825_v18, %v1645_v47  ;;  %v5394_v43 = vpop.f32.mrb[51].mxu1 }
 0x4ff   :  { %v1674_v21 = vadd.f32 %v1669_v26, %v1388_v0 }
 0x500   :  { %v1650_v24 = vpop.f32.mrb[52].mxu1 }
 0x501   :  { %v1670_v55 = vmul.f32 %v6825_v18, %v1650_v24  ;;  %v5397_v34 = vpop.f32.mrb[53].mxu1  ;;  %5416 = vmatmul.mubr.msk.f32.vlgmr.msra.gmra.mrb[60].mxu0 %vm80_vm1, %v1674_v21 }
 0x502   :  { %5418 = vmatprep.mubr.msk.f32.mxu0 %vm6363_vm0, %v6364_v6 }
 0x503   :  { %v1675_v9 = vadd.f32 %v1670_v55, %v1389_v28 }
 0x504   :  { %v1655_v37 = vpop.f32.mrb[54].mxu1 }
 0x505   :  { %v1671_v13 = vmul.f32 %v6825_v18, %v1655_v37  ;;  %v5400_v60 = vpop.f32.mrb[55].mxu1  ;;  %5419 = vmatmul.mubr.msk.f32.gmra.mrb[62].mxu0 %vm80_vm1, %v1675_v9 }
 0x506   :  { %5421 = vmatprep.mubr.msk.f32.mxu0 %vm6363_vm0, %v6364_v6 }
 0x507   :  { %v1676_v4 = vadd.f32 %v1671_v13, %v1390_v27 }
 0x508   :  { %v1660_v44 = vpop.f32.mrb[56].mxu1 }
 0x509   :  { %v1672_v46 = vmul.f32 %v6825_v18, %v1660_v44  ;;  %v5403_v25 = vpop.f32.mrb[57].mxu1  ;;  %5422 = vmatmul.mubr.msk.f32.gmra.mrb[64].mxu0 %vm80_vm1, %v1676_v4 }
 0x50a   :  { %5424 = vmatprep.mubr.msk.f32.mxu0 %vm6363_vm0, %v6364_v6 }
 0x50b   :  { %v1677_v48 = vadd.f32 %v1672_v46, %v1391_v20 }
 0x50c   :  { %v1665_v1 = vpop.f32.mrb[58].mxu1 }
 0x50d   :  { %v1673_v31 = vmul.f32 %v6825_v18, %v1665_v1  ;;  %v5406_v42 = vpop.f32.mrb[59].mxu1  ;;  %5425 = vmatmul.mubr.msk.f32.gmra.mrb[66].mxu0 %vm80_vm1, %v1677_v48  ;;  %v1686_v18 = vrot.slane %v7242_v58, %v1685_v40 }
 0x50e   :  { %5427 = vmatprep.mubr.msk.f32.mxu0 %vm6363_vm0, %v6364_v6  ;;  %v1883_v42 = vld [vmem:[%s8382_s10 + $0x8] sm:$0xff] }
 0x50f   :  { %v1678_v54 = vadd.f32 %v1673_v31, %v1392_v38  ;;  %v1882_v31 = vld [vmem:[%s8382_s10] sm:$0xff] }
 0x511   :  { %5428 = vmatmul.mubr.msk.f32.gmra.mrb[68].mxu0 %vm80_vm1, %v1678_v54  ;;  %v5952_v54 = vpack.c.bf16 %v1883_v42, %v1882_v31  ;;  %v2009_v42 = vld [vmem:[%s8384_s12 + $0x30] sm:$0xff] }
 0x512   :  { %5469 = vmatprep.mubr.msk.f32.mxu0 %vm6363_vm0, %v6364_v6 }
 0x513   :  { %5953 = vmatpush3.bf16.msra.mxu1 %v5952_v54 }
 0x514   :  { %5954 = vmatprep.subr.bf16.mxu1 %v6362_v3 }
 0x5d4   :  { %v1768_v56 = vpop.f32.mrb[60].mxu0 }
 0x5d5   :  { %v1769_v51 = vadd.f32 %v1768_v56, %v1686_v18  ;;  %v5417_v57 = vpop.f32.mrb[61].mxu0  ;;  %v1885_v56 = vld [vmem:[%s8382_s10 + $0x18] sm:$0xff] }
 0x5d6   :  { %v2003_v57 = vld [vmem:[%s8384_s12] sm:$0xff] }
 0x5d7   :  { %v1792_v63 = vadd.f32 %v1769_v51, %v6559_v29 }
 0x5d8   :  { %v1773_v50 = vpop.f32.mrb[62].mxu0 }
 0x5d9   :  { %v1774_v11 = vadd.f32 %v1773_v50, %v1686_v18  ;;  %v5420_v61 = vpop.f32.mrb[63].mxu0  ;;  %v1797_v62 = vsel %vm80_vm1, %v1792_v63, 0.0  ;;  %v2005_v50 = vld [vmem:[%s8384_s12 + $0x10] sm:$0xff] }
 0x5da   :  { %1798 = vadd.xlane.f32.xlu0 %v1797_v62  ;;  %v2006_v61 = vld [vmem:[%s8384_s12 + $0x18] sm:$0xff] }
 0x5db   :  { %v1793_v12 = vadd.f32 %v1774_v11, %v6578_v36  ;;  %v5961_v62 = vpack.c.bf16 %v2006_v61, %v2005_v50 }
 0x5dc   :  { %v1778_v7 = vpop.f32.mrb[64].mxu0 }
 0x5dd   :  { %v1779_v39 = vadd.f32 %v1778_v7, %v1686_v18  ;;  %v5423_v0 = vpop.f32.mrb[65].mxu0  ;;  %v1800_v16 = vsel %vm80_vm1, %v1793_v12, 0.0  ;;  %v2008_v7 = vld [vmem:[%s8384_s12 + $0x28] sm:$0xff] }
 0x5de   :  { %1801 = vadd.xlane.f32.xlu1 %v1800_v16 }
 0x5df   :  { %v1794_v23 = vadd.f32 %v1779_v39, %v6592_v41 }
 0x5e0   :  { %v1783_v14 = vpop.f32.mrb[66].mxu0 }
 0x5e1   :  { %v1784_v28 = vadd.f32 %v1783_v14, %v1686_v18  ;;  %v5426_v32 = vpop.f32.mrb[67].mxu0  ;;  %v1803_v29 = vsel %vm80_vm1, %v1794_v23, 0.0 }
 0x5e2   :  { %1804 = vadd.xlane.f32.xlu0 %v1803_v29 }
 0x5e3   :  { %v1795_v8 = vadd.f32 %v1784_v28, %v6606_v45 }
 0x5e4   :  { %v1788_v35 = vpop.f32.mrb[68].mxu0 }
 0x5e5   :  { %v1789_v27 = vadd.f32 %v1788_v35, %v1686_v18  ;;  %v5429_v19 = vpop.f32.mrb[69].mxu0  ;;  %v1806_v36 = vsel %vm80_vm1, %v1795_v8, 0.0  ;;  %v1884_v18 = vld [vmem:[%s8382_s10 + $0x10] sm:$0xff]  ;;  %v1866_v35 = vsub.s32 4, %v6649_v52 }
 0x5e6   :  { %1807 = vadd.xlane.f32.xlu1 %v1806_v36  ;;  %v5955_v51 = vpack.c.bf16 %v1885_v56, %v1884_v18  ;;  %v1875_v19 = vsub.s32 5, %v6649_v52  ;;  %v4670_v18 = vld [vmem:[%s8383_s11] ss:$0 sm:$0xff] }
 0x5e7   :  { %v1796_v5 = vadd.f32 %v1789_v27, %v6619_v49 }
 0x5e8   :  { %5956 = vmatpush3.bf16.msra.mxu1 %v5955_v51 }
 0x5e9   :  { %v1810_v33 = vsel %vm1809_vm6, %v1796_v5, 0.0  ;;  %5969 = vmatprep.subr.bf16.mxu1 %v6362_v3 }
 0x5ea   :  { %1811 = vadd.xlane.f32.xlu0 %v1810_v33  ;;  %v1867_v33 = vrot.slane %v7242_v58, %v1866_v35 }
 0x667   :  { %v1799_v41 = vpop.xlane.xlu0 %1798 }
 0x668   :  { %v1814_v20 = vmul.f32 0.03125, %v1799_v41 }
 0x66a   :  { %v7257_v30 = vsub.f32 %v1792_v63, %v1814_v20  ;;  %v2004_v63 = vld [vmem:[%s8384_s12 + $0x8] sm:$0xff] }
 0x66b   :  { %v1802_v15 = vpop.xlane.xlu1 %1801  ;;  %v5958_v11 = vpack.c.bf16 %v2004_v63, %v2003_v57 }
 0x66c   :  { %v1815_v17 = vmul.f32 0.03125, %v1802_v15  ;;  %v1824_v45 = vmul.f32 %v7257_v30, %v7257_v30  ;;  %v1876_v15 = vrot.slane %v7242_v58, %v1875_v19 }
 0x66d   :  { %5959 = vmatpush3.bf16.msra.mxu0 %v5958_v11 }
 0x66e   :  { %v7261_v38 = vsub.f32 %v1793_v12, %v1815_v17  ;;  %v1829_v47 = vsel %vm80_vm1, %v1824_v45, 0.0  ;;  %5960 = vmatprep.subr.bf16.mxu0 %v6362_v3  ;;  %v2007_v12 = vld [vmem:[%s8384_s12 + $0x20] sm:$0xff] }
 0x66f   :  { %v1805_v26 = vpop.xlane.xlu0 %1804  ;;  %1830 = vadd.xlane.f32.xlu1 %v1829_v47  ;;  %v5964_v39 = vpack.c.bf16 %v2008_v7, %v2007_v12 }
 0x670   :  { %v1816_v43 = vmul.f32 0.03125, %v1805_v26  ;;  %v1825_v49 = vmul.f32 %v7261_v38, %v7261_v38 }
 0x671   :  { %5962 = vmatpush3.bf16.msra.mxu0 %v5961_v62 }
 0x672   :  { %v7266_v21 = vsub.f32 %v1794_v23, %v1816_v43  ;;  %v1832_v24 = vsel %vm80_vm1, %v1825_v49, 0.0  ;;  %5963 = vmatprep.subr.bf16.mxu0 %v6362_v3 }
 0x673   :  { %v1808_v55 = vpop.xlane.xlu1 %1807  ;;  %1833 = vadd.xlane.f32.xlu0 %v1832_v24 }
 0x674   :  { %v1817_v34 = vmul.f32 0.03125, %v1808_v55  ;;  %v1826_v9 = vmul.f32 %v7266_v21, %v7266_v21 }
 0x675   :  { %5965 = vmatpush3.bf16.msra.mxu0 %v5964_v39 }
 0x676   :  { %v7271_v37 = vsub.f32 %v1795_v8, %v1817_v34  ;;  %v1835_v13 = vsel %vm80_vm1, %v1826_v9, 0.0  ;;  %5966 = vmatprep.subr.bf16.mxu0 %v6362_v3 }
 0x677   :  { %1836 = vadd.xlane.f32.xlu1 %v1835_v13  ;;  %v1812_v60 = vpop.xlane.xlu0 %1811 }
 0x678   :  { %v1818_v4 = vmul.f32 0.03125, %v1812_v60  ;;  %v1827_v44 = vmul.f32 %v7271_v37, %v7271_v37 }
 0x67a   :  { %v7276_v46 = vsub.f32 %v1796_v5, %v1818_v4  ;;  %v1838_v25 = vsel %vm80_vm1, %v1827_v44, 0.0 }
 0x67b   :  { %1839 = vadd.xlane.f32.xlu0 %v1838_v25 }
 0x67c   :  { %v1828_v48 = vmul.f32 %v7276_v46, %v7276_v46 }
 0x67e   :  { %v1841_v1 = vsel %vm1809_vm6, %v1828_v48, 0.0 }
 0x67f   :  { %1842 = vadd.xlane.f32.xlu1 %v1841_v1 }
 0x6fc   :  { %v1831_v0 = vpop.xlane.xlu1 %1830 }
 0x6fd   :  { %v1844_v16 = vmul.f32 0.03125, %v1831_v0 }
 0x6ff   :  { %v1849_v23 = vadd.f32 1e-05, %v1844_v16 }
 0x700   :  { %v1834_v14 = vpop.xlane.xlu0 %1833 }
 0x701   :  { %6172 = vrsqrt.f32 %v1849_v23  ;;  %v1845_v28 = vmul.f32 0.03125, %v1834_v14 }
 0x703   :  { %v1850_v32 = vadd.f32 1e-05, %v1845_v28 }
 0x704   :  { %v1837_v29 = vpop.xlane.xlu1 %1836 }
 0x705   :  { %6174 = vrsqrt.f32 %v1850_v32  ;;  %v1846_v8 = vmul.f32 0.03125, %v1837_v29 }
 0x707   :  { %v1851_v27 = vadd.f32 1e-05, %v1846_v8 }
 0x708   :  { %v1840_v36 = vpop.xlane.xlu0 %1839 }
 0x709   :  { %6176 = vrsqrt.f32 %v1851_v27  ;;  %v1847_v5 = vmul.f32 0.03125, %v1840_v36  ;;  %v2013_v36 = vsub.s32 6, %v6649_v52 }
 0x70b   :  { %v6173_v41 = vpop.eup %6172  ;;  %v1852_v20 = vadd.f32 1e-05, %v1847_v5  ;;  %v2014_v5 = vrot.slane %v7242_v58, %v2013_v36 }
 0x70c   :  { %v1859_v17 = vmul.f32 %v6173_v41, %v7257_v30  ;;  %v1843_v45 = vpop.xlane.xlu1 %1842 }
 0x70d   :  { %6178 = vrsqrt.f32 %v1852_v20  ;;  %v1848_v47 = vmul.f32 0.03125, %v1843_v45 }
 0x70e   :  { %v1868_v26 = vmul.f32 %v1867_v33, %v1859_v17 }
 0x70f   :  { %v6175_v43 = vpop.eup %6174  ;;  %v1853_v49 = vadd.f32 1e-05, %v1848_v47 }
 0x710   :  { %v7326_v24 = vadd.f32 %v1876_v15, %v1868_v26  ;;  %v1860_v55 = vmul.f32 %v6175_v43, %v7261_v38 }
 0x711   :  { %6180 = vrsqrt.f32 %v1853_v49 }
 0x712   :  { %5439 = vmatmul.mubr.msk.f32.vlgmr.msra.gmra.mrb[60].mxu1 %vm80_vm1, %v7326_v24  ;;  %v1869_v34 = vmul.f32 %v1867_v33, %v1860_v55 }
 0x713   :  { %v6177_v9 = vpop.eup %6176  ;;  %5441 = vmatprep.mubr.msk.f32.mxu1 %vm6363_vm0, %v6364_v6 }
 0x714   :  { %v7333_v30 = vadd.f32 %v1876_v15, %v1869_v34  ;;  %v1861_v13 = vmul.f32 %v6177_v9, %v7266_v21 }
 0x716   :  { %5442 = vmatmul.mubr.msk.f32.gmra.mrb[62].mxu1 %vm80_vm1, %v7333_v30  ;;  %v1870_v60 = vmul.f32 %v1867_v33, %v1861_v13 }
 0x717   :  { %v6179_v4 = vpop.eup %6178  ;;  %5444 = vmatprep.mubr.msk.f32.mxu1 %vm6363_vm0, %v6364_v6 }
 0x718   :  { %v7340_v38 = vadd.f32 %v1876_v15, %v1870_v60  ;;  %v1862_v44 = vmul.f32 %v6179_v4, %v7271_v37 }
 0x71a   :  { %5445 = vmatmul.mubr.msk.f32.gmra.mrb[64].mxu1 %vm80_vm1, %v7340_v38  ;;  %v1871_v25 = vmul.f32 %v1867_v33, %v1862_v44 }
 0x71b   :  { %v6181_v48 = vpop.eup %6180  ;;  %5447 = vmatprep.mubr.msk.f32.mxu1 %vm6363_vm0, %v6364_v6 }
 0x71c   :  { %v7347_v21 = vadd.f32 %v1876_v15, %v1871_v25  ;;  %v1863_v1 = vmul.f32 %v6181_v48, %v7276_v46  ;;  %v2010_v46 = vld [vmem:[%s8384_s12 + $0x38] sm:$0xff] }
 0x71d   :  { %v5967_v54 = vpack.c.bf16 %v2010_v46, %v2009_v42 }
 0x71e   :  { %5448 = vmatmul.mubr.msk.f32.gmra.mrb[66].mxu1 %vm80_vm1, %v7347_v21  ;;  %v1872_v31 = vmul.f32 %v1867_v33, %v1863_v1 }
 0x71f   :  { %5450 = vmatprep.mubr.msk.f32.mxu1 %vm6363_vm0, %v6364_v6  ;;  %5968 = vmatpush3.bf16.msra.mxu0 %v5967_v54 }
 0x720   :  { %v7354_v37 = vadd.f32 %v1876_v15, %v1872_v31  ;;  %5975 = vmatprep.subr.bf16.mxu0 %v6362_v3 }
 0x722   :  { %5451 = vmatmul.mubr.msk.f32.gmra.mrb[68].mxu1 %vm80_vm1, %v7354_v37 }
 0x723   :  { %5492 = vmatprep.mubr.msk.f32.mxu1 %vm6363_vm0, %v6364_v6 }
 0x7e5   :  { %v1974_v56 = vpop.f32.mrb[60].mxu1 }
 0x7e6   :  { %v1975_v51 = vadd.f32 %v4670_v18, %v1974_v56  ;;  %v5440_v57 = vpop.f32.mrb[61].mxu1 }
 0x7e8   :  { %v1998_v63 = vmax.f32 %v1975_v51, 0.0 }
 0x7e9   :  { %v1979_v50 = vpop.f32.mrb[62].mxu1 }
 0x7ea   :  { %v1980_v11 = vadd.f32 %v4670_v18, %v1979_v50  ;;  %v5443_v61 = vpop.f32.mrb[63].mxu1  ;;  %5470 = vmatmul.mubr.msk.f32.vlgmr.msra.gmra.mrb[70].mxu0 %vm2015_vm7, %v1998_v63 }
 0x7eb   :  { %5472 = vmatprep.mubr.msk.f32.mxu0 %vm6363_vm0, %v6364_v6 }
 0x7ec   :  { %v1999_v62 = vmax.f32 %v1980_v11, 0.0 }
 0x7ed   :  { %v1984_v12 = vpop.f32.mrb[64].mxu1 }
 0x7ee   :  { %v1985_v7 = vadd.f32 %v4670_v18, %v1984_v12  ;;  %v5446_v39 = vpop.f32.mrb[65].mxu1  ;;  %5473 = vmatmul.mubr.msk.f32.gmra.mrb[72].mxu0 %vm2015_vm7, %v1999_v62 }
 0x7ef   :  { %5475 = vmatprep.mubr.msk.f32.mxu0 %vm6363_vm0, %v6364_v6 }
 0x7f0   :  { %v2000_v0 = vmax.f32 %v1985_v7, 0.0 }
 0x7f1   :  { %v1989_v16 = vpop.f32.mrb[66].mxu1 }
 0x7f2   :  { %v1990_v23 = vadd.f32 %v4670_v18, %v1989_v16  ;;  %v5449_v14 = vpop.f32.mrb[67].mxu1  ;;  %5476 = vmatmul.mubr.msk.f32.gmra.mrb[74].mxu0 %vm2015_vm7, %v2000_v0 }
 0x7f3   :  { %5478 = vmatprep.mubr.msk.f32.mxu0 %vm6363_vm0, %v6364_v6 }
 0x7f4   :  { %v2001_v28 = vmax.f32 %v1990_v23, 0.0 }
 0x7f5   :  { %v1994_v32 = vpop.f32.mrb[68].mxu1 }
 0x7f6   :  { %v1995_v29 = vadd.f32 %v4670_v18, %v1994_v32  ;;  %v5452_v8 = vpop.f32.mrb[69].mxu1  ;;  %5479 = vmatmul.mubr.msk.f32.gmra.mrb[76].mxu0 %vm2015_vm7, %v2001_v28 }
 0x7f7   :  { %5481 = vmatprep.mubr.msk.f32.mxu0 %vm6363_vm0, %v6364_v6 }
 0x7f8   :  { %v2002_v27 = vmax.f32 %v1995_v29, 0.0 }
 0x7fa   :  { %5482 = vmatmul.mubr.msk.f32.gmra.mrb[78].mxu0 %vm2015_vm7, %v2002_v27 }
 0x7fb   :  { %5515 = vmatprep.mubr.msk.f32.mxu0 %vm6363_vm0, %v6364_v6 }
 0x8bd   :  { %v2097_v33 = vpop.f32.mrb[70].mxu0 }
 0x8be   :  { %v2098_v41 = vadd.f32 %v2097_v33, %v2014_v5  ;;  %v5471_v20 = vpop.f32.mrb[71].mxu0  ;;  %v4694_v33 = vld [vmem:[%s8379_s7 + $0x28] sm:$0xff] }
 0x8c0   :  { %v2121_v15 = vadd.f32 %v2098_v41, %v7326_v24  ;;  %v4684_v41 = vld [vmem:[%s8378_s6 + $0x20] sm:$0xff] }
 0x8c1   :  { %v2102_v17 = vpop.f32.mrb[72].mxu0 }
 0x8c2   :  { %v2103_v45 = vadd.f32 %v2102_v17, %v2014_v5  ;;  %v5474_v47 = vpop.f32.mrb[73].mxu0  ;;  %v2126_v26 = vsel %vm80_vm1, %v2121_v15, 0.0 }
 0x8c3   :  { %2127 = vadd.xlane.f32.xlu0 %v2126_v26  ;;  %v4687_v47 = vld [vmem:[%s8378_s6 + $0x38] sm:$0xff]  ;;  %v4695_v26 = vld [vmem:[%s8379_s7 + $0x30] sm:$0xff] }
 0x8c4   :  { %v2122_v43 = vadd.f32 %v2103_v45, %v7333_v30  ;;  %v4686_v45 = vld [vmem:[%s8378_s6 + $0x30] sm:$0xff] }
 0x8c5   :  { %v2107_v49 = vpop.f32.mrb[74].mxu0 }
 0x8c6   :  { %v2108_v55 = vadd.f32 %v2107_v49, %v2014_v5  ;;  %v5477_v34 = vpop.f32.mrb[75].mxu0  ;;  %v2129_v9 = vsel %vm80_vm1, %v2122_v43, 0.0  ;;  %v4696_v49 = vld [vmem:[%s8379_s7 + $0x38] sm:$0xff] }
 0x8c7   :  { %2130 = vadd.xlane.f32.xlu1 %v2129_v9 }
 0x8c8   :  { %v2123_v13 = vadd.f32 %v2108_v55, %v7340_v38  ;;  %v5979_v55 = vpack.c.bf16 %v4696_v49, %v4695_v26 }
 0x8c9   :  { %v2112_v60 = vpop.f32.mrb[76].mxu0 }
 0x8ca   :  { %v2113_v4 = vadd.f32 %v2112_v60, %v2014_v5  ;;  %v5480_v44 = vpop.f32.mrb[77].mxu0  ;;  %v2132_v24 = vsel %vm80_vm1, %v2123_v13, 0.0 }
 0x8cb   :  { %2133 = vadd.xlane.f32.xlu0 %v2132_v24 }
 0x8cc   :  { %v2124_v25 = vadd.f32 %v2113_v4, %v7347_v21 }
 0x8cd   :  { %v2117_v48 = vpop.f32.mrb[78].mxu0 }
 0x8ce   :  { %v2118_v1 = vadd.f32 %v2117_v48, %v2014_v5  ;;  %v5483_v31 = vpop.f32.mrb[79].mxu0  ;;  %v2135_v30 = vsel %vm80_vm1, %v2124_v25, 0.0  ;;  %v4693_v5 = vld [vmem:[%s8379_s7 + $0x20] sm:$0xff]  ;;  %v2193_v48 = vsub.s32 7, %v6649_v52 }
 0x8cf   :  { %2136 = vadd.xlane.f32.xlu1 %v2135_v30  ;;  %v5976_v20 = vpack.c.bf16 %v4694_v33, %v4693_v5 }
 0x8d0   :  { %v2125_v42 = vadd.f32 %v2118_v1, %v7354_v37 }
 0x8d1   :  { %5977 = vmatpush3.bf16.msra.mxu0 %v5976_v20 }
 0x8d2   :  { %v2138_v46 = vsel %vm1809_vm6, %v2125_v42, 0.0  ;;  %5978 = vmatprep.subr.bf16.mxu0 %v6362_v3 }
 0x8d3   :  { %2139 = vadd.xlane.f32.xlu0 %v2138_v46 }
 0x8d5   :  { %5980 = vmatpush3.bf16.msra.mxu0 %v5979_v55 }
 0x8d6   :  { %5987 = vmatprep.subr.bf16.mxu0 %v6362_v3 }
 0x950   :  { %v2128_v38 = vpop.xlane.xlu0 %2127 }
 0x951   :  { %v2141_v54 = vmul.f32 0.03125, %v2128_v38 }
 0x953   :  { %v7399_v18 = vsub.f32 %v2121_v15, %v2141_v54  ;;  %v4685_v15 = vld [vmem:[%s8378_s6 + $0x28] sm:$0xff] }
 0x954   :  { %v2131_v56 = vpop.xlane.xlu1 %2130  ;;  %v5970_v17 = vpack.c.bf16 %v4685_v15, %v4684_v41 }
 0x955   :  { %v2142_v51 = vmul.f32 0.03125, %v2131_v56  ;;  %v2151_v21 = vmul.f32 %v7399_v18, %v7399_v18 }
 0x956   :  { %5971 = vmatpush3.bf16.msra.mxu1 %v5970_v17 }
 0x957   :  { %v7403_v57 = vsub.f32 %v2122_v43, %v2142_v51  ;;  %v2156_v63 = vsel %vm80_vm1, %v2151_v21, 0.0  ;;  %5972 = vmatprep.subr.bf16.mxu1 %v6362_v3  ;;  %v5973_v43 = vpack.c.bf16 %v4687_v47, %v4686_v45  ;;  %v4681_v51 = vld [vmem:[%s8385_s13 + $0x8] ss:$0 sm:$0xff] }
 0x958   :  { %v2134_v50 = vpop.xlane.xlu0 %2133  ;;  %2157 = vadd.xlane.f32.xlu1 %v2156_v63  ;;  %v4702_v63 = vld [vmem:[%s8380_s8 + $0x20] sm:$0xff] }
 0x959   :  { %v2143_v11 = vmul.f32 0.03125, %v2134_v50  ;;  %v2152_v37 = vmul.f32 %v7403_v57, %v7403_v57  ;;  %v4703_v50 = vld [vmem:[%s8380_s8 + $0x28] sm:$0xff] }
 0x95a   :  { %5974 = vmatpush3.bf16.msra.mxu1 %v5973_v43 }
 0x95b   :  { %v7408_v61 = vsub.f32 %v2123_v13, %v2143_v11  ;;  %v2159_v62 = vsel %vm80_vm1, %v2152_v37, 0.0  ;;  %5981 = vmatprep.subr.bf16.mxu1 %v6362_v3 }
 0x95c   :  { %v2137_v12 = vpop.xlane.xlu1 %2136  ;;  %2160 = vadd.xlane.f32.xlu0 %v2159_v62 }
 0x95d   :  { %v2144_v7 = vmul.f32 0.03125, %v2137_v12  ;;  %v2153_v39 = vmul.f32 %v7408_v61, %v7408_v61  ;;  %v5982_v12 = vpack.c.bf16 %v4703_v50, %v4702_v63 }
 0x95f   :  { %v7413_v0 = vsub.f32 %v2124_v25, %v2144_v7  ;;  %v2162_v16 = vsel %vm80_vm1, %v2153_v39, 0.0  ;;  %v4704_v7 = vld [vmem:[%s8380_s8 + $0x30] sm:$0xff]  ;;  %v4705_v39 = vld [vmem:[%s8380_s8 + $0x38] sm:$0xff] }
 0x960   :  { %2163 = vadd.xlane.f32.xlu1 %v2162_v16  ;;  %v2140_v23 = vpop.xlane.xlu0 %2139 }
 0x961   :  { %v2145_v14 = vmul.f32 0.03125, %v2140_v23  ;;  %v2154_v28 = vmul.f32 %v7413_v0, %v7413_v0 }
 0x963   :  { %v7418_v32 = vsub.f32 %v2125_v42, %v2145_v14  ;;  %v2165_v29 = vsel %vm80_vm1, %v2154_v28, 0.0  ;;  %v2194_v42 = vrot.slane %v7242_v58, %v2193_v48  ;;  %v5985_v28 = vpack.c.bf16 %v4705_v39, %v4704_v7 }
 0x964   :  { %2166 = vadd.xlane.f32.xlu0 %v2165_v29 }
 0x965   :  { %v2155_v8 = vmul.f32 %v7418_v32, %v7418_v32 }
 0x967   :  { %v2168_v27 = vsel %vm1809_vm6, %v2155_v8, 0.0 }
 0x968   :  { %2169 = vadd.xlane.f32.xlu1 %v2168_v27 }
 0x9e5   :  { %v2158_v34 = vpop.xlane.xlu1 %2157 }
 0x9e6   :  { %v2171_v9 = vmul.f32 0.03125, %v2158_v34 }
 0x9e8   :  { %v2176_v13 = vadd.f32 1e-05, %v2171_v9 }
 0x9e9   :  { %v2161_v60 = vpop.xlane.xlu0 %2160 }
 0x9ea   :  { %6182 = vrsqrt.f32 %v2176_v13  ;;  %v2172_v4 = vmul.f32 0.03125, %v2161_v60 }
 0x9ec   :  { %v2177_v44 = vadd.f32 1e-05, %v2172_v4 }
 0x9ed   :  { %v2164_v24 = vpop.xlane.xlu1 %2163 }
 0x9ee   :  { %6184 = vrsqrt.f32 %v2177_v44  ;;  %v2173_v25 = vmul.f32 0.03125, %v2164_v24 }
 0x9f0   :  { %v2178_v1 = vadd.f32 1e-05, %v2173_v25 }
 0x9f1   :  { %v2167_v31 = vpop.xlane.xlu0 %2166 }
 0x9f2   :  { %6186 = vrsqrt.f32 %v2178_v1  ;;  %v2174_v30 = vmul.f32 0.03125, %v2167_v31 }
 0x9f4   :  { %v6183_v46 = vpop.eup %6182  ;;  %v2179_v38 = vadd.f32 1e-05, %v2174_v30 }
 0x9f5   :  { %v2186_v54 = vmul.f32 %v6183_v46, %v7399_v18  ;;  %v2170_v56 = vpop.xlane.xlu1 %2169 }
 0x9f6   :  { %6188 = vrsqrt.f32 %v2179_v38  ;;  %v2175_v21 = vmul.f32 0.03125, %v2170_v56 }
 0x9f7   :  { %v2195_v58 = vmul.f32 %v2194_v42, %v2186_v54 }
 0x9f8   :  { %v6185_v11 = vpop.eup %6184  ;;  %v2180_v37 = vadd.f32 1e-05, %v2175_v21 }
 0x9f9   :  { %v7466_v62 = vadd.f32 %v4681_v51, %v2195_v58  ;;  %v2187_v18 = vmul.f32 %v6185_v11, %v7403_v57 }
 0x9fa   :  { %6190 = vrsqrt.f32 %v2180_v37 }
 0x9fb   :  { %5493 = vmatmul.mubr.msk.f32.vlgmr.msra.gmra.mrb[70].mxu1 %vm80_vm1, %v7466_v62  ;;  %5516 = vmatmul.mubr.msk.f32.vlgmr.msra.gmra.mrb[80].mxu0 %vm80_vm1, %v7466_v62  ;;  %v2196_v16 = vmul.f32 %v2194_v42, %v2187_v18 }
 0x9fc   :  { %v6187_v23 = vpop.eup %6186  ;;  %5495 = vmatprep.mubr.msk.f32.mxu1 %vm6363_vm0, %v6364_v6  ;;  %5518 = vmatprep.mubr.msk.f32.mxu0 %vm6363_vm0, %v6364_v6 }
 0x9fd   :  { %v7483_v57 = vadd.f32 %v4681_v51, %v2196_v16  ;;  %v2188_v14 = vmul.f32 %v6187_v23, %v7408_v61  ;;  %5983 = vmatpush3.bf16.msra.mxu1 %v5982_v12 }
 0x9fe   :  { %5984 = vmatprep.subr.bf16.mxu1 %v6362_v3 }
 0x9ff   :  { %5496 = vmatmul.mubr.msk.f32.gmra.mrb[72].mxu1 %vm80_vm1, %v7483_v57  ;;  %5519 = vmatmul.mubr.msk.f32.gmra.mrb[82].mxu0 %vm80_vm1, %v7483_v57  ;;  %v2197_v29 = vmul.f32 %v2194_v42, %v2188_v14 }
 0xa00   :  { %v6189_v8 = vpop.eup %6188  ;;  %5498 = vmatprep.mubr.msk.f32.mxu1 %vm6363_vm0, %v6364_v6  ;;  %5521 = vmatprep.mubr.msk.f32.mxu0 %vm6363_vm0, %v6364_v6 }
 0xa01   :  { %v7495_v27 = vadd.f32 %v4681_v51, %v2197_v29  ;;  %v2189_v61 = vmul.f32 %v6189_v8, %v7413_v0  ;;  %5986 = vmatpush3.bf16.msra.mxu1 %v5985_v28 }
 0xa02   :  { %5995 = vmatprep.subr.bf16.mxu1 %v6362_v3 }
 0xa03   :  { %5499 = vmatmul.mubr.msk.f32.gmra.mrb[74].mxu1 %vm80_vm1, %v7495_v27  ;;  %5522 = vmatmul.mubr.msk.f32.gmra.mrb[84].mxu0 %vm80_vm1, %v7495_v27  ;;  %v2198_v5 = vmul.f32 %v2194_v42, %v2189_v61 }
 0xa04   :  { %v6191_v33 = vpop.eup %6190  ;;  %5501 = vmatprep.mubr.msk.f32.mxu1 %vm6363_vm0, %v6364_v6  ;;  %5524 = vmatprep.mubr.msk.f32.mxu0 %vm6363_vm0, %v6364_v6 }
 0xa05   :  { %v7507_v41 = vadd.f32 %v4681_v51, %v2198_v5  ;;  %v2190_v0 = vmul.f32 %v6191_v33, %v7418_v32  ;;  %v4682_v32 = vld [vmem:[%s8385_s13 + $0x10] sm:$0xff] }
 0xa06   :  { %v2339_v43 = vrot.slane %v4682_v32, %v6652_v53  ;;  %v2220_v56 = vrot.slane %v4682_v32, %v6670_v10  ;;  %v2438_v18 = vrot.slane %v4682_v32, %v6677_v22 }
 0xa07   :  { %5502 = vmatmul.mubr.msk.f32.gmra.mrb[76].mxu1 %vm80_vm1, %v7507_v41  ;;  %5525 = vmatmul.mubr.msk.f32.gmra.mrb[86].mxu0 %vm80_vm1, %v7507_v41  ;;  %v2199_v20 = vmul.f32 %v2194_v42, %v2190_v0 }
 0xa08   :  { %5504 = vmatprep.mubr.msk.f32.mxu1 %vm6363_vm0, %v6364_v6  ;;  %5527 = vmatprep.mubr.msk.f32.mxu0 %vm6363_vm0, %v6364_v6 }
 0xa09   :  { %v7518_v15 = vadd.f32 %v4681_v51, %v2199_v20 }
 0xa0b   :  { %5505 = vmatmul.mubr.msk.f32.gmra.mrb[78].mxu1 %vm80_vm1, %v7518_v15  ;;  %5528 = vmatmul.mubr.msk.f32.gmra.mrb[88].mxu0 %vm80_vm1, %v7518_v15 }
 0xa0c   :  { %5538 = vmatprep.mubr.msk.f32.mxu1 %vm6363_vm0, %v6364_v6  ;;  %5563 = vmatprep.mubr.msk.f32.mxu0 %vm6363_vm0, %v6364_v6 }
 0xa0f   :  { %5539 = vmatmul.mubr.msk.f32.vlgmr.msra.gmra.mrb[80].mxu1 %vm80_vm1, %v7466_v62 }
 0xa10   :  { %5541 = vmatprep.mubr.msk.f32.mxu1 %vm6363_vm0, %v6364_v6 }
 0xa13   :  { %5542 = vmatmul.mubr.msk.f32.gmra.mrb[82].mxu1 %vm80_vm1, %v7483_v57 }
 0xa14   :  { %5544 = vmatprep.mubr.msk.f32.mxu1 %vm6363_vm0, %v6364_v6 }
 0xa17   :  { %5545 = vmatmul.mubr.msk.f32.gmra.mrb[84].mxu1 %vm80_vm1, %v7495_v27 }
 0xa18   :  { %5547 = vmatprep.mubr.msk.f32.mxu1 %vm6363_vm0, %v6364_v6 }
 0xa1b   :  { %5548 = vmatmul.mubr.msk.f32.gmra.mrb[86].mxu1 %vm80_vm1, %v7507_v41 }
 0xa1c   :  { %5550 = vmatprep.mubr.msk.f32.mxu1 %vm6363_vm0, %v6364_v6 }
 0xa1f   :  { %5551 = vmatmul.mubr.msk.f32.gmra.mrb[88].mxu1 %vm80_vm1, %v7518_v15 }
 0xa20   :  { %5588 = vmatprep.mubr.msk.f32.mxu1 %vm6363_vm0, %v6364_v6 }
 0xace   :  { %v2302_v17 = vpop.f32.mrb[70].mxu1  ;;  %v2406_v45 = vpop.f32.mrb[80].mxu0 }
 0xacf   :  { %v5494_v47 = vpop.f32.mrb[71].mxu1  ;;  %v5517_v26 = vpop.f32.mrb[81].mxu0  ;;  %v2407_v13 = vadd.f32 %v2406_v45, %v2339_v43  ;;  %v2303_v11 = vadd.f32 %v2302_v17, %v2220_v56 }
 0xad1   :  { %v7566_v7 = vmul.f32 0.35355338, %v2303_v11 }
 0xad2   :  { %v2307_v49 = vpop.f32.mrb[72].mxu1  ;;  %v2411_v55 = vpop.f32.mrb[82].mxu0 }
 0xad3   :  { %v5497_v34 = vpop.f32.mrb[73].mxu1  ;;  %v5520_v9 = vpop.f32.mrb[83].mxu0  ;;  %v2412_v60 = vadd.f32 %v2411_v55, %v2339_v43  ;;  %v2308_v39 = vadd.f32 %v2307_v49, %v2220_v56  ;;  %v2529_v8 = vmul.f32 %v7201_v59, %v7566_v7 }
 0xad5   :  { %v7552_v4 = vpack.c.bf16 %v2412_v60, %v2407_v13  ;;  %v7574_v61 = vmul.f32 0.35355338, %v2308_v39  ;;  %v7745_v39 = vld [vmem:[%s8409_s28] sm:$0xff] }
 0xad6   :  { %v2312_v44 = vpop.f32.mrb[74].mxu1  ;;  %v2416_v24 = vpop.f32.mrb[84].mxu0 }
 0xad7   :  { %v5500_v25 = vpop.f32.mrb[75].mxu1  ;;  %v5523_v1 = vpop.f32.mrb[85].mxu0  ;;  %5990 = vmatpush3.bf16.xpose.msk.msra.mxu0 %vm6660_vm2, %v7552_v4  ;;  %v2417_v42 = vadd.f32 %v2416_v24, %v2339_v43  ;;  %v2313_v5 = vadd.f32 %v2312_v44, %v2220_v56  ;;  %v2530_v45 = vmul.f32 %v7201_v59, %v7574_v61  ;;  %v3388_v11 = vmul.f32 %v7714_v2, %v7574_v61 }
 0xad8   :  { %5991 = vmatprep.subr.bf16.mxu0 %v6362_v3 }
 0xad9   :  { %v7586_v32 = vmul.f32 0.35355338, %v2313_v5 }
 0xada   :  { %v2317_v31 = vpop.f32.mrb[76].mxu1  ;;  %v2421_v30 = vpop.f32.mrb[86].mxu0 }
 0xadb   :  { %v2422_v46 = vadd.f32 %v2421_v30, %v2339_v43  ;;  %v5503_v38 = vpop.f32.mrb[77].mxu1  ;;  %v5526_v54 = vpop.f32.mrb[87].mxu0  ;;  %v2318_v17 = vadd.f32 %v2317_v31, %v2220_v56  ;;  %v2531_v13 = vmul.f32 %v7201_v59, %v7586_v32  ;;  %v7632_v30 = vld [vmem:[%s8408_s21 + $0x1] ss:$0 sm:$0xff] }
 0xadd   :  { %v7559_v51 = vpack.c.bf16 %v2422_v46, %v2417_v42  ;;  %v7595_v55 = vmul.f32 0.35355338, %v2318_v17  ;;  %v2827_v42 = vmul.f32 %v7632_v30, %v7566_v7  ;;  %v2829_v46 = vmul.f32 %v7632_v30, %v7586_v32 }
 0xade   :  { %v2322_v21 = vpop.f32.mrb[78].mxu1  ;;  %v2426_v63 = vpop.f32.mrb[88].mxu0 }
 0xadf   :  { %v5506_v50 = vpop.f32.mrb[79].mxu1  ;;  %v5529_v58 = vpop.f32.mrb[89].mxu0  ;;  %5994 = vmatpush3.bf16.xpose.msk.msra.mxu0 %vm6660_vm2, %v7559_v51  ;;  %v7568_v16 = vadd.f32 %v2426_v63, %v2339_v43  ;;  %v2323_v34 = vadd.f32 %v2322_v21, %v2220_v56  ;;  %v2532_v1 = vmul.f32 %v7201_v59, %v7595_v55  ;;  %v2830_v38 = vmul.f32 %v7632_v30, %v7595_v55  ;;  %v7673_v56 = vld [vmem:[%s8408_s21 + $0x2] ss:$0 sm:$0xff] }
 0xae0   :  { %5561 = vmatprep.subr.mxu0 %v6364_v6  ;;  %v3107_v21 = vmul.f32 %v7673_v56, %v7566_v7  ;;  %v3108_v63 = vmul.f32 %v7673_v56, %v7574_v61  ;;  %v3109_v50 = vmul.f32 %v7673_v56, %v7586_v32 }
 0xae1   :  { %v7608_v24 = vmul.f32 0.35355338, %v2323_v34 }
 0xae2   :  { %v2505_v37 = vpop.f32.mrb[80].mxu1 }
 0xae3   :  { %v5540_v12 = vpop.f32.mrb[81].mxu1  ;;  %v2506_v14 = vadd.f32 %v2505_v37, %v2438_v18  ;;  %v2533_v31 = vmul.f32 %v7201_v59, %v7608_v24  ;;  %v2828_v59 = vmul.f32 %v7632_v30, %v7574_v61  ;;  %v2831_v54 = vmul.f32 %v7632_v30, %v7608_v24 }
 0xae4   :  { %v3111_v58 = vmul.f32 %v7673_v56, %v7608_v24  ;;  %v3389_v37 = vmul.f32 %v7714_v2, %v7586_v32  ;;  %v3391_v12 = vmul.f32 %v7714_v2, %v7608_v24 }
 0xae6   :  { %v2510_v23 = vpop.f32.mrb[82].mxu1 }
 0xae7   :  { %v2511_v28 = vadd.f32 %v2510_v23, %v2438_v18  ;;  %v5543_v29 = vpop.f32.mrb[83].mxu1  ;;  %5562 = vmatpush3.xpose.msk.msra.mxu0 %vm80_vm1, %v7568_v16 }
 0xae8   :  { %6001 = vmatprep.subr.bf16.mxu0 %v6362_v3  ;;  %v7755_v29 = vld [vmem:[%s8409_s28 + $0x8] sm:$0xff] }
 0xae9   :  { %v7576_v33 = vpack.c.bf16 %v2511_v28, %v2506_v14 }
 0xaea   :  { %v2515_v0 = vpop.f32.mrb[84].mxu1  ;;  %5564 = vmatmul.mubr.msk.f32.vlgmr.msra.gmra.mrb[90].mxu0 %vm80_vm1, %v2529_v8 }
 0xaeb   :  { %v5546_v20 = vpop.f32.mrb[85].mxu1  ;;  %5997 = vmatpush3.bf16.msra.mxu1 %v7576_v33  ;;  %6004 = vmatpush3.bf16.xpose.msk.msra.mxu0 %vm6660_vm2, %v7552_v4  ;;  %v2516_v26 = vadd.f32 %v2515_v0, %v2438_v18 }
 0xaec   :  { %5566 = vmatprep.mubr.msk.f32.mxu0 %vm6363_vm0, %v6364_v6  ;;  %5998 = vmatprep.subr.bf16.mxu1 %v6362_v3  ;;  %v7765_v20 = vld [vmem:[%s8409_s28 + $0x10] sm:$0xff] }
 0xaed   :  { %6005 = vmatprep.subr.bf16.mxu0 %v6362_v3 }
 0xaee   :  { %v2520_v47 = vpop.f32.mrb[86].mxu1  ;;  %5567 = vmatmul.mubr.msk.f32.gmra.mrb[92].mxu0 %vm80_vm1, %v2530_v45 }
 0xaef   :  { %v2521_v43 = vadd.f32 %v2520_v47, %v2438_v18  ;;  %v5549_v49 = vpop.f32.mrb[87].mxu1  ;;  %5569 = vmatprep.mubr.msk.f32.mxu0 %vm6363_vm0, %v6364_v6 }
 0xaf1   :  { %v7597_v9 = vpack.c.bf16 %v2521_v43, %v2516_v26  ;;  %v7775_v26 = vld [vmem:[%s8409_s28 + $0x18] sm:$0xff] }
 0xaf2   :  { %v2525_v60 = vpop.f32.mrb[88].mxu1  ;;  %5570 = vmatmul.mubr.msk.f32.gmra.mrb[94].mxu0 %vm80_vm1, %v2531_v13  ;;  %v7785_v13 = vld [vmem:[%s8409_s28 + $0x20] sm:$0x3] }
 0xaf3   :  { %v5552_v44 = vpop.f32.mrb[89].mxu1  ;;  %6000 = vmatpush3.bf16.msra.mxu1 %v7597_v9  ;;  %6008 = vmatpush3.bf16.xpose.msk.msra.mxu0 %vm6660_vm2, %v7559_v51  ;;  %v7610_v25 = vadd.f32 %v2525_v60, %v2438_v18  ;;  %v3390_v18 = vmul.f32 %v7714_v2, %v7595_v55 }
 0xaf4   :  { %5572 = vmatprep.mubr.msk.f32.mxu0 %vm6363_vm0, %v6364_v6  ;;  %5586 = vmatprep.subr.mxu1 %v6364_v6 }
 0xaf5   :  { %5611 = vmatprep.subr.mxu0 %v6364_v6 }
 0xaf6   :  { %5573 = vmatmul.mubr.msk.f32.gmra.mrb[96].mxu0 %vm80_vm1, %v2532_v1 }
 0xaf7   :  { %5587 = vmatpush3.msk.msra.mxu1 %vm717_vm3, %v7610_v25  ;;  %5575 = vmatprep.mubr.msk.f32.mxu0 %vm6363_vm0, %v6364_v6 }
 0xaf8   :  { %6009 = vmatprep.subr.bf16.mxu1 %v6362_v3 }
 0xafa   :  { %5576 = vmatmul.mubr.msk.f32.gmra.mrb[98].mxu0 %vm80_vm1, %v2533_v31 }
 0xafb   :  { %5612 = vmatpush3.xpose.msk.msra.mxu0 %vm80_vm1, %v7568_v16  ;;  %5613 = vmatprep.mubr.msk.f32.mxu0 %vm6363_vm0, %v6364_v6 }
 0xafc   :  { %6015 = vmatprep.subr.bf16.mxu0 %v6362_v3 }
 0xafe   :  { %5614 = vmatmul.mubr.msk.f32.vlgmr.msra.gmra.mrb[100].mxu0 %vm80_vm1, %v2827_v42 }
 0xaff   :  { %6018 = vmatpush3.bf16.xpose.msk.msra.mxu0 %vm6660_vm2, %v7552_v4  ;;  %5616 = vmatprep.mubr.msk.f32.mxu0 %vm6363_vm0, %v6364_v6 }
 0xb00   :  { %6019 = vmatprep.subr.bf16.mxu0 %v6362_v3 }
 0xb02   :  { %5617 = vmatmul.mubr.msk.f32.gmra.mrb[102].mxu0 %vm80_vm1, %v2828_v59 }
 0xb03   :  { %5619 = vmatprep.mubr.msk.f32.mxu0 %vm6363_vm0, %v6364_v6 }
 0xb06   :  { %5620 = vmatmul.mubr.msk.f32.gmra.mrb[104].mxu0 %vm80_vm1, %v2829_v46 }
 0xb07   :  { %6022 = vmatpush3.bf16.xpose.msk.msra.mxu0 %vm6660_vm2, %v7559_v51  ;;  %5622 = vmatprep.mubr.msk.f32.mxu0 %vm6363_vm0, %v6364_v6 }
 0xb08   :  { %5661 = vmatprep.subr.mxu0 %v6364_v6 }
 0xb0a   :  { %5623 = vmatmul.mubr.msk.f32.gmra.mrb[106].mxu0 %vm80_vm1, %v2830_v38 }
 0xb0b   :  { %5625 = vmatprep.mubr.msk.f32.mxu0 %vm6363_vm0, %v6364_v6 }
 0xb0e   :  { %5626 = vmatmul.mubr.msk.f32.gmra.mrb[108].mxu0 %vm80_vm1, %v2831_v54 }
 0xb0f   :  { %5662 = vmatpush3.xpose.msk.msra.mxu0 %vm80_vm1, %v7568_v16  ;;  %5663 = vmatprep.mubr.msk.f32.mxu0 %vm6363_vm0, %v6364_v6 }
 0xb10   :  { %6029 = vmatprep.subr.bf16.mxu0 %v6362_v3 }
 0xb12   :  { %5664 = vmatmul.mubr.msk.f32.vlgmr.msra.gmra.mrb[110].mxu0 %vm80_vm1, %v3107_v21 }
 0xb13   :  { %6032 = vmatpush3.bf16.xpose.msk.msra.mxu0 %vm6660_vm2, %v7552_v4  ;;  %5666 = vmatprep.mubr.msk.f32.mxu0 %vm6363_vm0, %v6364_v6  ;;  %v3110_v4 = vmul.f32 %v7673_v56, %v7595_v55 }
 0xb14   :  { %6033 = vmatprep.subr.bf16.mxu0 %v6362_v3 }
 0xb16   :  { %5667 = vmatmul.mubr.msk.f32.gmra.mrb[112].mxu0 %vm80_vm1, %v3108_v63 }
 0xb17   :  { %5669 = vmatprep.mubr.msk.f32.mxu0 %vm6363_vm0, %v6364_v6 }
 0xb1a   :  { %5670 = vmatmul.mubr.msk.f32.gmra.mrb[114].mxu0 %vm80_vm1, %v3109_v50 }
 0xb1b   :  { %6036 = vmatpush3.bf16.xpose.msk.msra.mxu0 %vm6660_vm2, %v7559_v51  ;;  %5672 = vmatprep.mubr.msk.f32.mxu0 %vm6363_vm0, %v6364_v6  ;;  %v3387_v51 = vmul.f32 %v7714_v2, %v7566_v7 }
 0xb1c   :  { %5711 = vmatprep.subr.mxu0 %v6364_v6 }
 0xb1e   :  { %5673 = vmatmul.mubr.msk.f32.gmra.mrb[116].mxu0 %vm80_vm1, %v3110_v4 }
 0xb1f   :  { %5675 = vmatprep.mubr.msk.f32.mxu0 %vm6363_vm0, %v6364_v6 }
 0xb22   :  { %5676 = vmatmul.mubr.msk.f32.gmra.mrb[118].mxu0 %vm80_vm1, %v3111_v58 }
 0xb23   :  { %5712 = vmatpush3.xpose.msk.msra.mxu0 %vm80_vm1, %v7568_v16  ;;  %5713 = vmatprep.mubr.msk.f32.mxu0 %vm6363_vm0, %v6364_v6 }
 0xb24   :  { %6043 = vmatprep.subr.bf16.mxu0 %v6362_v3 }
 0xb26   :  { %5714 = vmatmul.mubr.msk.f32.vlgmr.msra.gmra.mrb[120].mxu0 %vm80_vm1, %v3387_v51 }
 0xb27   :  { %5716 = vmatprep.mubr.msk.f32.mxu0 %vm6363_vm0, %v6364_v6 }
 0xb2a   :  { %5717 = vmatmul.mubr.msk.f32.gmra.mrb[122].mxu0 %vm80_vm1, %v3388_v11 }
 0xb2b   :  { %5719 = vmatprep.mubr.msk.f32.mxu0 %vm6363_vm0, %v6364_v6 }
 0xb2e   :  { %5720 = vmatmul.mubr.msk.f32.gmra.mrb[124].mxu0 %vm80_vm1, %v3389_v37 }
 0xb2f   :  { %5722 = vmatprep.mubr.msk.f32.mxu0 %vm6363_vm0, %v6364_v6 }
 0xb32   :  { %5723 = vmatmul.mubr.msk.f32.gmra.mrb[126].mxu0 %vm80_vm1, %v3390_v18 }
 0xb33   :  { %5725 = vmatprep.mubr.msk.f32.mxu0 %vm6363_vm0, %v6364_v6 }
 0xb36   :  { %5726 = vmatmul.mubr.msk.f32.gmra.mrb[128].mxu0 %vm80_vm1, %v3391_v12 }
 0xb37   :  { %5761 = vmatprep.mubr.msk.f32.mxu0 %vm6363_vm0, %v6364_v6 }
 0xbbd   :  { %v2630_v7 = vpop.f32.mrb[90].mxu0 }
 0xbbe   :  { %v7748_v16 = vadd.f32 %v7745_v39, %v2630_v7  ;;  %v5565_v23 = vpop.f32.mrb[91].mxu0 }
 0xbc0   :  { %v2654_v14 = vsel %vm645_vm4, %v7748_v16, -inf }
 0xbc1   :  { %2655 = vmax.xlane.f32.xlu0 %v2654_v14  ;;  %v2635_v28 = vpop.f32.mrb[92].mxu0 }
 0xbc2   :  { %v7758_v8 = vadd.f32 %v7755_v29, %v2635_v28  ;;  %v5568_v61 = vpop.f32.mrb[93].mxu0 }
 0xbc4   :  { %v2657_v5 = vsel %vm645_vm4, %v7758_v8, -inf }
 0xbc5   :  { %2658 = vmax.xlane.f32.xlu1 %v2657_v5  ;;  %v2640_v0 = vpop.f32.mrb[94].mxu0 }
 0xbc6   :  { %v7768_v32 = vadd.f32 %v7765_v20, %v2640_v0  ;;  %v5571_v17 = vpop.f32.mrb[95].mxu0 }
 0xbc8   :  { %v2660_v45 = vsel %vm645_vm4, %v7768_v32, -inf }
 0xbc9   :  { %2661 = vmax.xlane.f32.xlu0 %v2660_v45  ;;  %v2645_v47 = vpop.f32.mrb[96].mxu0 }
 0xbca   :  { %v7778_v43 = vadd.f32 %v7775_v26, %v2645_v47  ;;  %v5574_v49 = vpop.f32.mrb[97].mxu0 }
 0xbcc   :  { %v2663_v55 = vsel %vm645_vm4, %v7778_v43, -inf }
 0xbcd   :  { %2664 = vmax.xlane.f32.xlu1 %v2663_v55  ;;  %v2650_v34 = vpop.f32.mrb[98].mxu0 }
 0xbce   :  { %v7788_v60 = vadd.f32 %v7785_v13, %v2650_v34  ;;  %v5577_v44 = vpop.f32.mrb[99].mxu0 }
 0xbd0   :  { %v2666_v24 = vsel %vm658_vm5, %v7788_v60, -inf }
 0xbd1   :  { %2667 = vmax.xlane.f32.xlu0 %v2666_v24  ;;  %v2913_v1 = vpop.f32.mrb[100].mxu0 }
 0xbd2   :  { %v7793_v31 = vadd.f32 %v7745_v39, %v2913_v1  ;;  %v5615_v42 = vpop.f32.mrb[101].mxu0 }
 0xbd4   :  { %v2937_v59 = vsel %vm645_vm4, %v7793_v31, -inf }
 0xbd5   :  { %2938 = vmax.xlane.f32.xlu1 %v2937_v59  ;;  %v2918_v46 = vpop.f32.mrb[102].mxu0 }
 0xbd6   :  { %v7798_v38 = vadd.f32 %v7755_v29, %v2918_v46  ;;  %v5618_v54 = vpop.f32.mrb[103].mxu0 }
 0xbd8   :  { %v2940_v21 = vsel %vm645_vm4, %v7798_v38, -inf }
 0xbd9   :  { %2941 = vmax.xlane.f32.xlu0 %v2940_v21  ;;  %v2923_v63 = vpop.f32.mrb[104].mxu0 }
 0xbda   :  { %v7803_v50 = vadd.f32 %v7765_v20, %v2923_v63  ;;  %v5621_v4 = vpop.f32.mrb[105].mxu0 }
 0xbdc   :  { %v2943_v58 = vsel %vm645_vm4, %v7803_v50, -inf }
 0xbdd   :  { %2944 = vmax.xlane.f32.xlu1 %v2943_v58  ;;  %v2928_v51 = vpop.f32.mrb[106].mxu0 }
 0xbde   :  { %v7808_v11 = vadd.f32 %v7775_v26, %v2928_v51  ;;  %v5624_v37 = vpop.f32.mrb[107].mxu0 }
 0xbe0   :  { %v2946_v18 = vsel %vm645_vm4, %v7808_v11, -inf }
 0xbe1   :  { %2947 = vmax.xlane.f32.xlu0 %v2946_v18  ;;  %v2933_v12 = vpop.f32.mrb[108].mxu0 }
 0xbe2   :  { %v7813_v7 = vadd.f32 %v7785_v13, %v2933_v12  ;;  %v5627_v23 = vpop.f32.mrb[109].mxu0 }
 0xbe4   :  { %v2949_v14 = vsel %vm658_vm5, %v7813_v7, -inf }
 0xbe5   :  { %2950 = vmax.xlane.f32.xlu1 %v2949_v14  ;;  %v3193_v28 = vpop.f32.mrb[110].mxu0 }
 0xbe6   :  { %v7818_v61 = vadd.f32 %v7745_v39, %v3193_v28  ;;  %v5665_v5 = vpop.f32.mrb[111].mxu0 }
 0xbe8   :  { %v3217_v0 = vsel %vm645_vm4, %v7818_v61, -inf }
 0xbe9   :  { %3218 = vmax.xlane.f32.xlu0 %v3217_v0  ;;  %v3198_v17 = vpop.f32.mrb[112].mxu0 }
 0xbea   :  { %v7823_v45 = vadd.f32 %v7755_v29, %v3198_v17  ;;  %v5668_v47 = vpop.f32.mrb[113].mxu0 }
 0xbec   :  { %v3220_v49 = vsel %vm645_vm4, %v7823_v45, -inf }
 0xbed   :  { %3221 = vmax.xlane.f32.xlu1 %v3220_v49  ;;  %v3203_v55 = vpop.f32.mrb[114].mxu0 }
 0xbee   :  { %v7828_v34 = vadd.f32 %v7765_v20, %v3203_v55  ;;  %v5671_v44 = vpop.f32.mrb[115].mxu0 }
 0xbf0   :  { %v3223_v24 = vsel %vm645_vm4, %v7828_v34, -inf }
 0xbf1   :  { %3224 = vmax.xlane.f32.xlu0 %v3223_v24  ;;  %v3208_v1 = vpop.f32.mrb[116].mxu0 }
 0xbf2   :  { %v7833_v42 = vadd.f32 %v7775_v26, %v3208_v1  ;;  %v5674_v59 = vpop.f32.mrb[117].mxu0 }
 0xbf4   :  { %v3226_v46 = vsel %vm645_vm4, %v7833_v42, -inf }
 0xbf5   :  { %3227 = vmax.xlane.f32.xlu1 %v3226_v46  ;;  %v3213_v54 = vpop.f32.mrb[118].mxu0 }
 0xbf6   :  { %v7838_v21 = vadd.f32 %v7785_v13, %v3213_v54  ;;  %v5677_v63 = vpop.f32.mrb[119].mxu0 }
 0xbf8   :  { %v3229_v4 = vsel %vm658_vm5, %v7838_v21, -inf }
 0xbf9   :  { %3230 = vmax.xlane.f32.xlu0 %v3229_v4  ;;  %v3473_v58 = vpop.f32.mrb[120].mxu0 }
 0xbfa   :  { %v7843_v51 = vadd.f32 %v7745_v39, %v3473_v58  ;;  %v5715_v37 = vpop.f32.mrb[121].mxu0 }
 0xbfc   :  { %v3497_v18 = vsel %vm645_vm4, %v7843_v51, -inf }
 0xbfd   :  { %3498 = vmax.xlane.f32.xlu1 %v3497_v18  ;;  %v3478_v12 = vpop.f32.mrb[122].mxu0 }
 0xbfe   :  { %v7848_v23 = vadd.f32 %v7755_v29, %v3478_v12  ;;  %v5718_v14 = vpop.f32.mrb[123].mxu0 }
 0xc00   :  { %v3500_v28 = vsel %vm645_vm4, %v7848_v23, -inf }
 0xc01   :  { %3501 = vmax.xlane.f32.xlu0 %v3500_v28  ;;  %v3483_v5 = vpop.f32.mrb[124].mxu0 }
 0xc02   :  { %v7853_v0 = vadd.f32 %v7765_v20, %v3483_v5  ;;  %v5721_v39 = vpop.f32.mrb[125].mxu0 }
 0xc04   :  { %v3503_v17 = vsel %vm645_vm4, %v7853_v0, -inf }
 0xc05   :  { %3504 = vmax.xlane.f32.xlu1 %v3503_v17  ;;  %v3488_v47 = vpop.f32.mrb[126].mxu0 }
 0xc06   :  { %v7858_v49 = vadd.f32 %v7775_v26, %v3488_v47  ;;  %v5724_v29 = vpop.f32.mrb[127].mxu0 }
 0xc08   :  { %v3506_v55 = vsel %vm645_vm4, %v7858_v49, -inf }
 0xc09   :  { %3507 = vmax.xlane.f32.xlu0 %v3506_v55  ;;  %v3493_v44 = vpop.f32.mrb[128].mxu0 }
 0xc0a   :  { %v7863_v24 = vadd.f32 %v7785_v13, %v3493_v44  ;;  %v5727_v20 = vpop.f32.mrb[129].mxu0 }
 0xc0c   :  { %v3509_v1 = vsel %vm658_vm5, %v7863_v24, -inf }
 0xc0d   :  { %3510 = vmax.xlane.f32.xlu1 %v3509_v1 }
 0xc4e   :  { %v2656_v59 = vpop.xlane.xlu0 %2655 }
 0xc4f   :  { %v2669_v46 = vsub.f32 %v7748_v16, %v2656_v59 }
 0xc51   :  { %v2674_v54 = vmul.f32 1.442695, %v2669_v46 }
 0xc52   :  { %v2659_v26 = vpop.xlane.xlu1 %2658 }
 0xc53   :  { %6192 = vpow2.f32 %v2674_v54  ;;  %v2670_v63 = vsub.f32 %v7758_v8, %v2659_v26 }
 0xc55   :  { %v2676_v4 = vmul.f32 1.442695, %v2670_v63 }
 0xc56   :  { %v2662_v58 = vpop.xlane.xlu0 %2661 }
 0xc57   :  { %6194 = vpow2.f32 %v2676_v4  ;;  %v2671_v37 = vsub.f32 %v7768_v32, %v2662_v58 }
 0xc59   :  { %v2678_v13 = vmul.f32 1.442695, %v2671_v37 }
 0xc5a   :  { %v2665_v18 = vpop.xlane.xlu1 %2664 }
 0xc5b   :  { %6196 = vpow2.f32 %v2678_v13  ;;  %v2672_v12 = vsub.f32 %v7778_v43, %v2665_v18 }
 0xc5d   :  { %v7871_v14 = vpop.eup %6192  ;;  %v2680_v28 = vmul.f32 1.442695, %v2672_v12 }
 0xc5e   :  { %v2668_v5 = vpop.xlane.xlu0 %2667  ;;  %v2684_v16 = vsel %vm645_vm4, %v7871_v14, 0.0 }
 0xc5f   :  { %6198 = vpow2.f32 %v2680_v28  ;;  %v2673_v8 = vsub.f32 %v7788_v60, %v2668_v5  ;;  %2685 = vadd.xlane.f32.xlu0 %v2684_v16 }
 0xc61   :  { %v7876_v39 = vpop.eup %6194  ;;  %v2682_v17 = vmul.f32 1.442695, %v2673_v8 }
 0xc62   :  { %v2939_v32 = vpop.xlane.xlu1 %2938  ;;  %v2687_v47 = vsel %vm645_vm4, %v7876_v39, 0.0 }
 0xc63   :  { %6200 = vpow2.f32 %v2682_v17  ;;  %v2952_v43 = vsub.f32 %v7793_v31, %v2939_v32  ;;  %2688 = vadd.xlane.f32.xlu1 %v2687_v47 }
 0xc65   :  { %v7881_v29 = vpop.eup %6196  ;;  %v2957_v55 = vmul.f32 1.442695, %v2952_v43 }
 0xc66   :  { %v2942_v44 = vpop.xlane.xlu0 %2941  ;;  %v2690_v20 = vsel %vm645_vm4, %v7881_v29, 0.0 }
 0xc67   :  { %6202 = vpow2.f32 %v2957_v55  ;;  %v2953_v60 = vsub.f32 %v7798_v38, %v2942_v44  ;;  %2691 = vadd.xlane.f32.xlu0 %v2690_v20 }
 0xc69   :  { %v7886_v1 = vpop.eup %6198  ;;  %v2959_v59 = vmul.f32 1.442695, %v2953_v60 }
 0xc6a   :  { %v2945_v46 = vpop.xlane.xlu1 %2944  ;;  %v2693_v54 = vsel %vm645_vm4, %v7886_v1, 0.0 }
 0xc6b   :  { %6204 = vpow2.f32 %v2959_v59  ;;  %v2954_v31 = vsub.f32 %v7803_v50, %v2945_v46  ;;  %2694 = vadd.xlane.f32.xlu1 %v2693_v54 }
 0xc6d   :  { %v7891_v26 = vpop.eup %6200  ;;  %v2961_v63 = vmul.f32 1.442695, %v2954_v31 }
 0xc6e   :  { %v2948_v4 = vpop.xlane.xlu0 %2947  ;;  %v2696_v58 = vsel %vm658_vm5, %v7891_v26, 0.0 }
 0xc6f   :  { %6206 = vpow2.f32 %v2961_v63  ;;  %v2955_v38 = vsub.f32 %v7808_v11, %v2948_v4  ;;  %2697 = vadd.xlane.f32.xlu0 %v2696_v58 }
 0xc71   :  { %v7896_v37 = vpop.eup %6202  ;;  %v2963_v13 = vmul.f32 1.442695, %v2955_v38 }
 0xc72   :  { %v2951_v18 = vpop.xlane.xlu1 %2950  ;;  %v2967_v12 = vsel %vm645_vm4, %v7896_v37, 0.0 }
 0xc73   :  { %6208 = vpow2.f32 %v2963_v13  ;;  %v2956_v50 = vsub.f32 %v7813_v7, %v2951_v18  ;;  %2968 = vadd.xlane.f32.xlu1 %v2967_v12 }
 0xc75   :  { %v7901_v28 = vpop.eup %6204  ;;  %v2965_v5 = vmul.f32 1.442695, %v2956_v50 }
 0xc76   :  { %v3219_v16 = vpop.xlane.xlu0 %3218  ;;  %v2970_v8 = vsel %vm645_vm4, %v7901_v28, 0.0 }
 0xc77   :  { %6210 = vpow2.f32 %v2965_v5  ;;  %v3232_v11 = vsub.f32 %v7818_v61, %v3219_v16  ;;  %2971 = vadd.xlane.f32.xlu0 %v2970_v8 }
 0xc79   :  { %v7906_v17 = vpop.eup %6206  ;;  %v3237_v32 = vmul.f32 1.442695, %v3232_v11 }
 0xc7a   :  { %v3222_v47 = vpop.xlane.xlu1 %3221  ;;  %v2973_v43 = vsel %vm645_vm4, %v7906_v17, 0.0 }
 0xc7b   :  { %6212 = vpow2.f32 %v3237_v32  ;;  %v3233_v7 = vsub.f32 %v7823_v45, %v3222_v47  ;;  %2974 = vadd.xlane.f32.xlu1 %v2973_v43 }
 0xc7d   :  { %v7911_v55 = vpop.eup %6208  ;;  %v3239_v44 = vmul.f32 1.442695, %v3233_v7 }
 0xc7e   :  { %v3225_v20 = vpop.xlane.xlu0 %3224  ;;  %v2976_v60 = vsel %vm645_vm4, %v7911_v55, 0.0 }
 0xc7f   :  { %6214 = vpow2.f32 %v3239_v44  ;;  %v3234_v61 = vsub.f32 %v7828_v34, %v3225_v20  ;;  %2977 = vadd.xlane.f32.xlu0 %v2976_v60 }
 0xc81   :  { %v7916_v59 = vpop.eup %6210  ;;  %v3241_v46 = vmul.f32 1.442695, %v3234_v61 }
 0xc82   :  { %v3228_v54 = vpop.xlane.xlu1 %3227  ;;  %v2979_v31 = vsel %vm658_vm5, %v7916_v59, 0.0 }
 0xc83   :  { %6216 = vpow2.f32 %v3241_v46  ;;  %v3235_v45 = vsub.f32 %v7833_v42, %v3228_v54  ;;  %2980 = vadd.xlane.f32.xlu1 %v2979_v31 }
 0xc85   :  { %v7921_v63 = vpop.eup %6212  ;;  %v3243_v4 = vmul.f32 1.442695, %v3235_v45 }
 0xc86   :  { %v3231_v58 = vpop.xlane.xlu0 %3230  ;;  %v3247_v38 = vsel %vm645_vm4, %v7921_v63, 0.0 }
 0xc87   :  { %6218 = vpow2.f32 %v3243_v4  ;;  %v3236_v34 = vsub.f32 %v7838_v21, %v3231_v58  ;;  %3248 = vadd.xlane.f32.xlu0 %v3247_v38 }
 0xc89   :  { %v7926_v13 = vpop.eup %6214  ;;  %v3245_v18 = vmul.f32 1.442695, %v3236_v34 }
 0xc8a   :  { %v3499_v12 = vpop.xlane.xlu1 %3498  ;;  %v3250_v50 = vsel %vm645_vm4, %v7926_v13, 0.0 }
 0xc8b   :  { %6220 = vpow2.f32 %v3245_v18  ;;  %v3512_v42 = vsub.f32 %v7843_v51, %v3499_v12  ;;  %3251 = vadd.xlane.f32.xlu1 %v3250_v50 }
 0xc8d   :  { %v7931_v5 = vpop.eup %6216  ;;  %v3517_v16 = vmul.f32 1.442695, %v3512_v42 }
 0xc8e   :  { %v3502_v8 = vpop.xlane.xlu0 %3501  ;;  %v3253_v11 = vsel %vm645_vm4, %v7931_v5, 0.0 }
 0xc8f   :  { %6222 = vpow2.f32 %v3517_v16  ;;  %v3513_v21 = vsub.f32 %v7848_v23, %v3502_v8  ;;  %3254 = vadd.xlane.f32.xlu0 %v3253_v11 }
 0xc91   :  { %v7936_v32 = vpop.eup %6218  ;;  %v3519_v47 = vmul.f32 1.442695, %v3513_v21 }
 0xc92   :  { %v3505_v43 = vpop.xlane.xlu1 %3504  ;;  %v3256_v7 = vsel %vm645_vm4, %v7936_v32, 0.0 }
 0xc93   :  { %6224 = vpow2.f32 %v3519_v47  ;;  %v3514_v51 = vsub.f32 %v7853_v0, %v3505_v43  ;;  %3257 = vadd.xlane.f32.xlu1 %v3256_v7 }
 0xc95   :  { %v7941_v44 = vpop.eup %6220  ;;  %v3521_v20 = vmul.f32 1.442695, %v3514_v51 }
 0xc96   :  { %v3508_v60 = vpop.xlane.xlu0 %3507  ;;  %v3259_v61 = vsel %vm658_vm5, %v7941_v44, 0.0 }
 0xc97   :  { %6226 = vpow2.f32 %v3521_v20  ;;  %v3515_v23 = vsub.f32 %v7858_v49, %v3508_v60  ;;  %3260 = vadd.xlane.f32.xlu0 %v3259_v61 }
 0xc99   :  { %v7946_v46 = vpop.eup %6222  ;;  %v3523_v54 = vmul.f32 1.442695, %v3515_v23 }
 0xc9a   :  { %v3511_v31 = vpop.xlane.xlu1 %3510  ;;  %v3527_v45 = vsel %vm645_vm4, %v7946_v46, 0.0 }
 0xc9b   :  { %6228 = vpow2.f32 %v3523_v54  ;;  %v3516_v0 = vsub.f32 %v7863_v24, %v3511_v31  ;;  %3528 = vadd.xlane.f32.xlu1 %v3527_v45 }
 0xc9d   :  { %v7951_v4 = vpop.eup %6224  ;;  %v3525_v58 = vmul.f32 1.442695, %v3516_v0 }
 0xc9e   :  { %v3530_v38 = vsel %vm645_vm4, %v7951_v4, 0.0 }
 0xc9f   :  { %6230 = vpow2.f32 %v3525_v58  ;;  %3531 = vadd.xlane.f32.xlu0 %v3530_v38 }
 0xca1   :  { %v7955_v49 = vpop.eup %6226 }
 0xca2   :  { %v3533_v34 = vsel %vm645_vm4, %v7955_v49, 0.0 }
 0xca3   :  { %3534 = vadd.xlane.f32.xlu1 %v3533_v34 }
 0xca5   :  { %v7959_v18 = vpop.eup %6228 }
 0xca6   :  { %v3536_v24 = vsel %vm645_vm4, %v7959_v18, 0.0 }
 0xca7   :  { %3537 = vadd.xlane.f32.xlu0 %v3536_v24 }
 0xca9   :  { %v7963_v12 = vpop.eup %6230 }
 0xcaa   :  { %v3539_v50 = vsel %vm658_vm5, %v7963_v12, 0.0 }
 0xcab   :  { %3540 = vadd.xlane.f32.xlu1 %v3539_v50 }
 0xcec   :  { %v2686_v42 = vpop.xlane.xlu0 %2685 }
 0xced   :  { %6232 = vrcp.f32 %v2686_v42 }
 0xcf0   :  { %v2689_v16 = vpop.xlane.xlu1 %2688 }
 0xcf1   :  { %6234 = vrcp.f32 %v2689_v16 }
 0xcf4   :  { %v2692_v8 = vpop.xlane.xlu0 %2691 }
 0xcf5   :  { %6236 = vrcp.f32 %v2692_v8 }
 0xcf7   :  { %v6233_v11 = vpop.eup %6232 }
 0xcf8   :  { %v2704_v21 = vmul.f32 %v6233_v11, %v7871_v14  ;;  %v2695_v47 = vpop.xlane.xlu1 %2694 }
 0xcf9   :  { %6238 = vrcp.f32 %v2695_v47 }
 0xcfa   :  { %5589 = vmatmul.mubr.msk.f32.vlgmr.msra.gmra.mrb[90].mxu1 %vm645_vm4, %v2704_v21 }
 0xcfb   :  { %v6235_v43 = vpop.eup %6234  ;;  %6011 = vmatpush3.bf16.msra.mxu1 %v7576_v33  ;;  %5591 = vmatprep.mubr.msk.f32.mxu1 %vm6363_vm0, %v6364_v6 }
 0xcfc   :  { %v2698_v7 = vpop.xlane.xlu0 %2697  ;;  %6012 = vmatprep.subr.bf16.mxu1 %v6362_v3  ;;  %v2705_v51 = vmul.f32 %v6235_v43, %v7876_v39 }
 0xcfd   :  { %6240 = vrcp.f32 %v2698_v7 }
 0xcfe   :  { %5592 = vmatmul.mubr.msk.f32.gmra.mrb[92].mxu1 %vm645_vm4, %v2705_v51 }
 0xcff   :  { %v6237_v20 = vpop.eup %6236  ;;  %6014 = vmatpush3.bf16.msra.mxu1 %v7597_v9  ;;  %5594 = vmatprep.mubr.msk.f32.mxu1 %vm6363_vm0, %v6364_v6 }
 0xd00   :  { %v2969_v14 = vpop.xlane.xlu1 %2968  ;;  %5636 = vmatprep.subr.mxu1 %v6364_v6  ;;  %v2706_v60 = vmul.f32 %v6237_v20, %v7881_v29 }
 0xd01   :  { %6242 = vrcp.f32 %v2969_v14 }
 0xd02   :  { %5595 = vmatmul.mubr.msk.f32.gmra.mrb[94].mxu1 %vm645_vm4, %v2706_v60 }
 0xd03   :  { %v6239_v61 = vpop.eup %6238  ;;  %5637 = vmatpush3.msk.msra.mxu1 %vm717_vm3, %v7610_v25  ;;  %5597 = vmatprep.mubr.msk.f32.mxu1 %vm6363_vm0, %v6364_v6 }
 0xd04   :  { %v2972_v39 = vpop.xlane.xlu0 %2971  ;;  %v2707_v23 = vmul.f32 %v6239_v61, %v7886_v1  ;;  %6023 = vmatprep.subr.bf16.mxu1 %v6362_v3 }
 0xd05   :  { %6244 = vrcp.f32 %v2972_v39 }
 0xd06   :  { %5598 = vmatmul.mubr.msk.f32.gmra.mrb[96].mxu1 %vm645_vm4, %v2707_v23 }
 0xd07   :  { %v6241_v54 = vpop.eup %6240  ;;  %5600 = vmatprep.mubr.msk.f32.mxu1 %vm6363_vm0, %v6364_v6 }
 0xd08   :  { %v2975_v29 = vpop.xlane.xlu1 %2974  ;;  %v2708_v31 = vmul.f32 %v6241_v54, %v7891_v26 }
 0xd09   :  { %6246 = vrcp.f32 %v2975_v29 }
 0xd0a   :  { %5601 = vmatmul.mubr.msk.f32.gmra.mrb[98].mxu1 %vm645_vm4, %v2708_v31 }
 0xd0b   :  { %v6243_v45 = vpop.eup %6242  ;;  %5638 = vmatprep.mubr.msk.f32.mxu1 %vm6363_vm0, %v6364_v6 }
 0xd0c   :  { %v2987_v1 = vmul.f32 %v6243_v45, %v7896_v37  ;;  %v2978_v0 = vpop.xlane.xlu0 %2977 }
 0xd0d   :  { %6248 = vrcp.f32 %v2978_v0 }
 0xd0e   :  { %5639 = vmatmul.mubr.msk.f32.vlgmr.msra.gmra.mrb[100].mxu1 %vm645_vm4, %v2987_v1  ;;  %v4778_v1 = vld [vmem:[%s8381_s9 + $0x38] sm:$0xff] }
 0xd0f   :  { %v6245_v58 = vpop.eup %6244  ;;  %6025 = vmatpush3.bf16.msra.mxu1 %v7576_v33  ;;  %5641 = vmatprep.mubr.msk.f32.mxu1 %vm6363_vm0, %v6364_v6 }
 0xd10   :  { %v2981_v26 = vpop.xlane.xlu1 %2980  ;;  %6026 = vmatprep.subr.bf16.mxu1 %v6362_v3  ;;  %v2988_v38 = vmul.f32 %v6245_v58, %v7901_v28 }
 0xd11   :  { %6250 = vrcp.f32 %v2981_v26 }
 0xd12   :  { %5642 = vmatmul.mubr.msk.f32.gmra.mrb[102].mxu1 %vm645_vm4, %v2988_v38 }
 0xd13   :  { %v6247_v34 = vpop.eup %6246  ;;  %6028 = vmatpush3.bf16.msra.mxu1 %v7597_v9  ;;  %5644 = vmatprep.mubr.msk.f32.mxu1 %vm6363_vm0, %v6364_v6 }
 0xd14   :  { %v3249_v37 = vpop.xlane.xlu0 %3248  ;;  %5686 = vmatprep.subr.mxu1 %v6364_v6  ;;  %v2989_v24 = vmul.f32 %v6247_v34, %v7906_v17 }
 0xd15   :  { %6252 = vrcp.f32 %v3249_v37 }
 0xd16   :  { %5645 = vmatmul.mubr.msk.f32.gmra.mrb[104].mxu1 %vm645_vm4, %v2989_v24 }
 0xd17   :  { %v6249_v50 = vpop.eup %6248  ;;  %5687 = vmatpush3.msk.msra.mxu1 %vm717_vm3, %v7610_v25  ;;  %5647 = vmatprep.mubr.msk.f32.mxu1 %vm6363_vm0, %v6364_v6 }
 0xd18   :  { %v3252_v28 = vpop.xlane.xlu1 %3251  ;;  %v2990_v42 = vmul.f32 %v6249_v50, %v7911_v55  ;;  %6037 = vmatprep.subr.bf16.mxu1 %v6362_v3 }
 0xd19   :  { %6254 = vrcp.f32 %v3252_v28 }
 0xd1a   :  { %5648 = vmatmul.mubr.msk.f32.gmra.mrb[106].mxu1 %vm645_vm4, %v2990_v42 }
 0xd1b   :  { %v6251_v16 = vpop.eup %6250  ;;  %5650 = vmatprep.mubr.msk.f32.mxu1 %vm6363_vm0, %v6364_v6 }
 0xd1c   :  { %v3255_v17 = vpop.xlane.xlu0 %3254  ;;  %v2991_v8 = vmul.f32 %v6251_v16, %v7916_v59 }
 0xd1d   :  { %6256 = vrcp.f32 %v3255_v17 }
 0xd1e   :  { %5651 = vmatmul.mubr.msk.f32.gmra.mrb[108].mxu1 %vm645_vm4, %v2991_v8  ;;  %v6312_v8 = vld [vmem:[%s8408_s21] ss:$0 sm:$0xff] }
 0xd1f   :  { %v6253_v11 = vpop.eup %6252  ;;  %5688 = vmatprep.mubr.msk.f32.mxu1 %vm6363_vm0, %v6364_v6 }
 0xd20   :  { %v3267_v55 = vmul.f32 %v6253_v11, %v7921_v63  ;;  %v3258_v21 = vpop.xlane.xlu1 %3257 }
 0xd21   :  { %6258 = vrcp.f32 %v3258_v21 }
 0xd22   :  { %5689 = vmatmul.mubr.msk.f32.vlgmr.msra.gmra.mrb[110].mxu1 %vm645_vm4, %v3267_v55 }
 0xd23   :  { %v6255_v47 = vpop.eup %6254  ;;  %6039 = vmatpush3.bf16.msra.mxu1 %v7576_v33  ;;  %5691 = vmatprep.mubr.msk.f32.mxu1 %vm6363_vm0, %v6364_v6 }
 0xd24   :  { %v3261_v59 = vpop.xlane.xlu0 %3260  ;;  %6040 = vmatprep.subr.bf16.mxu1 %v6362_v3  ;;  %v3268_v43 = vmul.f32 %v6255_v47, %v7926_v13 }
 0xd25   :  { %6260 = vrcp.f32 %v3261_v59 }
 0xd26   :  { %5692 = vmatmul.mubr.msk.f32.gmra.mrb[112].mxu1 %vm645_vm4, %v3268_v43 }
 0xd27   :  { %v6257_v7 = vpop.eup %6256  ;;  %6042 = vmatpush3.bf16.msra.mxu1 %v7597_v9  ;;  %5694 = vmatprep.mubr.msk.f32.mxu1 %vm6363_vm0, %v6364_v6 }
 0xd28   :  { %v3529_v63 = vpop.xlane.xlu1 %3528  ;;  %5736 = vmatprep.subr.mxu1 %v6364_v6  ;;  %v3269_v33 = vmul.f32 %v6257_v7, %v7931_v5 }
 0xd29   :  { %6262 = vrcp.f32 %v3529_v63 }
 0xd2a   :  { %5695 = vmatmul.mubr.msk.f32.gmra.mrb[114].mxu1 %vm645_vm4, %v3269_v33 }
 0xd2b   :  { %v6259_v51 = vpop.eup %6258  ;;  %5737 = vmatpush3.msk.msra.mxu1 %vm717_vm3, %v7610_v25  ;;  %5697 = vmatprep.mubr.msk.f32.mxu1 %vm6363_vm0, %v6364_v6 }
 0xd2c   :  { %v3532_v13 = vpop.xlane.xlu0 %3531  ;;  %v3270_v9 = vmul.f32 %v6259_v51, %v7936_v32  ;;  %6049 = vmatprep.subr.bf16.mxu1 %v6362_v3 }
 0xd2d   :  { %6264 = vrcp.f32 %v3532_v13 }
 0xd2e   :  { %5698 = vmatmul.mubr.msk.f32.gmra.mrb[116].mxu1 %vm645_vm4, %v3270_v9 }
 0xd2f   :  { %v6261_v20 = vpop.eup %6260  ;;  %5700 = vmatprep.mubr.msk.f32.mxu1 %vm6363_vm0, %v6364_v6 }
 0xd30   :  { %v3535_v5 = vpop.xlane.xlu1 %3534  ;;  %v3271_v14 = vmul.f32 %v6261_v20, %v7941_v44 }
 0xd31   :  { %6266 = vrcp.f32 %v3535_v5 }
 0xd32   :  { %5701 = vmatmul.mubr.msk.f32.gmra.mrb[118].mxu1 %vm645_vm4, %v3271_v14 }
 0xd33   :  { %v6263_v25 = vpop.eup %6262  ;;  %5738 = vmatprep.mubr.msk.f32.mxu1 %vm6363_vm0, %v6364_v6 }
 0xd34   :  { %v3547_v32 = vmul.f32 %v6263_v25, %v7946_v46  ;;  %v3538_v60 = vpop.xlane.xlu0 %3537 }
 0xd35   :  { %6268 = vrcp.f32 %v3538_v60 }
 0xd36   :  { %5739 = vmatmul.mubr.msk.f32.vlgmr.msra.gmra.mrb[120].mxu1 %vm645_vm4, %v3547_v32 }
 0xd37   :  { %v6265_v61 = vpop.eup %6264  ;;  %5741 = vmatprep.mubr.msk.f32.mxu1 %vm6363_vm0, %v6364_v6 }
 0xd38   :  { %v3541_v39 = vpop.xlane.xlu1 %3540  ;;  %v3548_v44 = vmul.f32 %v6265_v61, %v7951_v4 }
 0xd39   :  { %6270 = vrcp.f32 %v3541_v39 }
 0xd3a   :  { %5742 = vmatmul.mubr.msk.f32.gmra.mrb[122].mxu1 %vm645_vm4, %v3548_v44 }
 0xd3b   :  { %v6267_v23 = vpop.eup %6266  ;;  %5744 = vmatprep.mubr.msk.f32.mxu1 %vm6363_vm0, %v6364_v6 }
 0xd3c   :  { %v3549_v46 = vmul.f32 %v6267_v23, %v7955_v49  ;;  %v4775_v49 = vld [vmem:[%s8381_s9 + $0x20] sm:$0xff] }
 0xd3e   :  { %5745 = vmatmul.mubr.msk.f32.gmra.mrb[124].mxu1 %vm645_vm4, %v3549_v46 }
 0xd3f   :  { %v6269_v54 = vpop.eup %6268  ;;  %5747 = vmatprep.mubr.msk.f32.mxu1 %vm6363_vm0, %v6364_v6 }
 0xd40   :  { %v3550_v29 = vmul.f32 %v6269_v54, %v7959_v18  ;;  %v4776_v18 = vld [vmem:[%s8381_s9 + $0x28] sm:$0xff] }
 0xd41   :  { %v6044_v45 = vpack.c.bf16 %v4776_v18, %v4775_v49 }
 0xd42   :  { %5748 = vmatmul.mubr.msk.f32.gmra.mrb[126].mxu1 %vm645_vm4, %v3550_v29 }
 0xd43   :  { %v6271_v4 = vpop.eup %6270  ;;  %5750 = vmatprep.mubr.msk.f32.mxu1 %vm6363_vm0, %v6364_v6  ;;  %6045 = vmatpush3.bf16.msra.mxu0 %v6044_v45 }
 0xd44   :  { %v3551_v31 = vmul.f32 %v6271_v4, %v7963_v12  ;;  %6046 = vmatprep.subr.bf16.mxu0 %v6362_v3  ;;  %v4777_v12 = vld [vmem:[%s8381_s9 + $0x30] sm:$0xff] }
 0xd45   :  { %v6047_v0 = vpack.c.bf16 %v4778_v1, %v4777_v12 }
 0xd46   :  { %5751 = vmatmul.mubr.msk.f32.gmra.mrb[128].mxu1 %vm645_vm4, %v3551_v31 }
 0xd47   :  { %5784 = vmatprep.mubr.msk.f32.mxu1 %vm6363_vm0, %v6364_v6  ;;  %6048 = vmatpush3.bf16.msra.mxu0 %v6047_v0 }
 0xd48   :  { %6055 = vmatprep.subr.bf16.mxu0 %v6362_v3 }
 0xdcd   :  { %v2793_v58 = vpop.f32.mrb[90].mxu1 }
 0xdce   :  { %v5590_v26 = vpop.f32.mrb[91].mxu1  ;;  %v2817_v11 = vmul.f32 %v6312_v8, %v2793_v58 }
 0xdd1   :  { %v2798_v38 = vpop.f32.mrb[92].mxu1 }
 0xdd2   :  { %v5593_v34 = vpop.f32.mrb[93].mxu1  ;;  %v2818_v43 = vmul.f32 %v6312_v8, %v2798_v38 }
 0xdd5   :  { %v2803_v37 = vpop.f32.mrb[94].mxu1 }
 0xdd6   :  { %v5596_v24 = vpop.f32.mrb[95].mxu1  ;;  %v2819_v13 = vmul.f32 %v6312_v8, %v2803_v37 }
 0xdd9   :  { %v2808_v50 = vpop.f32.mrb[96].mxu1 }
 0xdda   :  { %v5599_v28 = vpop.f32.mrb[97].mxu1  ;;  %v2820_v25 = vmul.f32 %v6312_v8, %v2808_v50 }
 0xddd   :  { %v2813_v42 = vpop.f32.mrb[98].mxu1 }
 0xdde   :  { %v5602_v16 = vpop.f32.mrb[99].mxu1  ;;  %v2821_v44 = vmul.f32 %v6312_v8, %v2813_v42 }
 0xde1   :  { %v3073_v17 = vpop.f32.mrb[100].mxu1 }
 0xde2   :  { %v3097_v55 = vmul.f32 %v7632_v30, %v3073_v17  ;;  %v5640_v21 = vpop.f32.mrb[101].mxu1 }
 0xde4   :  { %v3102_v47 = vadd.f32 %v3097_v55, %v2817_v11 }
 0xde5   :  { %v3078_v59 = vpop.f32.mrb[102].mxu1 }
 0xde6   :  { %v3098_v7 = vmul.f32 %v7632_v30, %v3078_v59  ;;  %v5643_v63 = vpop.f32.mrb[103].mxu1 }
 0xde8   :  { %v3103_v33 = vadd.f32 %v3098_v7, %v2818_v43 }
 0xde9   :  { %v3083_v51 = vpop.f32.mrb[104].mxu1 }
 0xdea   :  { %v3099_v9 = vmul.f32 %v7632_v30, %v3083_v51  ;;  %v5646_v20 = vpop.f32.mrb[105].mxu1 }
 0xdec   :  { %v3104_v5 = vadd.f32 %v3099_v9, %v2819_v13 }
 0xded   :  { %v3088_v14 = vpop.f32.mrb[106].mxu1 }
 0xdee   :  { %v3100_v32 = vmul.f32 %v7632_v30, %v3088_v14  ;;  %v5649_v60 = vpop.f32.mrb[107].mxu1 }
 0xdef   :  { %v8118_v60 = vld [vmem:[%s8385_s13 + $0x10] sm:$0xff] }
 0xdf0   :  { %v3105_v61 = vadd.f32 %v3100_v32, %v2820_v25 }
 0xdf1   :  { %v3093_v39 = vpop.f32.mrb[108].mxu1 }
 0xdf2   :  { %v3101_v23 = vmul.f32 %v7632_v30, %v3093_v39  ;;  %v5652_v46 = vpop.f32.mrb[109].mxu1 }
 0xdf4   :  { %v3106_v54 = vadd.f32 %v3101_v23, %v2821_v44 }
 0xdf5   :  { %v3353_v29 = vpop.f32.mrb[110].mxu1 }
 0xdf6   :  { %v3377_v4 = vmul.f32 %v7673_v56, %v3353_v29  ;;  %v5690_v31 = vpop.f32.mrb[111].mxu1 }
 0xdf8   :  { %v3382_v49 = vadd.f32 %v3377_v4, %v3102_v47 }
 0xdf9   :  { %v3358_v18 = vpop.f32.mrb[112].mxu1 }
 0xdfa   :  { %v3378_v45 = vmul.f32 %v7673_v56, %v3358_v18  ;;  %v5693_v12 = vpop.f32.mrb[113].mxu1 }
 0xdfc   :  { %v3383_v1 = vadd.f32 %v3378_v45, %v3103_v33 }
 0xdfd   :  { %v3363_v0 = vpop.f32.mrb[114].mxu1 }
 0xdfe   :  { %v3379_v58 = vmul.f32 %v7673_v56, %v3363_v0  ;;  %v5696_v26 = vpop.f32.mrb[115].mxu1 }
 0xe00   :  { %v3384_v38 = vadd.f32 %v3379_v58, %v3104_v5 }
 0xe01   :  { %v3368_v34 = vpop.f32.mrb[116].mxu1 }
 0xe02   :  { %v3380_v30 = vmul.f32 %v7673_v56, %v3368_v34  ;;  %v5699_v37 = vpop.f32.mrb[117].mxu1 }
 0xe04   :  { %v3385_v24 = vadd.f32 %v3380_v30, %v3105_v61 }
 0xe05   :  { %v3373_v50 = vpop.f32.mrb[118].mxu1 }
 0xe06   :  { %v3381_v28 = vmul.f32 %v7673_v56, %v3373_v50  ;;  %v5702_v42 = vpop.f32.mrb[119].mxu1 }
 0xe08   :  { %v3386_v16 = vadd.f32 %v3381_v28, %v3106_v54 }
 0xe09   :  { %v3633_v17 = vpop.f32.mrb[120].mxu1 }
 0xe0a   :  { %v3657_v8 = vmul.f32 %v7714_v2, %v3633_v17  ;;  %v5740_v11 = vpop.f32.mrb[121].mxu1 }
 0xe0c   :  { %v3662_v55 = vadd.f32 %v3657_v8, %v3382_v49 }
 0xe0d   :  { %v3638_v21 = vpop.f32.mrb[122].mxu1 }
 0xe0e   :  { %v3658_v47 = vmul.f32 %v7714_v2, %v3638_v21  ;;  %v5743_v59 = vpop.f32.mrb[123].mxu1  ;;  %5762 = vmatmul.mubr.msk.f32.vlgmr.msra.gmra.mrb[130].mxu0 %vm80_vm1, %v3662_v55 }
 0xe0f   :  { %5764 = vmatprep.mubr.msk.f32.mxu0 %vm6363_vm0, %v6364_v6 }
 0xe10   :  { %v3663_v43 = vadd.f32 %v3658_v47, %v3383_v1 }
 0xe11   :  { %v3643_v7 = vpop.f32.mrb[124].mxu1 }
 0xe12   :  { %v3659_v56 = vmul.f32 %v7714_v2, %v3643_v7  ;;  %v5746_v63 = vpop.f32.mrb[125].mxu1  ;;  %5765 = vmatmul.mubr.msk.f32.gmra.mrb[132].mxu0 %vm80_vm1, %v3663_v43 }
 0xe13   :  { %5767 = vmatprep.mubr.msk.f32.mxu0 %vm6363_vm0, %v6364_v6 }
 0xe14   :  { %v3664_v33 = vadd.f32 %v3659_v56, %v3384_v38 }
 0xe15   :  { %v3648_v51 = vpop.f32.mrb[126].mxu1 }
 0xe16   :  { %v3660_v13 = vmul.f32 %v7714_v2, %v3648_v51  ;;  %v5749_v9 = vpop.f32.mrb[127].mxu1  ;;  %5768 = vmatmul.mubr.msk.f32.gmra.mrb[134].mxu0 %vm80_vm1, %v3664_v33 }
 0xe17   :  { %5770 = vmatprep.mubr.msk.f32.mxu0 %vm6363_vm0, %v6364_v6 }
 0xe18   :  { %v3665_v20 = vadd.f32 %v3660_v13, %v3385_v24 }
 0xe19   :  { %v3653_v5 = vpop.f32.mrb[128].mxu1 }
 0xe1a   :  { %v3661_v14 = vmul.f32 %v7714_v2, %v3653_v5  ;;  %v5752_v25 = vpop.f32.mrb[129].mxu1  ;;  %5771 = vmatmul.mubr.msk.f32.gmra.mrb[136].mxu0 %vm80_vm1, %v3665_v20  ;;  %v3675_v2 = vrot.slane %v8118_v60, %v1685_v40 }
 0xe1b   :  { %5773 = vmatprep.mubr.msk.f32.mxu0 %vm6363_vm0, %v6364_v6  ;;  %v4784_v25 = vld [vmem:[%s8382_s10 + $0x20] sm:$0xff] }
 0xe1c   :  { %v3666_v32 = vadd.f32 %v3661_v14, %v3386_v16 }
 0xe1e   :  { %5774 = vmatmul.mubr.msk.f32.gmra.mrb[138].mxu0 %vm80_vm1, %v3666_v32  ;;  %v4785_v32 = vld [vmem:[%s8382_s10 + $0x28] sm:$0xff] }
 0xe1f   :  { %5815 = vmatprep.mubr.msk.f32.mxu0 %vm6363_vm0, %v6364_v6 }
 0xee1   :  { %v3757_v61 = vpop.f32.mrb[130].mxu0 }
 0xee2   :  { %v3758_v39 = vadd.f32 %v3757_v61, %v3675_v2  ;;  %v5763_v44 = vpop.f32.mrb[131].mxu0  ;;  %v4786_v61 = vld [vmem:[%s8382_s10 + $0x30] sm:$0xff] }
 0xee4   :  { %v3781_v23 = vadd.f32 %v3758_v39, %v7466_v62  ;;  %v4787_v39 = vld [vmem:[%s8382_s10 + $0x38] sm:$0xff] }
 0xee5   :  { %v3762_v46 = vpop.f32.mrb[132].mxu0  ;;  %v6053_v44 = vpack.c.bf16 %v4787_v39, %v4786_v61 }
 0xee6   :  { %v3763_v54 = vadd.f32 %v3762_v46, %v3675_v2  ;;  %v5766_v29 = vpop.f32.mrb[133].mxu0  ;;  %v3786_v4 = vsel %vm80_vm1, %v3781_v23, 0.0  ;;  %v4796_v46 = vld [vmem:[%s8384_s12 + $0x48] sm:$0xff] }
 0xee7   :  { %3787 = vadd.xlane.f32.xlu0 %v3786_v4  ;;  %v4798_v4 = vld [vmem:[%s8384_s12 + $0x58] sm:$0xff] }
 0xee8   :  { %v3782_v31 = vadd.f32 %v3763_v54, %v7483_v57  ;;  %v4797_v54 = vld [vmem:[%s8384_s12 + $0x50] sm:$0xff] }
 0xee9   :  { %v3767_v49 = vpop.f32.mrb[134].mxu0 }
 0xeea   :  { %v3768_v18 = vadd.f32 %v3767_v49, %v3675_v2  ;;  %v5769_v45 = vpop.f32.mrb[135].mxu0  ;;  %v3789_v12 = vsel %vm80_vm1, %v3782_v31, 0.0  ;;  %v4799_v49 = vld [vmem:[%s8384_s12 + $0x60] sm:$0xff] }
 0xeeb   :  { %3790 = vadd.xlane.f32.xlu1 %v3789_v12 }
 0xeec   :  { %v3783_v40 = vadd.f32 %v3768_v18, %v7495_v27  ;;  %v4800_v18 = vld [vmem:[%s8384_s12 + $0x68] sm:$0xff] }
 0xeed   :  { %v3772_v1 = vpop.f32.mrb[136].mxu0  ;;  %v6062_v45 = vpack.c.bf16 %v4800_v18, %v4799_v49 }
 0xeee   :  { %v3773_v0 = vadd.f32 %v3772_v1, %v3675_v2  ;;  %v5772_v58 = vpop.f32.mrb[137].mxu0  ;;  %v3792_v62 = vsel %vm80_vm1, %v3783_v40, 0.0 }
 0xeef   :  { %3793 = vadd.xlane.f32.xlu0 %v3792_v62 }
 0xef0   :  { %v3784_v26 = vadd.f32 %v3773_v0, %v7507_v41 }
 0xef1   :  { %v3777_v38 = vpop.f32.mrb[138].mxu0 }
 0xef2   :  { %v3778_v34 = vadd.f32 %v3777_v38, %v3675_v2  ;;  %v5775_v30 = vpop.f32.mrb[139].mxu0  ;;  %v3795_v57 = vsel %vm80_vm1, %v3784_v26, 0.0  ;;  %v6050_v2 = vpack.c.bf16 %v4785_v32, %v4784_v25  ;;  %v4789_v25 = vld [vmem:[%s8383_s11 + $0x1] ss:$0 sm:$0xff] }
 0xef3   :  { %3796 = vadd.xlane.f32.xlu1 %v3795_v57 }
 0xef4   :  { %v3785_v37 = vadd.f32 %v3778_v34, %v7518_v15  ;;  %6051 = vmatpush3.bf16.msra.mxu1 %v6050_v2 }
 0xef5   :  { %6052 = vmatprep.subr.bf16.mxu1 %v6362_v3 }
 0xef6   :  { %v3798_v24 = vsel %vm1809_vm6, %v3785_v37, 0.0 }
 0xef7   :  { %3799 = vadd.xlane.f32.xlu0 %v3798_v24 }
 0xef8   :  { %6054 = vmatpush3.bf16.msra.mxu1 %v6053_v44 }
 0xef9   :  { %6067 = vmatprep.subr.bf16.mxu1 %v6362_v3 }
 0xf74   :  { %v3788_v27 = vpop.xlane.xlu0 %3787 }
 0xf75   :  { %v3801_v50 = vmul.f32 0.03125, %v3788_v27 }
 0xf77   :  { %v8133_v28 = vsub.f32 %v3781_v23, %v3801_v50  ;;  %v4795_v23 = vld [vmem:[%s8384_s12 + $0x40] sm:$0xff]  ;;  %v3863_v50 = vrot.slane %v8118_v60, %v1875_v19 }
 0xf78   :  { %v3791_v42 = vpop.xlane.xlu1 %3790  ;;  %v6056_v29 = vpack.c.bf16 %v4796_v46, %v4795_v23 }
 0xf79   :  { %v3802_v16 = vmul.f32 0.03125, %v3791_v42  ;;  %v3811_v41 = vmul.f32 %v8133_v28, %v8133_v28 }
 0xf7a   :  { %6057 = vmatpush3.bf16.msra.mxu0 %v6056_v29 }
 0xf7b   :  { %v8137_v17 = vsub.f32 %v3782_v31, %v3802_v16  ;;  %v3816_v8 = vsel %vm80_vm1, %v3811_v41, 0.0  ;;  %v6059_v31 = vpack.c.bf16 %v4798_v4, %v4797_v54  ;;  %6058 = vmatprep.subr.bf16.mxu0 %v6362_v3 }
 0xf7c   :  { %v3794_v11 = vpop.xlane.xlu0 %3793  ;;  %3817 = vadd.xlane.f32.xlu1 %v3816_v8 }
 0xf7d   :  { %v3803_v55 = vmul.f32 0.03125, %v3794_v11  ;;  %v3812_v15 = vmul.f32 %v8137_v17, %v8137_v17 }
 0xf7e   :  { %6060 = vmatpush3.bf16.msra.mxu0 %v6059_v31 }
 0xf7f   :  { %v8142_v21 = vsub.f32 %v3783_v40, %v3803_v55  ;;  %v3819_v47 = vsel %vm80_vm1, %v3812_v15, 0.0  ;;  %6061 = vmatprep.subr.bf16.mxu0 %v6362_v3 }
 0xf80   :  { %v3797_v59 = vpop.xlane.xlu1 %3796  ;;  %3820 = vadd.xlane.f32.xlu0 %v3819_v47 }
 0xf81   :  { %v3804_v43 = vmul.f32 0.03125, %v3797_v59  ;;  %v3813_v7 = vmul.f32 %v8142_v21, %v8142_v21 }
 0xf82   :  { %6063 = vmatpush3.bf16.msra.mxu0 %v6062_v45 }
 0xf83   :  { %v8147_v56 = vsub.f32 %v3784_v26, %v3804_v43  ;;  %v3822_v63 = vsel %vm80_vm1, %v3813_v7, 0.0  ;;  %6064 = vmatprep.subr.bf16.mxu0 %v6362_v3 }
 0xf84   :  { %3823 = vadd.xlane.f32.xlu1 %v3822_v63  ;;  %v3800_v33 = vpop.xlane.xlu0 %3799 }
 0xf85   :  { %v3805_v51 = vmul.f32 0.03125, %v3800_v33  ;;  %v3814_v13 = vmul.f32 %v8147_v56, %v8147_v56 }
 0xf87   :  { %v8152_v9 = vsub.f32 %v3785_v37, %v3805_v51  ;;  %v3825_v20 = vsel %vm80_vm1, %v3814_v13, 0.0  ;;  %v3854_v37 = vrot.slane %v8118_v60, %v1866_v35 }
 0xf88   :  { %3826 = vadd.xlane.f32.xlu0 %v3825_v20 }
 0xf89   :  { %v3815_v5 = vmul.f32 %v8152_v9, %v8152_v9 }
 0xf8b   :  { %v3828_v14 = vsel %vm1809_vm6, %v3815_v5, 0.0  ;;  %v4801_v5 = vld [vmem:[%s8384_s12 + $0x70] sm:$0xff] }
 0xf8c   :  { %3829 = vadd.xlane.f32.xlu1 %v3828_v14 }
0x1009   :  { %v3818_v12 = vpop.xlane.xlu1 %3817 }
0x100a   :  { %v3831_v40 = vmul.f32 0.03125, %v3818_v12 }
0x100c   :  { %v3836_v1 = vadd.f32 1e-05, %v3831_v40 }
0x100d   :  { %v3821_v0 = vpop.xlane.xlu0 %3820 }
0x100e   :  { %6272 = vrsqrt.f32 %v3836_v1  ;;  %v3832_v58 = vmul.f32 0.03125, %v3821_v0 }
0x1010   :  { %v3837_v62 = vadd.f32 1e-05, %v3832_v58 }
0x1011   :  { %v3824_v26 = vpop.xlane.xlu1 %3823 }
0x1012   :  { %6274 = vrsqrt.f32 %v3837_v62  ;;  %v3833_v38 = vmul.f32 0.03125, %v3824_v26  ;;  %v4004_v26 = vrot.slane %v8118_v60, %v2013_v36 }
0x1014   :  { %v3838_v34 = vadd.f32 1e-05, %v3833_v38 }
0x1015   :  { %v3827_v30 = vpop.xlane.xlu0 %3826 }
0x1016   :  { %6276 = vrsqrt.f32 %v3838_v34  ;;  %v3834_v57 = vmul.f32 0.03125, %v3827_v30 }
0x1018   :  { %v6273_v24 = vpop.eup %6272  ;;  %v3839_v27 = vadd.f32 1e-05, %v3834_v57 }
0x1019   :  { %v3846_v42 = vmul.f32 %v6273_v24, %v8133_v28  ;;  %v3830_v16 = vpop.xlane.xlu1 %3829 }
0x101a   :  { %6278 = vrsqrt.f32 %v3839_v27  ;;  %v3835_v41 = vmul.f32 0.03125, %v3830_v16 }
0x101b   :  { %v3855_v8 = vmul.f32 %v3854_v37, %v3846_v42 }
0x101c   :  { %v6275_v11 = vpop.eup %6274  ;;  %v3840_v55 = vadd.f32 1e-05, %v3835_v41 }
0x101d   :  { %v8200_v15 = vadd.f32 %v3863_v50, %v3855_v8  ;;  %v3847_v47 = vmul.f32 %v6275_v11, %v8137_v17 }
0x101e   :  { %6280 = vrsqrt.f32 %v3840_v55 }
0x101f   :  { %5785 = vmatmul.mubr.msk.f32.vlgmr.msra.gmra.mrb[130].mxu1 %vm80_vm1, %v8200_v15  ;;  %v3856_v35 = vmul.f32 %v3854_v37, %v3847_v47 }
0x1020   :  { %v6277_v59 = vpop.eup %6276  ;;  %5787 = vmatprep.mubr.msk.f32.mxu1 %vm6363_vm0, %v6364_v6 }
0x1021   :  { %v8207_v19 = vadd.f32 %v3863_v50, %v3856_v35  ;;  %v3848_v28 = vmul.f32 %v6277_v59, %v8142_v21 }
0x1023   :  { %5788 = vmatmul.mubr.msk.f32.gmra.mrb[132].mxu1 %vm80_vm1, %v8207_v19  ;;  %v3857_v43 = vmul.f32 %v3854_v37, %v3848_v28 }
0x1024   :  { %v6279_v7 = vpop.eup %6278  ;;  %5790 = vmatprep.mubr.msk.f32.mxu1 %vm6363_vm0, %v6364_v6 }
0x1025   :  { %v8214_v17 = vadd.f32 %v3863_v50, %v3857_v43  ;;  %v3849_v63 = vmul.f32 %v6279_v7, %v8147_v56 }
0x1027   :  { %5791 = vmatmul.mubr.msk.f32.gmra.mrb[134].mxu1 %vm80_vm1, %v8214_v17  ;;  %v3858_v33 = vmul.f32 %v3854_v37, %v3849_v63 }
0x1028   :  { %v6281_v51 = vpop.eup %6280  ;;  %5793 = vmatprep.mubr.msk.f32.mxu1 %vm6363_vm0, %v6364_v6 }
0x1029   :  { %v8221_v21 = vadd.f32 %v3863_v50, %v3858_v33  ;;  %v3850_v13 = vmul.f32 %v6281_v51, %v8152_v9  ;;  %v4802_v9 = vld [vmem:[%s8384_s12 + $0x78] sm:$0xff] }
0x102a   :  { %v6065_v14 = vpack.c.bf16 %v4802_v9, %v4801_v5 }
0x102b   :  { %5794 = vmatmul.mubr.msk.f32.gmra.mrb[136].mxu1 %vm80_vm1, %v8221_v21  ;;  %v3859_v20 = vmul.f32 %v3854_v37, %v3850_v13 }
0x102c   :  { %5796 = vmatprep.mubr.msk.f32.mxu1 %vm6363_vm0, %v6364_v6  ;;  %6066 = vmatpush3.bf16.msra.mxu0 %v6065_v14 }
0x102d   :  { %v8228_v56 = vadd.f32 %v3863_v50, %v3859_v20 }
0x102f   :  { %5797 = vmatmul.mubr.msk.f32.gmra.mrb[138].mxu1 %vm80_vm1, %v8228_v56 }
0x1030   :  { %5840 = vmatprep.mubr.msk.f32.mxu1 %vm6363_vm0, %v6364_v6 }
0x10f2   :  { %v3963_v32 = vpop.f32.mrb[130].mxu1 }
0x10f3   :  { %v3964_v2 = vadd.f32 %v4789_v25, %v3963_v32  ;;  %v5786_v61 = vpop.f32.mrb[131].mxu1 }
0x10f5   :  { %v3987_v39 = vmax.f32 %v3964_v2, 0.0 }
0x10f6   :  { %v3968_v44 = vpop.f32.mrb[132].mxu1 }
0x10f7   :  { %v3969_v23 = vadd.f32 %v4789_v25, %v3968_v44  ;;  %v5789_v46 = vpop.f32.mrb[133].mxu1  ;;  %5816 = vmatmul.mubr.msk.f32.vlgmr.msra.gmra.mrb[140].mxu0 %vm2015_vm7, %v3987_v39 }
0x10f8   :  { %5818 = vmatprep.mubr.msk.f32.mxu0 %vm6363_vm0, %v6364_v6 }
0x10f9   :  { %v3988_v54 = vmax.f32 %v3969_v23, 0.0 }
0x10fa   :  { %v3973_v29 = vpop.f32.mrb[134].mxu1 }
0x10fb   :  { %v3974_v4 = vadd.f32 %v4789_v25, %v3973_v29  ;;  %v5792_v31 = vpop.f32.mrb[135].mxu1  ;;  %5819 = vmatmul.mubr.msk.f32.gmra.mrb[142].mxu0 %vm2015_vm7, %v3988_v54 }
0x10fc   :  { %5821 = vmatprep.mubr.msk.f32.mxu0 %vm6363_vm0, %v6364_v6 }
0x10fd   :  { %v3989_v49 = vmax.f32 %v3974_v4, 0.0 }
0x10fe   :  { %v3978_v18 = vpop.f32.mrb[136].mxu1 }
0x10ff   :  { %v3979_v45 = vadd.f32 %v4789_v25, %v3978_v18  ;;  %v5795_v12 = vpop.f32.mrb[137].mxu1  ;;  %5822 = vmatmul.mubr.msk.f32.gmra.mrb[144].mxu0 %vm2015_vm7, %v3989_v49 }
0x1100   :  { %5824 = vmatprep.mubr.msk.f32.mxu0 %vm6363_vm0, %v6364_v6 }
0x1101   :  { %v3990_v40 = vmax.f32 %v3979_v45, 0.0 }
0x1102   :  { %v3983_v1 = vpop.f32.mrb[138].mxu1 }
0x1103   :  { %v3984_v0 = vadd.f32 %v4789_v25, %v3983_v1  ;;  %v5798_v58 = vpop.f32.mrb[139].mxu1  ;;  %5825 = vmatmul.mubr.msk.f32.gmra.mrb[146].mxu0 %vm2015_vm7, %v3990_v40 }
0x1104   :  { %5827 = vmatprep.mubr.msk.f32.mxu0 %vm6363_vm0, %v6364_v6 }
0x1105   :  { %v3991_v62 = vmax.f32 %v3984_v0, 0.0 }
0x1107   :  { %5828 = vmatmul.mubr.msk.f32.gmra.mrb[148].mxu0 %vm2015_vm7, %v3991_v62 }
0x11ca   :  { %v4086_v38 = vpop.f32.mrb[140].mxu0 }
0x11cb   :  { %v4087_v34 = vadd.f32 %v4086_v38, %v4004_v26  ;;  %v5817_v30 = vpop.f32.mrb[141].mxu0 }
0x11cd   :  { %v4110_v57 = vadd.f32 %v4087_v34, %v8200_v15 }
0x11ce   :  { %v4091_v37 = vpop.f32.mrb[142].mxu0 }
0x11cf   :  { %v4092_v24 = vadd.f32 %v4091_v37, %v4004_v26  ;;  %v5820_v27 = vpop.f32.mrb[143].mxu0  ;;  %v4115_v50 = vsel %vm80_vm1, %v4110_v57, 0.0 }
0x11d0   :  { %4116 = vadd.xlane.f32.xlu0 %v4115_v50 }
0x11d1   :  { %v4111_v42 = vadd.f32 %v4092_v24, %v8207_v19  ;;  %v4183_v24 = vrot.slane %v8118_v60, %v2193_v48 }
0x11d2   :  { %v4096_v16 = vpop.f32.mrb[144].mxu0 }
0x11d3   :  { %v4097_v41 = vadd.f32 %v4096_v16, %v4004_v26  ;;  %v5823_v8 = vpop.f32.mrb[145].mxu0  ;;  %v4118_v11 = vsel %vm80_vm1, %v4111_v42, 0.0 }
0x11d4   :  { %4119 = vadd.xlane.f32.xlu1 %v4118_v11  ;;  %v4808_v8 = vld [vmem:[%s8385_s13 + $0x18] ss:$0 sm:$0xff] }
0x11d5   :  { %v4112_v36 = vadd.f32 %v4097_v41, %v8214_v17 }
0x11d6   :  { %v4101_v55 = vpop.f32.mrb[146].mxu0 }
0x11d7   :  { %v4102_v47 = vadd.f32 %v4101_v55, %v4004_v26  ;;  %v5826_v35 = vpop.f32.mrb[147].mxu0  ;;  %v4121_v15 = vsel %vm80_vm1, %v4112_v36, 0.0 }
0x11d8   :  { %4122 = vadd.xlane.f32.xlu0 %v4121_v15 }
0x11d9   :  { %v4113_v59 = vadd.f32 %v4102_v47, %v8221_v21 }
0x11da   :  { %v4106_v28 = vpop.f32.mrb[148].mxu0 }
0x11db   :  { %v4107_v43 = vadd.f32 %v4106_v28, %v4004_v26  ;;  %v5829_v7 = vpop.f32.mrb[149].mxu0  ;;  %v4124_v19 = vsel %vm80_vm1, %v4113_v59, 0.0 }
0x11dc   :  { %4125 = vadd.xlane.f32.xlu1 %v4124_v19 }
0x11dd   :  { %v4114_v63 = vadd.f32 %v4107_v43, %v8228_v56 }
0x11df   :  { %v4127_v33 = vsel %vm1809_vm6, %v4114_v63, 0.0 }
0x11e0   :  { %4128 = vadd.xlane.f32.xlu0 %v4127_v33 }
0x125d   :  { %v4117_v17 = vpop.xlane.xlu0 %4116 }
0x125e   :  { %v4130_v51 = vmul.f32 0.03125, %v4117_v17 }
0x1260   :  { %v4135_v13 = vsub.f32 %v4110_v57, %v4130_v51 }
0x1261   :  { %v4120_v20 = vpop.xlane.xlu1 %4119 }
0x1262   :  { %v4131_v5 = vmul.f32 0.03125, %v4120_v20  ;;  %v4140_v9 = vmul.f32 %v4135_v13, %v4135_v13 }
0x1264   :  { %v4136_v14 = vsub.f32 %v4111_v42, %v4131_v5  ;;  %v4145_v21 = vsel %vm80_vm1, %v4140_v9, 0.0 }
0x1265   :  { %v4123_v25 = vpop.xlane.xlu0 %4122  ;;  %4146 = vadd.xlane.f32.xlu1 %v4145_v21 }
0x1266   :  { %v4132_v32 = vmul.f32 0.03125, %v4123_v25  ;;  %v4141_v2 = vmul.f32 %v4136_v14, %v4136_v14 }
0x1268   :  { %v4137_v61 = vsub.f32 %v4112_v36, %v4132_v32  ;;  %v4148_v39 = vsel %vm80_vm1, %v4141_v2, 0.0 }
0x1269   :  { %v4126_v56 = vpop.xlane.xlu1 %4125  ;;  %4149 = vadd.xlane.f32.xlu0 %v4148_v39 }
0x126a   :  { %v4133_v44 = vmul.f32 0.03125, %v4126_v56  ;;  %v4142_v23 = vmul.f32 %v4137_v61, %v4137_v61 }
0x126c   :  { %v4138_v46 = vsub.f32 %v4113_v59, %v4133_v44  ;;  %v4151_v54 = vsel %vm80_vm1, %v4142_v23, 0.0 }
0x126d   :  { %4152 = vadd.xlane.f32.xlu1 %v4151_v54  ;;  %v4129_v29 = vpop.xlane.xlu0 %4128 }
0x126e   :  { %v4134_v4 = vmul.f32 0.03125, %v4129_v29  ;;  %v4143_v31 = vmul.f32 %v4138_v46, %v4138_v46 }
0x1270   :  { %v4139_v49 = vsub.f32 %v4114_v63, %v4134_v4  ;;  %v4154_v18 = vsel %vm80_vm1, %v4143_v31, 0.0 }
0x1271   :  { %4155 = vadd.xlane.f32.xlu0 %v4154_v18 }
0x1272   :  { %v4144_v45 = vmul.f32 %v4139_v49, %v4139_v49 }
0x1274   :  { %v4157_v12 = vsel %vm1809_vm6, %v4144_v45, 0.0 }
0x1275   :  { %4158 = vadd.xlane.f32.xlu1 %v4157_v12 }
0x12f2   :  { %v4147_v40 = vpop.xlane.xlu1 %4146 }
0x12f3   :  { %v4160_v1 = vmul.f32 0.03125, %v4147_v40 }
0x12f5   :  { %v4165_v0 = vadd.f32 1e-05, %v4160_v1 }
0x12f6   :  { %v4150_v58 = vpop.xlane.xlu0 %4149 }
0x12f7   :  { %6282 = vrsqrt.f32 %v4165_v0  ;;  %v4161_v62 = vmul.f32 0.03125, %v4150_v58 }
0x12f9   :  { %v4166_v26 = vadd.f32 1e-05, %v4161_v62 }
0x12fa   :  { %v4153_v38 = vpop.xlane.xlu1 %4152 }
0x12fb   :  { %6284 = vrsqrt.f32 %v4166_v26  ;;  %v4162_v34 = vmul.f32 0.03125, %v4153_v38 }
0x12fd   :  { %v4167_v30 = vadd.f32 1e-05, %v4162_v34 }
0x12fe   :  { %v4156_v57 = vpop.xlane.xlu0 %4155 }
0x12ff   :  { %6286 = vrsqrt.f32 %v4167_v30  ;;  %v4163_v37 = vmul.f32 0.03125, %v4156_v57 }
0x1301   :  { %v6283_v27 = vpop.eup %6282  ;;  %v4168_v50 = vadd.f32 1e-05, %v4163_v37 }
0x1302   :  { %v4159_v42 = vpop.xlane.xlu1 %4158  ;;  %v4175_v16 = vmul.f32 %v6283_v27, %v4135_v13 }
0x1303   :  { %6288 = vrsqrt.f32 %v4168_v50  ;;  %v4164_v41 = vmul.f32 0.03125, %v4159_v42 }
0x1304   :  { %v4184_v11 = vmul.f32 %v4183_v24, %v4175_v16 }
0x1305   :  { %v6285_v36 = vpop.eup %6284  ;;  %v4169_v55 = vadd.f32 1e-05, %v4164_v41 }
0x1306   :  { %v4193_v47 = vadd.f32 %v4808_v8, %v4184_v11  ;;  %v4176_v35 = vmul.f32 %v6285_v36, %v4136_v14  ;;  %v8293_v11 = vld [vmem:[%s8386_s14] sm:$0x7] }
0x1307   :  { %6290 = vrsqrt.f32 %v4169_v55 }
0x1308   :  { %v4199_v52 = vsel %vm80_vm1, %v4193_v47, 0.0  ;;  %v4185_v15 = vmul.f32 %v4183_v24, %v4176_v35  ;;  %v4267_v35 = vrot.slane %v8293_v11, %v6670_v10 }
0x1309   :  { %v6287_v48 = vpop.eup %6286  ;;  %4200 = vadd.xlane.f32.xlu0 %v4199_v52 }
0x130a   :  { %v4194_v60 = vadd.f32 %v4808_v8, %v4185_v15  ;;  %v4177_v59 = vmul.f32 %v6287_v48, %v4137_v61 }
0x130c   :  { %v4202_v28 = vsel %vm80_vm1, %v4194_v60, 0.0  ;;  %v4186_v43 = vmul.f32 %v4183_v24, %v4177_v59 }
0x130d   :  { %v6289_v7 = vpop.eup %6288  ;;  %4203 = vadd.xlane.f32.xlu1 %v4202_v28 }
0x130e   :  { %v4195_v19 = vadd.f32 %v4808_v8, %v4186_v43  ;;  %v4178_v63 = vmul.f32 %v6289_v7, %v4138_v46  ;;  %v4276_v7 = vrot.slane %v8293_v11, %v6652_v53 }
0x1310   :  { %v4205_v33 = vsel %vm80_vm1, %v4195_v19, 0.0  ;;  %v4187_v17 = vmul.f32 %v4183_v24, %v4178_v63 }
0x1311   :  { %v6291_v51 = vpop.eup %6290  ;;  %4206 = vadd.xlane.f32.xlu0 %v4205_v33 }
0x1312   :  { %v4196_v13 = vadd.f32 %v4808_v8, %v4187_v17  ;;  %v4179_v20 = vmul.f32 %v6291_v51, %v4139_v49 }
0x1314   :  { %v4208_v5 = vsel %vm80_vm1, %v4196_v13, 0.0  ;;  %v4188_v9 = vmul.f32 %v4183_v24, %v4179_v20 }
0x1315   :  { %4209 = vadd.xlane.f32.xlu1 %v4208_v5 }
0x1316   :  { %v4197_v14 = vadd.f32 %v4808_v8, %v4188_v9 }
0x1318   :  { %v4211_v21 = vsel %vm1809_vm6, %v4197_v14, 0.0 }
0x1319   :  { %4212 = vadd.xlane.f32.xlu0 %v4211_v21 }
0x1396   :  { %v4201_v25 = vpop.xlane.xlu0 %4200 }
0x1397   :  { %v4214_v32 = vmul.f32 0.03125, %v4201_v25 }
0x1399   :  { %v4219_v2 = vsub.f32 %v4193_v47, %v4214_v32 }
0x139a   :  { %v4204_v61 = vpop.xlane.xlu1 %4203 }
0x139b   :  { %v4215_v39 = vmul.f32 0.03125, %v4204_v61  ;;  %v4224_v56 = vmul.f32 %v4219_v2, %v4219_v2  ;;  %v4359_v61 = vld [vmem:[%s8387_s15] sm:$0xff] }
0x139d   :  { %v4220_v44 = vsub.f32 %v4194_v60, %v4215_v39  ;;  %v4229_v23 = vsel %vm80_vm1, %v4224_v56, 0.0  ;;  %v4360_v39 = vld [vmem:[%s8387_s15 + $0x8] sm:$0xff] }
0x139e   :  { %4230 = vadd.xlane.f32.xlu1 %v4229_v23  ;;  %v4207_v46 = vpop.xlane.xlu0 %4206  ;;  %v6074_v23 = vpack.c.bf16 %v4360_v39, %v4359_v61 }
0x139f   :  { %v4216_v54 = vmul.f32 0.03125, %v4207_v46  ;;  %v4225_v29 = vmul.f32 %v4220_v44, %v4220_v44  ;;  %v4361_v46 = vld [vmem:[%s8387_s15 + $0x10] sm:$0xff] }
0x13a1   :  { %v4221_v4 = vsub.f32 %v4195_v19, %v4216_v54  ;;  %v4232_v31 = vsel %vm80_vm1, %v4225_v29, 0.0  ;;  %v4362_v54 = vld [vmem:[%s8387_s15 + $0x18] sm:$0xff] }
0x13a2   :  { %4233 = vadd.xlane.f32.xlu0 %v4232_v31  ;;  %v4210_v49 = vpop.xlane.xlu1 %4209  ;;  %v6077_v29 = vpack.c.bf16 %v4362_v54, %v4361_v46  ;;  %v4442_v31 = vld [vmem:[%s8388_s16 + $0x8] sm:$0xff] }
0x13a3   :  { %v4217_v18 = vmul.f32 0.03125, %v4210_v49  ;;  %v4226_v45 = vmul.f32 %v4221_v4, %v4221_v4 }
0x13a5   :  { %v4222_v12 = vsub.f32 %v4196_v13, %v4217_v18  ;;  %v4235_v40 = vsel %vm80_vm1, %v4226_v45, 0.0 }
0x13a6   :  { %4236 = vadd.xlane.f32.xlu1 %v4235_v40  ;;  %v4213_v1 = vpop.xlane.xlu0 %4212  ;;  %v4444_v40 = vld [vmem:[%s8388_s16 + $0x18] sm:$0xff] }
0x13a7   :  { %v4218_v0 = vmul.f32 0.03125, %v4213_v1  ;;  %v4227_v58 = vmul.f32 %v4222_v12, %v4222_v12 }
0x13a9   :  { %v4223_v62 = vsub.f32 %v4197_v14, %v4218_v0  ;;  %v4238_v26 = vsel %vm80_vm1, %v4227_v58, 0.0  ;;  %v4366_v0 = vrot.slane %v8293_v11, %v6677_v22 }
0x13aa   :  { %4239 = vadd.xlane.f32.xlu0 %v4238_v26 }
0x13ab   :  { %v4228_v38 = vmul.f32 %v4223_v62, %v4223_v62 }
0x13ad   :  { %v4241_v34 = vsel %vm1809_vm6, %v4228_v38, 0.0 }
0x13ae   :  { %4242 = vadd.xlane.f32.xlu1 %v4241_v34  ;;  %v4527_v34 = vld [vmem:[%s8390_s18] sm:$0x3] }
0x142b   :  { %v4231_v30 = vpop.xlane.xlu1 %4230 }
0x142c   :  { %v4244_v57 = vmul.f32 0.03125, %v4231_v30 }
0x142e   :  { %v4249_v37 = vadd.f32 1e-05, %v4244_v57 }
0x142f   :  { %v4234_v24 = vpop.xlane.xlu0 %4233 }
0x1430   :  { %6292 = vrsqrt.f32 %v4249_v37  ;;  %v4245_v27 = vmul.f32 0.03125, %v4234_v24 }
0x1432   :  { %v4250_v50 = vadd.f32 1e-05, %v4245_v27 }
0x1433   :  { %v4237_v42 = vpop.xlane.xlu1 %4236 }
0x1434   :  { %6294 = vrsqrt.f32 %v4250_v50  ;;  %v4246_v16 = vmul.f32 0.03125, %v4237_v42 }
0x1436   :  { %v4251_v41 = vadd.f32 1e-05, %v4246_v16 }
0x1437   :  { %v4240_v8 = vpop.xlane.xlu0 %4239 }
0x1438   :  { %6296 = vrsqrt.f32 %v4251_v41  ;;  %v4247_v36 = vmul.f32 0.03125, %v4240_v8 }
0x143a   :  { %v6293_v55 = vpop.eup %6292  ;;  %v4252_v47 = vadd.f32 1e-05, %v4247_v36 }
0x143b   :  { %v4259_v52 = vmul.f32 %v6293_v55, %v4219_v2  ;;  %v4243_v15 = vpop.xlane.xlu1 %4242 }
0x143c   :  { %6298 = vrsqrt.f32 %v4252_v47  ;;  %v4248_v48 = vmul.f32 0.03125, %v4243_v15 }
0x143d   :  { %v4268_v43 = vmul.f32 %v4267_v35, %v4259_v52 }
0x143e   :  { %v6295_v60 = vpop.eup %6294  ;;  %v4253_v59 = vadd.f32 1e-05, %v4248_v48 }
0x143f   :  { %v4260_v28 = vmul.f32 %v6295_v60, %v4220_v44  ;;  %v4277_v17 = vadd.f32 %v4276_v7, %v4268_v43  ;;  %v4282_v44 = vld [vmem:[%s8377_s5] sm:$0x3] }
0x1440   :  { %6300 = vrsqrt.f32 %v4253_v59 }
0x1441   :  { %v4269_v19 = vmul.f32 %v4267_v35, %v4260_v28 }
0x1442   :  { %v6297_v63 = vpop.eup %6296 }
0x1443   :  { %v4261_v33 = vmul.f32 %v6297_v63, %v4221_v4  ;;  %v4278_v51 = vadd.f32 %v4276_v7, %v4269_v19  ;;  %v4441_v4 = vld [vmem:[%s8388_s16] sm:$0xff] }
0x1444   :  { %v6080_v49 = vpack.c.bf16 %v4442_v31, %v4441_v4 }
0x1445   :  { %v6068_v13 = vpack.c.bf16 %v4278_v51, %v4277_v17  ;;  %v4270_v5 = vmul.f32 %v4267_v35, %v4261_v33 }
0x1446   :  { %v6299_v20 = vpop.eup %6298 }
0x1447   :  { %v4262_v10 = vmul.f32 %v6299_v20, %v4222_v12  ;;  %6069 = vmatpush3.bf16.msra.mxu1 %v6068_v13  ;;  %v4279_v25 = vadd.f32 %v4276_v7, %v4270_v5  ;;  %v4443_v12 = vld [vmem:[%s8388_s16 + $0x10] sm:$0xff]  ;;  %s6365_s16 = smov [#allocation2]  }
0x1448   :  { %6070 = vmatprep.subr.bf16.mxu1 %v6362_v3  ;;  %v6083_v1 = vpack.c.bf16 %v4444_v40, %v4443_v12  ;;  %s4552_s11 = sshll.u32 %s6365_s16, 4  ;;  %s4553_s11 = int_to_ptr.vmem [resolvable:$true] %s4552_s11 }
0x1449   :  { %v4271_v9 = vmul.f32 %v4267_v35, %v4262_v10  ;;  %s6314_s12 = scalar_lea.vmem %s4553_s11, 32  ;;  %p6319_p1 = scmp.lt.s32.totalorder %s4553_s11, %s4553_s11 }
0x144a   :  { %v6301_v14 = vpop.eup %6300  ;;  %p6315_p0 = scmp.ne.s32.totalorder %s4553_s11, %s6314_s12  ;;  %p6320_p2 = scmp.lt.s32.totalorder %s6314_s12, %s6314_s12 }
0x144b   :  { %v4263_v21 = vmul.f32 %v6301_v14, %v4223_v62  ;;  %v4280_v32 = vadd.f32 %v4276_v7, %v4271_v9 }
0x144c   :  { %p6321_p3 = por %p6320_p2, %p6319_p1 }
0x144d   :  { %v4272_v2 = vmul.f32 %v4267_v35, %v4263_v21  ;;  %v6071_v53 = vpack.c.bf16 %v4280_v32, %v4279_v25 }
0x144e   :  { %p6322_p4 = pnand %p6321_p3, %p6315_p0 }
0x144f   :  { %6072 = vmatpush3.bf16.msra.mxu1 %v6071_v53  ;;  %v4281_v56 = vadd.f32 %v4276_v7, %v4272_v2 }
0x1450   :  { %5838 = vmatprep.subr.mxu1 %v6364_v6 }
0x1453   :  { %5839 = vmatpush3.msk.msra.mxu1 %vm717_vm3, %v4281_v56 }
0x1454   :  { %5841 = vmatmul.mubr.msk.f32.vlgmr.msra.gmra.mrb[140].mxu1 %vm645_vm4, %v4282_v44  ;;  %6073 = vmatprep.subr.bf16.mxu1 %v6362_v3 }
0x1455   :  { %6075 = vmatpush3.bf16.msra.mxu1 %v6074_v23  ;;  %5851 = vmatprep.mubr.msk.f32.mxu1 %vm6363_vm0, %v6364_v6 }
0x1456   :  { %6076 = vmatprep.subr.bf16.mxu1 %v6362_v3 }
0x1459   :  { %6078 = vmatpush3.bf16.msra.mxu1 %v6077_v29 }
0x145a   :  { %6079 = vmatprep.subr.bf16.mxu1 %v6362_v3 }
0x1527   :  { %v4355_v18 = vpop.f32.mrb[140].mxu1 }
0x1528   :  { %5852 = vmatmul.mubr.msk.f32.vlgmr.msra.gmra.mrb[142].mxu1 %vm80_vm1, %v4355_v18  ;;  %v5842_v45 = vpop.f32.mrb[141].mxu1 }
0x1529   :  { %6081 = vmatpush3.bf16.msra.mxu1 %v6080_v49  ;;  %5862 = vmatprep.mubr.msk.f32.mxu1 %vm6363_vm0, %v6364_v6 }
0x152a   :  { %6082 = vmatprep.subr.bf16.mxu1 %v6362_v3  ;;  %v4812_v3 = vld [vmem:[%s8389_s17] ss:$0 sm:$0xff] }
0x152d   :  { %6084 = vmatpush3.bf16.msra.mxu1 %v6083_v1 }
0x15fb   :  { %v4436_v58 = vpop.f32.mrb[142].mxu1 }
0x15fc   :  { %v4437_v62 = vadd.f32 %v4436_v58, %v4366_v0  ;;  %v5853_v26 = vpop.f32.mrb[143].mxu1 }
0x15fe   :  { %v4440_v38 = vmax.f32 %v4437_v62, 0.0 }
0x1600   :  { %5863 = vmatmul.mubr.msk.f32.vlgmr.msra.gmra.mrb[144].mxu1 %vm80_vm1, %v4440_v38 }
0x16d3   :  { %v4521_v6 = vpop.f32.mrb[144].mxu1 }
0x16d4   :  { %v4522_v30 = vadd.f32 %v4812_v3, %v4521_v6  ;;  %v5864_v57 = vpop.f32.mrb[145].mxu1 }
0x16d6   :  { %v4528_v37 = vsub.f32 %v4522_v30, %v4527_v34  ;;  %4526 = vst.msk [vmem:[#allocation2] sm:$0x3] %vm4525_vm8, %v4522_v30 }
0x16d8   :  { %v4529_v22 = vmul.f32 %v4528_v37, %v4528_v37 }
0x16da   :  { %v4530_v24 = vsel %vm4525_vm8, %v4529_v22, 0.0 }
0x16db   :  { %4531 = vadd.xlane.f32.xlu0 %v4530_v24 }
0x16dc   :  { %6325 = shalt.err (!%p6322_p4)
}
0x16dd   :  { %s6326_s13 = scalar_lea.hbm %s8391_s19, 32 }
0x16de   :  { %p6327_p5 = scmp.ne.s32.totalorder %s8391_s19, %s6326_s13  ;;  %p6330_p6 = scmp.lt.u32.totalorder %s6326_s13, %s8391_s19 }
0x16e0   :  { %p6332_p7 = pnand %p6330_p6, %p6327_p5 }
0x16e2   :  { %6335 = shalt.err (!%p6332_p7)
}
0x16e3   :  { %4555 = dma.vmem_to_hbm [thread:$0]  %s4553_s11, 32, %s8391_s19, [#allocation3]   ;;  %vm4544_vm9 = vcmask 0  }
0x16e4   :  { %s6366_s25 = smov [#allocation4]  }
0x16e5   :  { %s4562_s6 = sshll.u32 %s6366_s25, 4  ;;  %s4563_s6 = int_to_ptr.vmem [resolvable:$true] %s4562_s6 }
0x16e6   :  { %s6336_s3 = scalar_lea.vmem %s4563_s6, 16  ;;  %s6340_s5 = scalar_lea.vmem %s4563_s6, 32 }
0x16e7   :  { %p6337_p8 = scmp.ne.s32.totalorder %s4563_s6, %s6336_s3  ;;  %p6341_p9 = scmp.lt.s32.totalorder %s4563_s6, %s4563_s6 }
0x16e8   :  { %p6342_p10 = scmp.lt.s32.totalorder %s6340_s5, %s6336_s3 }
0x16ea   :  { %p6343_p11 = por %p6342_p10, %p6341_p9 }
0x16ec   :  { %p6344_p12 = pnand %p6343_p11, %p6337_p8 }
0x1768   :  { %v4532_v27 = vpop.xlane.xlu0 %4531 }
0x1769   :  { %v4533_v50 = vrot.slane %v4532_v27, 4 }
0x176b   :  { %v4534_v42 = vadd.f32 %v4533_v50, %v4532_v27 }
0x176d   :  { %v4535_v16 = vrot.slane %v4534_v42, 2 }
0x176f   :  { %v4536_v41 = vadd.f32 %v4535_v16, %v4534_v42 }
0x1771   :  { %v4537_v8 = vrot.slane %v4536_v41, 1 }
0x1773   :  { %v4538_v11 = vadd.f32 %v4537_v8, %v4536_v41 }
0x1775   :  { %6085 = vpush %v4538_v11 }
0x17a6   :  { %s6086_s7 = spop %6085 }
0x17a7   :  { %s4542_s2 = smul.f32 0.25, %s6086_s7 }
0x17a9   :  { %v4543_v36 = vstv %s4542_s2 }
0x17aa   :  { %4545 = vst.msk [vmem:[#allocation4] sm:$0x1] %vm4544_vm9, %v4543_v36 }
0x17ab   :  { %6347 = shalt.err (!%p6344_p12)
}
0x17ac   :  { %s6348_s15 = scalar_lea.hbm %s8392_s20, 16 }
0x17ad   :  { %p6349_p13 = scmp.ne.s32.totalorder %s8392_s20, %s6348_s15  ;;  %p6352_p0 = scmp.lt.u32.totalorder %s6348_s15, %s8392_s20 }
0x17af   :  { %p6354_p1 = pnand %p6352_p0, %p6349_p13 }
0x17b1   :  { %6357 = shalt.err (!%p6354_p1)
}
0x17b2   :  { %4565 = dma.vmem_to_hbm [thread:$0]  %s4563_s6, 16, %s8392_s20, [#allocation5]  }
0x17b3   :  { %6358 = dma.done.wait [#allocation3], 32  }
0x17b4   :  { %6359 = vsyncadd [#allocation3], 4294967264 }
0x17b5   :  { %6360 = dma.done.wait [#allocation5], 16  }
0x17b6   :  { %6361 = vsyncadd [#allocation5], 4294967280 }
0x17b7   :  { %4572 = vsyncpa [#allocation3], 1 }
0x17b8   :  { %4573 = vsyncpa [#allocation5], 1 }

</bundles_post_ra>
